<compile_context>
chip_gen: v7x
topology: tpu7x:2x2x1
jax: 0.10.0
libtpu: 0.0.40
codegen_flags: <defaults>
</compile_context>

<pallas_src>
import jax
import jax.numpy as jnp
import numpy as np
from jax import lax
from jax.experimental import pallas as pl
from jax.experimental.pallas import tpu as pltpu

HIDDEN_DIM = 128
INPUT_DIM = 1
NUM_LAYERS = 2   # hard-wired as two explicit layers in the kernel
OUTPUT_DIM = 1


def _lstm_kernel(g0in_ref, whh0_ref, w1_ref, b1_ref, h_out_ref,
                 h0_ref, c0_ref, h1_ref, c1_ref):
    """One time-chunk of the 2-layer LSTM recurrence.

    g0in_ref : (Tc, B, 4H) f32   layer-0 gate pre-activation input part
                                  (x_t @ w_ih0.T + b_ih0 + b_hh0, precomputed)
    whh0_ref : (H, 4H)     bf16  layer-0 recurrent weight (pre-transposed)
    w1_ref   : (2H, 4H)    bf16  layer-1 [w_ih1 ; w_hh1] stacked (fused K=2H dot)
    b1_ref   : (1, 4H)     f32   layer-1 combined bias (b_ih1 + b_hh1)
    h_out_ref: (B, H)      f32   layer-1 hidden state at the final time step
    h0/c0/h1/c1_ref : (B, H) f32 VMEM scratch carrying state across chunks
    """
    H = HIDDEN_DIM
    Tc, B, G = g0in_ref.shape

    @pl.when(pl.program_id(0) == 0)
    def _():
        zeros = jnp.zeros((B, H), jnp.float32)
        h0_ref[...] = zeros
        c0_ref[...] = zeros
        h1_ref[...] = zeros
        c1_ref[...] = zeros

    # Hoisted loop-invariant broadcast (JAX does not CSE broadcast_in_dim).
    b1 = jnp.broadcast_to(b1_ref[...], (B, G))

    def sigmoid(x):
        # Single-EUP-push sigmoid: sigmoid(x) == 0.5 * tanh(0.5 * x) + 0.5.
        return 0.5 * jnp.tanh(0.5 * x) + 0.5

    def step(t, carry):
        h0, c0, h1, c1 = carry

        # ---- layer 0: precomputed input part + recurrent matmul (MXU) ----
        # Weights are streamed from VMEM at the dot site (no vreg residency).
        g0 = g0in_ref[t] + jnp.dot(h0.astype(jnp.bfloat16), whh0_ref[...],
                                   preferred_element_type=jnp.float32)
        i0 = sigmoid(g0[:, 0 * H:1 * H])
        f0 = sigmoid(g0[:, 1 * H:2 * H])
        gg0 = jnp.tanh(g0[:, 2 * H:3 * H])
        o0 = sigmoid(g0[:, 3 * H:4 * H])
        c0 = f0 * c0 + i0 * gg0
        h0 = o0 * jnp.tanh(c0)

        # ---- layer 1: fused K=2H contraction over [h0_new ; h1_prev] ----
        h01 = jnp.concatenate([h0, h1], axis=1).astype(jnp.bfloat16)   # (B, 2H)
        g1 = jnp.dot(h01, w1_ref[...], preferred_element_type=jnp.float32) + b1
        i1 = sigmoid(g1[:, 0 * H:1 * H])
        f1 = sigmoid(g1[:, 1 * H:2 * H])
        gg1 = jnp.tanh(g1[:, 2 * H:3 * H])
        o1 = sigmoid(g1[:, 3 * H:4 * H])
        c1 = f1 * c1 + i1 * gg1
        h1 = o1 * jnp.tanh(c1)

        return (h0, c0, h1, c1)

    carry0 = (h0_ref[...], c0_ref[...], h1_ref[...], c1_ref[...])
    h0, c0, h1, c1 = lax.fori_loop(0, Tc, step, carry0, unroll=min(8, Tc))

    h0_ref[...] = h0
    c0_ref[...] = c0
    h1_ref[...] = h1
    c1_ref[...] = c1

    @pl.when(pl.program_id(0) == pl.num_programs(0) - 1)
    def _():
        h_out_ref[...] = h1


def _pick_time_chunk(T, max_chunk=32):
    """Largest divisor of T that is <= max_chunk (keeps the grid exact)."""
    for c in range(min(T, max_chunk), 0, -1):
        if T % c == 0:
            return c
    return T


@jax.jit
def lstm_forward(x, params):
    """x: (B, T, INPUT_DIM) float32  ->  (B, OUTPUT_DIM) float32."""
    B, T, D = x.shape
    assert D == INPUT_DIM == 1
    H = HIDDEN_DIM
    G = 4 * H
    t_chunk = _pick_time_chunk(T)
    num_chunks = T // t_chunk

    # ---- host-side (XLA) prep -------------------------------------------
    # Time-major input; fold the layer-0 input matmul (rank-1, input_dim=1)
    # and combined bias into a lane-dense (T, B, 4H) pre-activation tensor.
    x_tbd = jnp.transpose(x, (1, 0, 2)).astype(jnp.float32)             # (T, B, 1)
    wih0_row = params["w_ih0"].T.reshape(1, 1, G).astype(jnp.float32)   # (1, 1, 4H)
    b0 = (params["b_ih0"] + params["b_hh0"]).reshape(1, 1, G).astype(jnp.float32)
    g0in = x_tbd * wih0_row + b0                                        # (T, B, 4H)

    # Recurrent weights: pre-transpose to (in, 4H); bf16 MXU operands.
    whh0 = params["w_hh0"].T.astype(jnp.bfloat16)                       # (H, 4H)
    w1 = jnp.concatenate([params["w_ih1"].T, params["w_hh1"].T],
                         axis=0).astype(jnp.bfloat16)                   # (2H, 4H)
    b1 = (params["b_ih1"] + params["b_hh1"]).reshape(1, G).astype(jnp.float32)

    h_last = pl.pallas_call(
        _lstm_kernel,
        out_shape=jax.ShapeDtypeStruct((B, H), jnp.float32),
        grid_spec=pltpu.PrefetchScalarGridSpec(
            num_scalar_prefetch=0,
            grid=(num_chunks,),
            in_specs=[
                pl.BlockSpec((t_chunk, B, G), lambda t: (t, 0, 0)),   # streamed
                pl.BlockSpec((H, G), lambda t: (0, 0)),               # resident
                pl.BlockSpec((2 * H, G), lambda t: (0, 0)),           # resident
                pl.BlockSpec((1, G), lambda t: (0, 0)),               # resident
            ],
            out_specs=pl.BlockSpec((B, H), lambda t: (0, 0)),
            scratch_shapes=[pltpu.VMEM((B, H), jnp.float32)] * 4,
        ),
        compiler_params=pltpu.CompilerParams(
            dimension_semantics=("arbitrary",),        # time recurrence is serial
            vmem_limit_bytes=32 * 1024 * 1024,
        ),
    )(g0in, whh0, w1, b1)

    # Final fc on the last hidden state (lane-sparse (B,1) — cheaper in XLA).
    return h_last @ params["fc_w"].T + params["fc_b"]


def init_params(key):
    """Deterministic init matching PyTorch nn.LSTM / nn.Linear shapes."""
    H, D, G = HIDDEN_DIM, INPUT_DIM, 4 * HIDDEN_DIM
    k = 1.0 / np.sqrt(H)
    keys = jax.random.split(key, 10)
    u = lambda kk, shape: jax.random.uniform(kk, shape, jnp.float32, -k, k)
    return {
        "w_ih0": u(keys[0], (G, D)),
        "w_hh0": u(keys[1], (G, H)),
        "b_ih0": u(keys[2], (G,)),
        "b_hh0": u(keys[3], (G,)),
        "w_ih1": u(keys[4], (G, H)),
        "w_hh1": u(keys[5], (G, H)),
        "b_ih1": u(keys[6], (G,)),
        "b_hh1": u(keys[7], (G,)),
        "fc_w": u(keys[8], (OUTPUT_DIM, H)),
        "fc_b": u(keys[9], (OUTPUT_DIM,)),
    }


def lstm_reference(x, params):
    """Pure-JAX f32 reference mirroring PyTorch nn.LSTM(batch_first) + fc."""
    B, T, _ = x.shape
    H = HIDDEN_DIM

    def cell(carry, x_t, w_ih, w_hh, b_ih, b_hh):
        h, c = carry
        gates = x_t @ w_ih.T + b_ih + h @ w_hh.T + b_hh
        i = jax.nn.sigmoid(gates[:, 0 * H:1 * H])
        f = jax.nn.sigmoid(gates[:, 1 * H:2 * H])
        g = jnp.tanh(gates[:, 2 * H:3 * H])
        o = jax.nn.sigmoid(gates[:, 3 * H:4 * H])
        c = f * c + i * g
        h = o * jnp.tanh(c)
        return (h, c), h

    h0 = c0 = jnp.zeros((B, H), jnp.float32)
    h1 = c1 = jnp.zeros((B, H), jnp.float32)
    y1 = None
    for t in range(T):
        (h0, c0), y0 = cell((h0, c0), x[:, t, :],
                            params["w_ih0"], params["w_hh0"],
                            params["b_ih0"], params["b_hh0"])
        (h1, c1), y1 = cell((h1, c1), y0,
                            params["w_ih1"], params["w_hh1"],
                            params["b_ih1"], params["b_hh1"])
    return y1 @ params["fc_w"].T + params["fc_b"]


if __name__ == "__main__":
    key = jax.random.PRNGKey(0)
    k_param, k_x = jax.random.split(key)

    B, T = 8, 8  # small shapes; (B, T, input_dim=1) like the PyTorch forward
    x = jax.random.normal(k_x, (B, T, INPUT_DIM), jnp.float32)
    params = init_params(k_param)

    out = lstm_forward(x, params)
    out = jax.block_until_ready(out)

    ref = lstm_reference(x, params)
    # Tolerance accounts for bf16 matmul operands feeding the recurrence
    # (states/gates/bias math and all accumulation remain f32).
    np.testing.assert_allclose(np.asarray(out), np.asarray(ref),
                               rtol=2e-2, atol=2e-2)
    print("KERNEL_OK")
</pallas_src>

<mosaic_0001>
module attributes {stable_mosaic.version = 11 : i64} {
  func.func @_lstm_kernel(%arg0: i32, %arg1: memref<8x8x512xf32, #tpu.memory_space<vmem>>, %arg2: memref<128x512xbf16, #tpu.memory_space<vmem>>, %arg3: memref<256x512xbf16, #tpu.memory_space<vmem>>, %arg4: memref<1x512xf32, #tpu.memory_space<vmem>>, %arg5: memref<8x128xf32, #tpu.memory_space<vmem>>, %arg6: memref<8x128xf32, #tpu.memory_space<vmem>>, %arg7: memref<8x128xf32, #tpu.memory_space<vmem>>, %arg8: memref<8x128xf32, #tpu.memory_space<vmem>>, %arg9: memref<8x128xf32, #tpu.memory_space<vmem>>) attributes {dimension_semantics = [#tpu.dimension_semantics<arbitrary>], iteration_bounds = array<i64: 1>, scalar_prefetch = 0 : i64, scratch_operands = 4 : i64, tpu.core_type = #tpu.core_type<tc>, window_params = [{transform_indices = @transform_0, window_bounds = array<i64: 8, 8, 512>}, {pipeline_mode = #tpu.pipeline_mode<synchronous>, transform_indices = @transform_1, window_bounds = array<i64: 128, 512>}, {pipeline_mode = #tpu.pipeline_mode<synchronous>, transform_indices = @transform_2, window_bounds = array<i64: 256, 512>}, {pipeline_mode = #tpu.pipeline_mode<synchronous>, transform_indices = @transform_3, window_bounds = array<i64: 1, 512>}, {pipeline_mode = #tpu.pipeline_mode<synchronous>, transform_indices = @transform_4, window_bounds = array<i64: 8, 128>}]} {
    %c0_i32 = arith.constant 0 : i32
    %0 = arith.cmpi eq, %arg0, %c0_i32 : i32
    %1 = arith.extui %0 : i1 to i32
    %c0_i32_0 = arith.constant 0 : i32
    %2 = arith.cmpi ne, %1, %c0_i32_0 : i32
    scf.if %2 {
      %cst_228 = arith.constant 0.000000e+00 : f32
      %609 = vector.broadcast %cst_228 : f32 to vector<8x128xf32>
      %c0_229 = arith.constant 0 : index
      %c0_230 = arith.constant 0 : index
      %610 = vector.load %arg6[%c0_229, %c0_230] : memref<8x128xf32, #tpu.memory_space<vmem>>, vector<8x128xf32>
      tpu.vector_store %arg6[%c0_229, %c0_230], %609 {strides = array<i32>} : memref<8x128xf32, #tpu.memory_space<vmem>>, vector<8x128xf32>,
      %c0_231 = arith.constant 0 : index
      %c0_232 = arith.constant 0 : index
      %611 = vector.load %arg7[%c0_231, %c0_232] : memref<8x128xf32, #tpu.memory_space<vmem>>, vector<8x128xf32>
      tpu.vector_store %arg7[%c0_231, %c0_232], %609 {strides = array<i32>} : memref<8x128xf32, #tpu.memory_space<vmem>>, vector<8x128xf32>,
      %c0_233 = arith.constant 0 : index
      %c0_234 = arith.constant 0 : index
      %612 = vector.load %arg8[%c0_233, %c0_234] : memref<8x128xf32, #tpu.memory_space<vmem>>, vector<8x128xf32>
      tpu.vector_store %arg8[%c0_233, %c0_234], %609 {strides = array<i32>} : memref<8x128xf32, #tpu.memory_space<vmem>>, vector<8x128xf32>,
      %c0_235 = arith.constant 0 : index
      %c0_236 = arith.constant 0 : index
      %613 = vector.load %arg9[%c0_235, %c0_236] : memref<8x128xf32, #tpu.memory_space<vmem>>, vector<8x128xf32>
      tpu.vector_store %arg9[%c0_235, %c0_236], %609 {strides = array<i32>} : memref<8x128xf32, #tpu.memory_space<vmem>>, vector<8x128xf32>,
    } else {
    }
    %c0 = arith.constant 0 : index
    %c0_1 = arith.constant 0 : index
    %3 = vector.load %arg4[%c0, %c0_1] : memref<1x512xf32, #tpu.memory_space<vmem>>, vector<1x512xf32>
    %4 = vector.shape_cast %3 : vector<1x512xf32> to vector<1x512xf32>
    %5 = vector.broadcast %4 : vector<1x512xf32> to vector<8x512xf32>
    %c0_2 = arith.constant 0 : index
    %c0_3 = arith.constant 0 : index
    %6 = vector.load %arg6[%c0_2, %c0_3] : memref<8x128xf32, #tpu.memory_space<vmem>>, vector<8x128xf32>
    %c0_4 = arith.constant 0 : index
    %c0_5 = arith.constant 0 : index
    %7 = vector.load %arg7[%c0_4, %c0_5] : memref<8x128xf32, #tpu.memory_space<vmem>>, vector<8x128xf32>
    %c0_6 = arith.constant 0 : index
    %c0_7 = arith.constant 0 : index
    %8 = vector.load %arg8[%c0_6, %c0_7] : memref<8x128xf32, #tpu.memory_space<vmem>>, vector<8x128xf32>
    %c0_8 = arith.constant 0 : index
    %c0_9 = arith.constant 0 : index
    %9 = vector.load %arg9[%c0_8, %c0_9] : memref<8x128xf32, #tpu.memory_space<vmem>>, vector<8x128xf32>
    %c0_i32_10 = arith.constant 0 : i32
    %10 = arith.index_cast %c0_i32_10 : i32 to index
    %c0_11 = arith.constant 0 : index
    %c0_12 = arith.constant 0 : index
    %11 = vector.load %arg1[%10, %c0_11, %c0_12] : memref<8x8x512xf32, #tpu.memory_space<vmem>>, vector<1x8x512xf32>
    %12 = vector.shape_cast %11 : vector<1x8x512xf32> to vector<8x512xf32>
    %13 = arith.truncf %6 : vector<8x128xf32> to vector<8x128xbf16>
    %c0_13 = arith.constant 0 : index
    %c0_14 = arith.constant 0 : index
    %14 = vector.load %arg2[%c0_13, %c0_14] : memref<128x512xbf16, #tpu.memory_space<vmem>>, vector<128x512xbf16>
    %cst = arith.constant dense<0.000000e+00> : vector<8x512xf32>
    %15 = tpu.matmul %13, %14, %cst {dimension_numbers = #tpu.dot_dimension_numbers<[1], [0], [0], [1], [0, 0, 1, 1], [], []>} : vector<8x128xbf16>, vector<128x512xbf16>, vector<8x512xf32> -> vector<8x512xf32>
    %16 = arith.addf %12, %15 : vector<8x512xf32>
    %17 = vector.extract_strided_slice %16 {offsets = [0, 0], sizes = [8, 128], strides = [1, 1]} : vector<8x512xf32> to vector<8x128xf32>
    %cst_15 = arith.constant 5.000000e-01 : f32
    %18 = vector.broadcast %cst_15 : f32 to vector<8x128xf32>
    %19 = arith.mulf %18, %17 : vector<8x128xf32>
    %20 = math.tanh %19 : vector<8x128xf32>
    %cst_16 = arith.constant 5.000000e-01 : f32
    %21 = vector.broadcast %cst_16 : f32 to vector<8x128xf32>
    %22 = arith.mulf %21, %20 : vector<8x128xf32>
    %cst_17 = arith.constant 5.000000e-01 : f32
    %23 = vector.broadcast %cst_17 : f32 to vector<8x128xf32>
    %24 = arith.addf %22, %23 : vector<8x128xf32>
    %25 = vector.extract_strided_slice %16 {offsets = [0, 128], sizes = [8, 128], strides = [1, 1]} : vector<8x512xf32> to vector<8x128xf32>
    %cst_18 = arith.constant 5.000000e-01 : f32
    %26 = vector.broadcast %cst_18 : f32 to vector<8x128xf32>
    %27 = arith.mulf %26, %25 : vector<8x128xf32>
    %28 = math.tanh %27 : vector<8x128xf32>
    %cst_19 = arith.constant 5.000000e-01 : f32
    %29 = vector.broadcast %cst_19 : f32 to vector<8x128xf32>
    %30 = arith.mulf %29, %28 : vector<8x128xf32>
    %cst_20 = arith.constant 5.000000e-01 : f32
    %31 = vector.broadcast %cst_20 : f32 to vector<8x128xf32>
    %32 = arith.addf %30, %31 : vector<8x128xf32>
    %33 = vector.extract_strided_slice %16 {offsets = [0, 256], sizes = [8, 128], strides = [1, 1]} : vector<8x512xf32> to vector<8x128xf32>
    %34 = math.tanh %33 : vector<8x128xf32>
    %35 = vector.extract_strided_slice %16 {offsets = [0, 384], sizes = [8, 128], strides = [1, 1]} : vector<8x512xf32> to vector<8x128xf32>
    %cst_21 = arith.constant 5.000000e-01 : f32
    %36 = vector.broadcast %cst_21 : f32 to vector<8x128xf32>
    %37 = arith.mulf %36, %35 : vector<8x128xf32>
    %38 = math.tanh %37 : vector<8x128xf32>
    %cst_22 = arith.constant 5.000000e-01 : f32
    %39 = vector.broadcast %cst_22 : f32 to vector<8x128xf32>
    %40 = arith.mulf %39, %38 : vector<8x128xf32>
    %cst_23 = arith.constant 5.000000e-01 : f32
    %41 = vector.broadcast %cst_23 : f32 to vector<8x128xf32>
    %42 = arith.addf %40, %41 : vector<8x128xf32>
    %43 = arith.mulf %32, %7 : vector<8x128xf32>
    %44 = arith.mulf %24, %34 : vector<8x128xf32>
    %45 = arith.addf %43, %44 : vector<8x128xf32>
    %46 = math.tanh %45 : vector<8x128xf32>
    %47 = arith.mulf %42, %46 : vector<8x128xf32>
    %48 = tpu.concatenate %47, %8 in 1 : vector<8x128xf32>, vector<8x128xf32> -> vector<8x256xf32>
    %49 = arith.truncf %48 : vector<8x256xf32> to vector<8x256xbf16>
    %c0_24 = arith.constant 0 : index
    %c0_25 = arith.constant 0 : index
    %50 = vector.load %arg3[%c0_24, %c0_25] : memref<256x512xbf16, #tpu.memory_space<vmem>>, vector<256x512xbf16>
    %cst_26 = arith.constant dense<0.000000e+00> : vector<8x512xf32>
    %51 = tpu.matmul %49, %50, %cst_26 {dimension_numbers = #tpu.dot_dimension_numbers<[1], [0], [0], [1], [0, 0, 1, 1], [], []>} : vector<8x256xbf16>, vector<256x512xbf16>, vector<8x512xf32> -> vector<8x512xf32>
    %52 = arith.addf %51, %5 : vector<8x512xf32>
    %53 = vector.extract_strided_slice %52 {offsets = [0, 0], sizes = [8, 128], strides = [1, 1]} : vector<8x512xf32> to vector<8x128xf32>
    %cst_27 = arith.constant 5.000000e-01 : f32
    %54 = vector.broadcast %cst_27 : f32 to vector<8x128xf32>
    %55 = arith.mulf %54, %53 : vector<8x128xf32>
    %56 = math.tanh %55 : vector<8x128xf32>
    %cst_28 = arith.constant 5.000000e-01 : f32
    %57 = vector.broadcast %cst_28 : f32 to vector<8x128xf32>
    %58 = arith.mulf %57, %56 : vector<8x128xf32>
    %cst_29 = arith.constant 5.000000e-01 : f32
    %59 = vector.broadcast %cst_29 : f32 to vector<8x128xf32>
    %60 = arith.addf %58, %59 : vector<8x128xf32>
    %61 = vector.extract_strided_slice %52 {offsets = [0, 128], sizes = [8, 128], strides = [1, 1]} : vector<8x512xf32> to vector<8x128xf32>
    %cst_30 = arith.constant 5.000000e-01 : f32
    %62 = vector.broadcast %cst_30 : f32 to vector<8x128xf32>
    %63 = arith.mulf %62, %61 : vector<8x128xf32>
    %64 = math.tanh %63 : vector<8x128xf32>
    %cst_31 = arith.constant 5.000000e-01 : f32
    %65 = vector.broadcast %cst_31 : f32 to vector<8x128xf32>
    %66 = arith.mulf %65, %64 : vector<8x128xf32>
    %cst_32 = arith.constant 5.000000e-01 : f32
    %67 = vector.broadcast %cst_32 : f32 to vector<8x128xf32>
    %68 = arith.addf %66, %67 : vector<8x128xf32>
    %69 = vector.extract_strided_slice %52 {offsets = [0, 256], sizes = [8, 128], strides = [1, 1]} : vector<8x512xf32> to vector<8x128xf32>
    %70 = math.tanh %69 : vector<8x128xf32>
    %71 = vector.extract_strided_slice %52 {offsets = [0, 384], sizes = [8, 128], strides = [1, 1]} : vector<8x512xf32> to vector<8x128xf32>
    %cst_33 = arith.constant 5.000000e-01 : f32
    %72 = vector.broadcast %cst_33 : f32 to vector<8x128xf32>
    %73 = arith.mulf %72, %71 : vector<8x128xf32>
    %74 = math.tanh %73 : vector<8x128xf32>
    %cst_34 = arith.constant 5.000000e-01 : f32
    %75 = vector.broadcast %cst_34 : f32 to vector<8x128xf32>
    %76 = arith.mulf %75, %74 : vector<8x128xf32>
    %cst_35 = arith.constant 5.000000e-01 : f32
    %77 = vector.broadcast %cst_35 : f32 to vector<8x128xf32>
    %78 = arith.addf %76, %77 : vector<8x128xf32>
    %79 = arith.mulf %68, %9 : vector<8x128xf32>
    %80 = arith.mulf %60, %70 : vector<8x128xf32>
    %81 = arith.addf %79, %80 : vector<8x128xf32>
    %82 = math.tanh %81 : vector<8x128xf32>
    %83 = arith.mulf %78, %82 : vector<8x128xf32>
    %c1_i32 = arith.constant 1 : i32
    %84 = arith.index_cast %c1_i32 : i32 to index
    %c0_36 = arith.constant 0 : index
    %c0_37 = arith.constant 0 : index
    %85 = vector.load %arg1[%84, %c0_36, %c0_37] : memref<8x8x512xf32, #tpu.memory_space<vmem>>, vector<1x8x512xf32>
    %86 = vector.shape_cast %85 : vector<1x8x512xf32> to vector<8x512xf32>
    %87 = arith.truncf %47 : vector<8x128xf32> to vector<8x128xbf16>
    %c0_38 = arith.constant 0 : index
    %c0_39 = arith.constant 0 : index
    %88 = vector.load %arg2[%c0_38, %c0_39] : memref<128x512xbf16, #tpu.memory_space<vmem>>, vector<128x512xbf16>
    %cst_40 = arith.constant dense<0.000000e+00> : vector<8x512xf32>
    %89 = tpu.matmul %87, %88, %cst_40 {dimension_numbers = #tpu.dot_dimension_numbers<[1], [0], [0], [1], [0, 0, 1, 1], [], []>} : vector<8x128xbf16>, vector<128x512xbf16>, vector<8x512xf32> -> vector<8x512xf32>
    %90 = arith.addf %86, %89 : vector<8x512xf32>
    %91 = vector.extract_strided_slice %90 {offsets = [0, 0], sizes = [8, 128], strides = [1, 1]} : vector<8x512xf32> to vector<8x128xf32>
    %cst_41 = arith.constant 5.000000e-01 : f32
    %92 = vector.broadcast %cst_41 : f32 to vector<8x128xf32>
    %93 = arith.mulf %92, %91 : vector<8x128xf32>
    %94 = math.tanh %93 : vector<8x128xf32>
    %cst_42 = arith.constant 5.000000e-01 : f32
    %95 = vector.broadcast %cst_42 : f32 to vector<8x128xf32>
    %96 = arith.mulf %95, %94 : vector<8x128xf32>
    %cst_43 = arith.constant 5.000000e-01 : f32
    %97 = vector.broadcast %cst_43 : f32 to vector<8x128xf32>
    %98 = arith.addf %96, %97 : vector<8x128xf32>
    %99 = vector.extract_strided_slice %90 {offsets = [0, 128], sizes = [8, 128], strides = [1, 1]} : vector<8x512xf32> to vector<8x128xf32>
    %cst_44 = arith.constant 5.000000e-01 : f32
    %100 = vector.broadcast %cst_44 : f32 to vector<8x128xf32>
    %101 = arith.mulf %100, %99 : vector<8x128xf32>
    %102 = math.tanh %101 : vector<8x128xf32>
    %cst_45 = arith.constant 5.000000e-01 : f32
    %103 = vector.broadcast %cst_45 : f32 to vector<8x128xf32>
    %104 = arith.mulf %103, %102 : vector<8x128xf32>
    %cst_46 = arith.constant 5.000000e-01 : f32
    %105 = vector.broadcast %cst_46 : f32 to vector<8x128xf32>
    %106 = arith.addf %104, %105 : vector<8x128xf32>
    %107 = vector.extract_strided_slice %90 {offsets = [0, 256], sizes = [8, 128], strides = [1, 1]} : vector<8x512xf32> to vector<8x128xf32>
    %108 = math.tanh %107 : vector<8x128xf32>
    %109 = vector.extract_strided_slice %90 {offsets = [0, 384], sizes = [8, 128], strides = [1, 1]} : vector<8x512xf32> to vector<8x128xf32>
    %cst_47 = arith.constant 5.000000e-01 : f32
    %110 = vector.broadcast %cst_47 : f32 to vector<8x128xf32>
    %111 = arith.mulf %110, %109 : vector<8x128xf32>
    %112 = math.tanh %111 : vector<8x128xf32>
    %cst_48 = arith.constant 5.000000e-01 : f32
    %113 = vector.broadcast %cst_48 : f32 to vector<8x128xf32>
    %114 = arith.mulf %113, %112 : vector<8x128xf32>
    %cst_49 = arith.constant 5.000000e-01 : f32
    %115 = vector.broadcast %cst_49 : f32 to vector<8x128xf32>
    %116 = arith.addf %114, %115 : vector<8x128xf32>
    %117 = arith.mulf %106, %45 : vector<8x128xf32>
    %118 = arith.mulf %98, %108 : vector<8x128xf32>
    %119 = arith.addf %117, %118 : vector<8x128xf32>
    %120 = math.tanh %119 : vector<8x128xf32>
    %121 = arith.mulf %116, %120 : vector<8x128xf32>
    %122 = tpu.concatenate %121, %83 in 1 : vector<8x128xf32>, vector<8x128xf32> -> vector<8x256xf32>
    %123 = arith.truncf %122 : vector<8x256xf32> to vector<8x256xbf16>
    %c0_50 = arith.constant 0 : index
    %c0_51 = arith.constant 0 : index
    %124 = vector.load %arg3[%c0_50, %c0_51] : memref<256x512xbf16, #tpu.memory_space<vmem>>, vector<256x512xbf16>
    %cst_52 = arith.constant dense<0.000000e+00> : vector<8x512xf32>
    %125 = tpu.matmul %123, %124, %cst_52 {dimension_numbers = #tpu.dot_dimension_numbers<[1], [0], [0], [1], [0, 0, 1, 1], [], []>} : vector<8x256xbf16>, vector<256x512xbf16>, vector<8x512xf32> -> vector<8x512xf32>
    %126 = arith.addf %125, %5 : vector<8x512xf32>
    %127 = vector.extract_strided_slice %126 {offsets = [0, 0], sizes = [8, 128], strides = [1, 1]} : vector<8x512xf32> to vector<8x128xf32>
    %cst_53 = arith.constant 5.000000e-01 : f32
    %128 = vector.broadcast %cst_53 : f32 to vector<8x128xf32>
    %129 = arith.mulf %128, %127 : vector<8x128xf32>
    %130 = math.tanh %129 : vector<8x128xf32>
    %cst_54 = arith.constant 5.000000e-01 : f32
    %131 = vector.broadcast %cst_54 : f32 to vector<8x128xf32>
    %132 = arith.mulf %131, %130 : vector<8x128xf32>
    %cst_55 = arith.constant 5.000000e-01 : f32
    %133 = vector.broadcast %cst_55 : f32 to vector<8x128xf32>
    %134 = arith.addf %132, %133 : vector<8x128xf32>
    %135 = vector.extract_strided_slice %126 {offsets = [0, 128], sizes = [8, 128], strides = [1, 1]} : vector<8x512xf32> to vector<8x128xf32>
    %cst_56 = arith.constant 5.000000e-01 : f32
    %136 = vector.broadcast %cst_56 : f32 to vector<8x128xf32>
    %137 = arith.mulf %136, %135 : vector<8x128xf32>
    %138 = math.tanh %137 : vector<8x128xf32>
    %cst_57 = arith.constant 5.000000e-01 : f32
    %139 = vector.broadcast %cst_57 : f32 to vector<8x128xf32>
    %140 = arith.mulf %139, %138 : vector<8x128xf32>
    %cst_58 = arith.constant 5.000000e-01 : f32
    %141 = vector.broadcast %cst_58 : f32 to vector<8x128xf32>
    %142 = arith.addf %140, %141 : vector<8x128xf32>
    %143 = vector.extract_strided_slice %126 {offsets = [0, 256], sizes = [8, 128], strides = [1, 1]} : vector<8x512xf32> to vector<8x128xf32>
    %144 = math.tanh %143 : vector<8x128xf32>
    %145 = vector.extract_strided_slice %126 {offsets = [0, 384], sizes = [8, 128], strides = [1, 1]} : vector<8x512xf32> to vector<8x128xf32>
    %cst_59 = arith.constant 5.000000e-01 : f32
    %146 = vector.broadcast %cst_59 : f32 to vector<8x128xf32>
    %147 = arith.mulf %146, %145 : vector<8x128xf32>
    %148 = math.tanh %147 : vector<8x128xf32>
    %cst_60 = arith.constant 5.000000e-01 : f32
    %149 = vector.broadcast %cst_60 : f32 to vector<8x128xf32>
    %150 = arith.mulf %149, %148 : vector<8x128xf32>
    %cst_61 = arith.constant 5.000000e-01 : f32
    %151 = vector.broadcast %cst_61 : f32 to vector<8x128xf32>
    %152 = arith.addf %150, %151 : vector<8x128xf32>
    %153 = arith.mulf %142, %81 : vector<8x128xf32>
    %154 = arith.mulf %134, %144 : vector<8x128xf32>
    %155 = arith.addf %153, %154 : vector<8x128xf32>
    %156 = math.tanh %155 : vector<8x128xf32>
    %157 = arith.mulf %152, %156 : vector<8x128xf32>
    %c2_i32 = arith.constant 2 : i32
    %158 = arith.index_cast %c2_i32 : i32 to index
    %c0_62 = arith.constant 0 : index
    %c0_63 = arith.constant 0 : index
    %159 = vector.load %arg1[%158, %c0_62, %c0_63] : memref<8x8x512xf32, #tpu.memory_space<vmem>>, vector<1x8x512xf32>
    %160 = vector.shape_cast %159 : vector<1x8x512xf32> to vector<8x512xf32>
    %161 = arith.truncf %121 : vector<8x128xf32> to vector<8x128xbf16>
    %c0_64 = arith.constant 0 : index
    %c0_65 = arith.constant 0 : index
    %162 = vector.load %arg2[%c0_64, %c0_65] : memref<128x512xbf16, #tpu.memory_space<vmem>>, vector<128x512xbf16>
    %cst_66 = arith.constant dense<0.000000e+00> : vector<8x512xf32>
    %163 = tpu.matmul %161, %162, %cst_66 {dimension_numbers = #tpu.dot_dimension_numbers<[1], [0], [0], [1], [0, 0, 1, 1], [], []>} : vector<8x128xbf16>, vector<128x512xbf16>, vector<8x512xf32> -> vector<8x512xf32>
    %164 = arith.addf %160, %163 : vector<8x512xf32>
    %165 = vector.extract_strided_slice %164 {offsets = [0, 0], sizes = [8, 128], strides = [1, 1]} : vector<8x512xf32> to vector<8x128xf32>
    %cst_67 = arith.constant 5.000000e-01 : f32
    %166 = vector.broadcast %cst_67 : f32 to vector<8x128xf32>
    %167 = arith.mulf %166, %165 : vector<8x128xf32>
    %168 = math.tanh %167 : vector<8x128xf32>
    %cst_68 = arith.constant 5.000000e-01 : f32
    %169 = vector.broadcast %cst_68 : f32 to vector<8x128xf32>
    %170 = arith.mulf %169, %168 : vector<8x128xf32>
    %cst_69 = arith.constant 5.000000e-01 : f32
    %171 = vector.broadcast %cst_69 : f32 to vector<8x128xf32>
    %172 = arith.addf %170, %171 : vector<8x128xf32>
    %173 = vector.extract_strided_slice %164 {offsets = [0, 128], sizes = [8, 128], strides = [1, 1]} : vector<8x512xf32> to vector<8x128xf32>
    %cst_70 = arith.constant 5.000000e-01 : f32
    %174 = vector.broadcast %cst_70 : f32 to vector<8x128xf32>
    %175 = arith.mulf %174, %173 : vector<8x128xf32>
    %176 = math.tanh %175 : vector<8x128xf32>
    %cst_71 = arith.constant 5.000000e-01 : f32
    %177 = vector.broadcast %cst_71 : f32 to vector<8x128xf32>
    %178 = arith.mulf %177, %176 : vector<8x128xf32>
    %cst_72 = arith.constant 5.000000e-01 : f32
    %179 = vector.broadcast %cst_72 : f32 to vector<8x128xf32>
    %180 = arith.addf %178, %179 : vector<8x128xf32>
    %181 = vector.extract_strided_slice %164 {offsets = [0, 256], sizes = [8, 128], strides = [1, 1]} : vector<8x512xf32> to vector<8x128xf32>
    %182 = math.tanh %181 : vector<8x128xf32>
    %183 = vector.extract_strided_slice %164 {offsets = [0, 384], sizes = [8, 128], strides = [1, 1]} : vector<8x512xf32> to vector<8x128xf32>
    %cst_73 = arith.constant 5.000000e-01 : f32
    %184 = vector.broadcast %cst_73 : f32 to vector<8x128xf32>
    %185 = arith.mulf %184, %183 : vector<8x128xf32>
    %186 = math.tanh %185 : vector<8x128xf32>
    %cst_74 = arith.constant 5.000000e-01 : f32
    %187 = vector.broadcast %cst_74 : f32 to vector<8x128xf32>
    %188 = arith.mulf %187, %186 : vector<8x128xf32>
    %cst_75 = arith.constant 5.000000e-01 : f32
    %189 = vector.broadcast %cst_75 : f32 to vector<8x128xf32>
    %190 = arith.addf %188, %189 : vector<8x128xf32>
    %191 = arith.mulf %180, %119 : vector<8x128xf32>
    %192 = arith.mulf %172, %182 : vector<8x128xf32>
    %193 = arith.addf %191, %192 : vector<8x128xf32>
    %194 = math.tanh %193 : vector<8x128xf32>
    %195 = arith.mulf %190, %194 : vector<8x128xf32>
    %196 = tpu.concatenate %195, %157 in 1 : vector<8x128xf32>, vector<8x128xf32> -> vector<8x256xf32>
    %197 = arith.truncf %196 : vector<8x256xf32> to vector<8x256xbf16>
    %c0_76 = arith.constant 0 : index
    %c0_77 = arith.constant 0 : index
    %198 = vector.load %arg3[%c0_76, %c0_77] : memref<256x512xbf16, #tpu.memory_space<vmem>>, vector<256x512xbf16>
    %cst_78 = arith.constant dense<0.000000e+00> : vector<8x512xf32>
    %199 = tpu.matmul %197, %198, %cst_78 {dimension_numbers = #tpu.dot_dimension_numbers<[1], [0], [0], [1], [0, 0, 1, 1], [], []>} : vector<8x256xbf16>, vector<256x512xbf16>, vector<8x512xf32> -> vector<8x512xf32>
    %200 = arith.addf %199, %5 : vector<8x512xf32>
    %201 = vector.extract_strided_slice %200 {offsets = [0, 0], sizes = [8, 128], strides = [1, 1]} : vector<8x512xf32> to vector<8x128xf32>
    %cst_79 = arith.constant 5.000000e-01 : f32
    %202 = vector.broadcast %cst_79 : f32 to vector<8x128xf32>
    %203 = arith.mulf %202, %201 : vector<8x128xf32>
    %204 = math.tanh %203 : vector<8x128xf32>
    %cst_80 = arith.constant 5.000000e-01 : f32
    %205 = vector.broadcast %cst_80 : f32 to vector<8x128xf32>
    %206 = arith.mulf %205, %204 : vector<8x128xf32>
    %cst_81 = arith.constant 5.000000e-01 : f32
    %207 = vector.broadcast %cst_81 : f32 to vector<8x128xf32>
    %208 = arith.addf %206, %207 : vector<8x128xf32>
    %209 = vector.extract_strided_slice %200 {offsets = [0, 128], sizes = [8, 128], strides = [1, 1]} : vector<8x512xf32> to vector<8x128xf32>
    %cst_82 = arith.constant 5.000000e-01 : f32
    %210 = vector.broadcast %cst_82 : f32 to vector<8x128xf32>
    %211 = arith.mulf %210, %209 : vector<8x128xf32>
    %212 = math.tanh %211 : vector<8x128xf32>
    %cst_83 = arith.constant 5.000000e-01 : f32
    %213 = vector.broadcast %cst_83 : f32 to vector<8x128xf32>
    %214 = arith.mulf %213, %212 : vector<8x128xf32>
    %cst_84 = arith.constant 5.000000e-01 : f32
    %215 = vector.broadcast %cst_84 : f32 to vector<8x128xf32>
    %216 = arith.addf %214, %215 : vector<8x128xf32>
    %217 = vector.extract_strided_slice %200 {offsets = [0, 256], sizes = [8, 128], strides = [1, 1]} : vector<8x512xf32> to vector<8x128xf32>
    %218 = math.tanh %217 : vector<8x128xf32>
    %219 = vector.extract_strided_slice %200 {offsets = [0, 384], sizes = [8, 128], strides = [1, 1]} : vector<8x512xf32> to vector<8x128xf32>
    %cst_85 = arith.constant 5.000000e-01 : f32
    %220 = vector.broadcast %cst_85 : f32 to vector<8x128xf32>
    %221 = arith.mulf %220, %219 : vector<8x128xf32>
    %222 = math.tanh %221 : vector<8x128xf32>
    %cst_86 = arith.constant 5.000000e-01 : f32
    %223 = vector.broadcast %cst_86 : f32 to vector<8x128xf32>
    %224 = arith.mulf %223, %222 : vector<8x128xf32>
    %cst_87 = arith.constant 5.000000e-01 : f32
    %225 = vector.broadcast %cst_87 : f32 to vector<8x128xf32>
    %226 = arith.addf %224, %225 : vector<8x128xf32>
    %227 = arith.mulf %216, %155 : vector<8x128xf32>
    %228 = arith.mulf %208, %218 : vector<8x128xf32>
    %229 = arith.addf %227, %228 : vector<8x128xf32>
    %230 = math.tanh %229 : vector<8x128xf32>
    %231 = arith.mulf %226, %230 : vector<8x128xf32>
    %c3_i32 = arith.constant 3 : i32
    %232 = arith.index_cast %c3_i32 : i32 to index
    %c0_88 = arith.constant 0 : index
    %c0_89 = arith.constant 0 : index
    %233 = vector.load %arg1[%232, %c0_88, %c0_89] : memref<8x8x512xf32, #tpu.memory_space<vmem>>, vector<1x8x512xf32>
    %234 = vector.shape_cast %233 : vector<1x8x512xf32> to vector<8x512xf32>
    %235 = arith.truncf %195 : vector<8x128xf32> to vector<8x128xbf16>
    %c0_90 = arith.constant 0 : index
    %c0_91 = arith.constant 0 : index
    %236 = vector.load %arg2[%c0_90, %c0_91] : memref<128x512xbf16, #tpu.memory_space<vmem>>, vector<128x512xbf16>
    %cst_92 = arith.constant dense<0.000000e+00> : vector<8x512xf32>
    %237 = tpu.matmul %235, %236, %cst_92 {dimension_numbers = #tpu.dot_dimension_numbers<[1], [0], [0], [1], [0, 0, 1, 1], [], []>} : vector<8x128xbf16>, vector<128x512xbf16>, vector<8x512xf32> -> vector<8x512xf32>
    %238 = arith.addf %234, %237 : vector<8x512xf32>
    %239 = vector.extract_strided_slice %238 {offsets = [0, 0], sizes = [8, 128], strides = [1, 1]} : vector<8x512xf32> to vector<8x128xf32>
    %cst_93 = arith.constant 5.000000e-01 : f32
    %240 = vector.broadcast %cst_93 : f32 to vector<8x128xf32>
    %241 = arith.mulf %240, %239 : vector<8x128xf32>
    %242 = math.tanh %241 : vector<8x128xf32>
    %cst_94 = arith.constant 5.000000e-01 : f32
    %243 = vector.broadcast %cst_94 : f32 to vector<8x128xf32>
    %244 = arith.mulf %243, %242 : vector<8x128xf32>
    %cst_95 = arith.constant 5.000000e-01 : f32
    %245 = vector.broadcast %cst_95 : f32 to vector<8x128xf32>
    %246 = arith.addf %244, %245 : vector<8x128xf32>
    %247 = vector.extract_strided_slice %238 {offsets = [0, 128], sizes = [8, 128], strides = [1, 1]} : vector<8x512xf32> to vector<8x128xf32>
    %cst_96 = arith.constant 5.000000e-01 : f32
    %248 = vector.broadcast %cst_96 : f32 to vector<8x128xf32>
    %249 = arith.mulf %248, %247 : vector<8x128xf32>
    %250 = math.tanh %249 : vector<8x128xf32>
    %cst_97 = arith.constant 5.000000e-01 : f32
    %251 = vector.broadcast %cst_97 : f32 to vector<8x128xf32>
    %252 = arith.mulf %251, %250 : vector<8x128xf32>
    %cst_98 = arith.constant 5.000000e-01 : f32
    %253 = vector.broadcast %cst_98 : f32 to vector<8x128xf32>
    %254 = arith.addf %252, %253 : vector<8x128xf32>
    %255 = vector.extract_strided_slice %238 {offsets = [0, 256], sizes = [8, 128], strides = [1, 1]} : vector<8x512xf32> to vector<8x128xf32>
    %256 = math.tanh %255 : vector<8x128xf32>
    %257 = vector.extract_strided_slice %238 {offsets = [0, 384], sizes = [8, 128], strides = [1, 1]} : vector<8x512xf32> to vector<8x128xf32>
    %cst_99 = arith.constant 5.000000e-01 : f32
    %258 = vector.broadcast %cst_99 : f32 to vector<8x128xf32>
    %259 = arith.mulf %258, %257 : vector<8x128xf32>
    %260 = math.tanh %259 : vector<8x128xf32>
    %cst_100 = arith.constant 5.000000e-01 : f32
    %261 = vector.broadcast %cst_100 : f32 to vector<8x128xf32>
    %262 = arith.mulf %261, %260 : vector<8x128xf32>
    %cst_101 = arith.constant 5.000000e-01 : f32
    %263 = vector.broadcast %cst_101 : f32 to vector<8x128xf32>
    %264 = arith.addf %262, %263 : vector<8x128xf32>
    %265 = arith.mulf %254, %193 : vector<8x128xf32>
    %266 = arith.mulf %246, %256 : vector<8x128xf32>
    %267 = arith.addf %265, %266 : vector<8x128xf32>
    %268 = math.tanh %267 : vector<8x128xf32>
    %269 = arith.mulf %264, %268 : vector<8x128xf32>
    %270 = tpu.concatenate %269, %231 in 1 : vector<8x128xf32>, vector<8x128xf32> -> vector<8x256xf32>
    %271 = arith.truncf %270 : vector<8x256xf32> to vector<8x256xbf16>
    %c0_102 = arith.constant 0 : index
    %c0_103 = arith.constant 0 : index
    %272 = vector.load %arg3[%c0_102, %c0_103] : memref<256x512xbf16, #tpu.memory_space<vmem>>, vector<256x512xbf16>
    %cst_104 = arith.constant dense<0.000000e+00> : vector<8x512xf32>
    %273 = tpu.matmul %271, %272, %cst_104 {dimension_numbers = #tpu.dot_dimension_numbers<[1], [0], [0], [1], [0, 0, 1, 1], [], []>} : vector<8x256xbf16>, vector<256x512xbf16>, vector<8x512xf32> -> vector<8x512xf32>
    %274 = arith.addf %273, %5 : vector<8x512xf32>
    %275 = vector.extract_strided_slice %274 {offsets = [0, 0], sizes = [8, 128], strides = [1, 1]} : vector<8x512xf32> to vector<8x128xf32>
    %cst_105 = arith.constant 5.000000e-01 : f32
    %276 = vector.broadcast %cst_105 : f32 to vector<8x128xf32>
    %277 = arith.mulf %276, %275 : vector<8x128xf32>
    %278 = math.tanh %277 : vector<8x128xf32>
    %cst_106 = arith.constant 5.000000e-01 : f32
    %279 = vector.broadcast %cst_106 : f32 to vector<8x128xf32>
    %280 = arith.mulf %279, %278 : vector<8x128xf32>
    %cst_107 = arith.constant 5.000000e-01 : f32
    %281 = vector.broadcast %cst_107 : f32 to vector<8x128xf32>
    %282 = arith.addf %280, %281 : vector<8x128xf32>
    %283 = vector.extract_strided_slice %274 {offsets = [0, 128], sizes = [8, 128], strides = [1, 1]} : vector<8x512xf32> to vector<8x128xf32>
    %cst_108 = arith.constant 5.000000e-01 : f32
    %284 = vector.broadcast %cst_108 : f32 to vector<8x128xf32>
    %285 = arith.mulf %284, %283 : vector<8x128xf32>
    %286 = math.tanh %285 : vector<8x128xf32>
    %cst_109 = arith.constant 5.000000e-01 : f32
    %287 = vector.broadcast %cst_109 : f32 to vector<8x128xf32>
    %288 = arith.mulf %287, %286 : vector<8x128xf32>
    %cst_110 = arith.constant 5.000000e-01 : f32
    %289 = vector.broadcast %cst_110 : f32 to vector<8x128xf32>
    %290 = arith.addf %288, %289 : vector<8x128xf32>
    %291 = vector.extract_strided_slice %274 {offsets = [0, 256], sizes = [8, 128], strides = [1, 1]} : vector<8x512xf32> to vector<8x128xf32>
    %292 = math.tanh %291 : vector<8x128xf32>
    %293 = vector.extract_strided_slice %274 {offsets = [0, 384], sizes = [8, 128], strides = [1, 1]} : vector<8x512xf32> to vector<8x128xf32>
    %cst_111 = arith.constant 5.000000e-01 : f32
    %294 = vector.broadcast %cst_111 : f32 to vector<8x128xf32>
    %295 = arith.mulf %294, %293 : vector<8x128xf32>
    %296 = math.tanh %295 : vector<8x128xf32>
    %cst_112 = arith.constant 5.000000e-01 : f32
    %297 = vector.broadcast %cst_112 : f32 to vector<8x128xf32>
    %298 = arith.mulf %297, %296 : vector<8x128xf32>
    %cst_113 = arith.constant 5.000000e-01 : f32
    %299 = vector.broadcast %cst_113 : f32 to vector<8x128xf32>
    %300 = arith.addf %298, %299 : vector<8x128xf32>
    %301 = arith.mulf %290, %229 : vector<8x128xf32>
    %302 = arith.mulf %282, %292 : vector<8x128xf32>
    %303 = arith.addf %301, %302 : vector<8x128xf32>
    %304 = math.tanh %303 : vector<8x128xf32>
    %305 = arith.mulf %300, %304 : vector<8x128xf32>
    %c4_i32 = arith.constant 4 : i32
    %306 = arith.index_cast %c4_i32 : i32 to index
    %c0_114 = arith.constant 0 : index
    %c0_115 = arith.constant 0 : index
    %307 = vector.load %arg1[%306, %c0_114, %c0_115] : memref<8x8x512xf32, #tpu.memory_space<vmem>>, vector<1x8x512xf32>
    %308 = vector.shape_cast %307 : vector<1x8x512xf32> to vector<8x512xf32>
    %309 = arith.truncf %269 : vector<8x128xf32> to vector<8x128xbf16>
    %c0_116 = arith.constant 0 : index
    %c0_117 = arith.constant 0 : index
    %310 = vector.load %arg2[%c0_116, %c0_117] : memref<128x512xbf16, #tpu.memory_space<vmem>>, vector<128x512xbf16>
    %cst_118 = arith.constant dense<0.000000e+00> : vector<8x512xf32>
    %311 = tpu.matmul %309, %310, %cst_118 {dimension_numbers = #tpu.dot_dimension_numbers<[1], [0], [0], [1], [0, 0, 1, 1], [], []>} : vector<8x128xbf16>, vector<128x512xbf16>, vector<8x512xf32> -> vector<8x512xf32>
    %312 = arith.addf %308, %311 : vector<8x512xf32>
    %313 = vector.extract_strided_slice %312 {offsets = [0, 0], sizes = [8, 128], strides = [1, 1]} : vector<8x512xf32> to vector<8x128xf32>
    %cst_119 = arith.constant 5.000000e-01 : f32
    %314 = vector.broadcast %cst_119 : f32 to vector<8x128xf32>
    %315 = arith.mulf %314, %313 : vector<8x128xf32>
    %316 = math.tanh %315 : vector<8x128xf32>
    %cst_120 = arith.constant 5.000000e-01 : f32
    %317 = vector.broadcast %cst_120 : f32 to vector<8x128xf32>
    %318 = arith.mulf %317, %316 : vector<8x128xf32>
    %cst_121 = arith.constant 5.000000e-01 : f32
    %319 = vector.broadcast %cst_121 : f32 to vector<8x128xf32>
    %320 = arith.addf %318, %319 : vector<8x128xf32>
    %321 = vector.extract_strided_slice %312 {offsets = [0, 128], sizes = [8, 128], strides = [1, 1]} : vector<8x512xf32> to vector<8x128xf32>
    %cst_122 = arith.constant 5.000000e-01 : f32
    %322 = vector.broadcast %cst_122 : f32 to vector<8x128xf32>
    %323 = arith.mulf %322, %321 : vector<8x128xf32>
    %324 = math.tanh %323 : vector<8x128xf32>
    %cst_123 = arith.constant 5.000000e-01 : f32
    %325 = vector.broadcast %cst_123 : f32 to vector<8x128xf32>
    %326 = arith.mulf %325, %324 : vector<8x128xf32>
    %cst_124 = arith.constant 5.000000e-01 : f32
    %327 = vector.broadcast %cst_124 : f32 to vector<8x128xf32>
    %328 = arith.addf %326, %327 : vector<8x128xf32>
    %329 = vector.extract_strided_slice %312 {offsets = [0, 256], sizes = [8, 128], strides = [1, 1]} : vector<8x512xf32> to vector<8x128xf32>
    %330 = math.tanh %329 : vector<8x128xf32>
    %331 = vector.extract_strided_slice %312 {offsets = [0, 384], sizes = [8, 128], strides = [1, 1]} : vector<8x512xf32> to vector<8x128xf32>
    %cst_125 = arith.constant 5.000000e-01 : f32
    %332 = vector.broadcast %cst_125 : f32 to vector<8x128xf32>
    %333 = arith.mulf %332, %331 : vector<8x128xf32>
    %334 = math.tanh %333 : vector<8x128xf32>
    %cst_126 = arith.constant 5.000000e-01 : f32
    %335 = vector.broadcast %cst_126 : f32 to vector<8x128xf32>
    %336 = arith.mulf %335, %334 : vector<8x128xf32>
    %cst_127 = arith.constant 5.000000e-01 : f32
    %337 = vector.broadcast %cst_127 : f32 to vector<8x128xf32>
    %338 = arith.addf %336, %337 : vector<8x128xf32>
    %339 = arith.mulf %328, %267 : vector<8x128xf32>
    %340 = arith.mulf %320, %330 : vector<8x128xf32>
    %341 = arith.addf %339, %340 : vector<8x128xf32>
    %342 = math.tanh %341 : vector<8x128xf32>
    %343 = arith.mulf %338, %342 : vector<8x128xf32>
    %344 = tpu.concatenate %343, %305 in 1 : vector<8x128xf32>, vector<8x128xf32> -> vector<8x256xf32>
    %345 = arith.truncf %344 : vector<8x256xf32> to vector<8x256xbf16>
    %c0_128 = arith.constant 0 : index
    %c0_129 = arith.constant 0 : index
    %346 = vector.load %arg3[%c0_128, %c0_129] : memref<256x512xbf16, #tpu.memory_space<vmem>>, vector<256x512xbf16>
    %cst_130 = arith.constant dense<0.000000e+00> : vector<8x512xf32>
    %347 = tpu.matmul %345, %346, %cst_130 {dimension_numbers = #tpu.dot_dimension_numbers<[1], [0], [0], [1], [0, 0, 1, 1], [], []>} : vector<8x256xbf16>, vector<256x512xbf16>, vector<8x512xf32> -> vector<8x512xf32>
    %348 = arith.addf %347, %5 : vector<8x512xf32>
    %349 = vector.extract_strided_slice %348 {offsets = [0, 0], sizes = [8, 128], strides = [1, 1]} : vector<8x512xf32> to vector<8x128xf32>
    %cst_131 = arith.constant 5.000000e-01 : f32
    %350 = vector.broadcast %cst_131 : f32 to vector<8x128xf32>
    %351 = arith.mulf %350, %349 : vector<8x128xf32>
    %352 = math.tanh %351 : vector<8x128xf32>
    %cst_132 = arith.constant 5.000000e-01 : f32
    %353 = vector.broadcast %cst_132 : f32 to vector<8x128xf32>
    %354 = arith.mulf %353, %352 : vector<8x128xf32>
    %cst_133 = arith.constant 5.000000e-01 : f32
    %355 = vector.broadcast %cst_133 : f32 to vector<8x128xf32>
    %356 = arith.addf %354, %355 : vector<8x128xf32>
    %357 = vector.extract_strided_slice %348 {offsets = [0, 128], sizes = [8, 128], strides = [1, 1]} : vector<8x512xf32> to vector<8x128xf32>
    %cst_134 = arith.constant 5.000000e-01 : f32
    %358 = vector.broadcast %cst_134 : f32 to vector<8x128xf32>
    %359 = arith.mulf %358, %357 : vector<8x128xf32>
    %360 = math.tanh %359 : vector<8x128xf32>
    %cst_135 = arith.constant 5.000000e-01 : f32
    %361 = vector.broadcast %cst_135 : f32 to vector<8x128xf32>
    %362 = arith.mulf %361, %360 : vector<8x128xf32>
    %cst_136 = arith.constant 5.000000e-01 : f32
    %363 = vector.broadcast %cst_136 : f32 to vector<8x128xf32>
    %364 = arith.addf %362, %363 : vector<8x128xf32>
    %365 = vector.extract_strided_slice %348 {offsets = [0, 256], sizes = [8, 128], strides = [1, 1]} : vector<8x512xf32> to vector<8x128xf32>
    %366 = math.tanh %365 : vector<8x128xf32>
    %367 = vector.extract_strided_slice %348 {offsets = [0, 384], sizes = [8, 128], strides = [1, 1]} : vector<8x512xf32> to vector<8x128xf32>
    %cst_137 = arith.constant 5.000000e-01 : f32
    %368 = vector.broadcast %cst_137 : f32 to vector<8x128xf32>
    %369 = arith.mulf %368, %367 : vector<8x128xf32>
    %370 = math.tanh %369 : vector<8x128xf32>
    %cst_138 = arith.constant 5.000000e-01 : f32
    %371 = vector.broadcast %cst_138 : f32 to vector<8x128xf32>
    %372 = arith.mulf %371, %370 : vector<8x128xf32>
    %cst_139 = arith.constant 5.000000e-01 : f32
    %373 = vector.broadcast %cst_139 : f32 to vector<8x128xf32>
    %374 = arith.addf %372, %373 : vector<8x128xf32>
    %375 = arith.mulf %364, %303 : vector<8x128xf32>
    %376 = arith.mulf %356, %366 : vector<8x128xf32>
    %377 = arith.addf %375, %376 : vector<8x128xf32>
    %378 = math.tanh %377 : vector<8x128xf32>
    %379 = arith.mulf %374, %378 : vector<8x128xf32>
    %c5_i32 = arith.constant 5 : i32
    %380 = arith.index_cast %c5_i32 : i32 to index
    %c0_140 = arith.constant 0 : index
    %c0_141 = arith.constant 0 : index
    %381 = vector.load %arg1[%380, %c0_140, %c0_141] : memref<8x8x512xf32, #tpu.memory_space<vmem>>, vector<1x8x512xf32>
    %382 = vector.shape_cast %381 : vector<1x8x512xf32> to vector<8x512xf32>
    %383 = arith.truncf %343 : vector<8x128xf32> to vector<8x128xbf16>
    %c0_142 = arith.constant 0 : index
    %c0_143 = arith.constant 0 : index
    %384 = vector.load %arg2[%c0_142, %c0_143] : memref<128x512xbf16, #tpu.memory_space<vmem>>, vector<128x512xbf16>
    %cst_144 = arith.constant dense<0.000000e+00> : vector<8x512xf32>
    %385 = tpu.matmul %383, %384, %cst_144 {dimension_numbers = #tpu.dot_dimension_numbers<[1], [0], [0], [1], [0, 0, 1, 1], [], []>} : vector<8x128xbf16>, vector<128x512xbf16>, vector<8x512xf32> -> vector<8x512xf32>
    %386 = arith.addf %382, %385 : vector<8x512xf32>
    %387 = vector.extract_strided_slice %386 {offsets = [0, 0], sizes = [8, 128], strides = [1, 1]} : vector<8x512xf32> to vector<8x128xf32>
    %cst_145 = arith.constant 5.000000e-01 : f32
    %388 = vector.broadcast %cst_145 : f32 to vector<8x128xf32>
    %389 = arith.mulf %388, %387 : vector<8x128xf32>
    %390 = math.tanh %389 : vector<8x128xf32>
    %cst_146 = arith.constant 5.000000e-01 : f32
    %391 = vector.broadcast %cst_146 : f32 to vector<8x128xf32>
    %392 = arith.mulf %391, %390 : vector<8x128xf32>
    %cst_147 = arith.constant 5.000000e-01 : f32
    %393 = vector.broadcast %cst_147 : f32 to vector<8x128xf32>
    %394 = arith.addf %392, %393 : vector<8x128xf32>
    %395 = vector.extract_strided_slice %386 {offsets = [0, 128], sizes = [8, 128], strides = [1, 1]} : vector<8x512xf32> to vector<8x128xf32>
    %cst_148 = arith.constant 5.000000e-01 : f32
    %396 = vector.broadcast %cst_148 : f32 to vector<8x128xf32>
    %397 = arith.mulf %396, %395 : vector<8x128xf32>
    %398 = math.tanh %397 : vector<8x128xf32>
    %cst_149 = arith.constant 5.000000e-01 : f32
    %399 = vector.broadcast %cst_149 : f32 to vector<8x128xf32>
    %400 = arith.mulf %399, %398 : vector<8x128xf32>
    %cst_150 = arith.constant 5.000000e-01 : f32
    %401 = vector.broadcast %cst_150 : f32 to vector<8x128xf32>
    %402 = arith.addf %400, %401 : vector<8x128xf32>
    %403 = vector.extract_strided_slice %386 {offsets = [0, 256], sizes = [8, 128], strides = [1, 1]} : vector<8x512xf32> to vector<8x128xf32>
    %404 = math.tanh %403 : vector<8x128xf32>
    %405 = vector.extract_strided_slice %386 {offsets = [0, 384], sizes = [8, 128], strides = [1, 1]} : vector<8x512xf32> to vector<8x128xf32>
    %cst_151 = arith.constant 5.000000e-01 : f32
    %406 = vector.broadcast %cst_151 : f32 to vector<8x128xf32>
    %407 = arith.mulf %406, %405 : vector<8x128xf32>
    %408 = math.tanh %407 : vector<8x128xf32>
    %cst_152 = arith.constant 5.000000e-01 : f32
    %409 = vector.broadcast %cst_152 : f32 to vector<8x128xf32>
    %410 = arith.mulf %409, %408 : vector<8x128xf32>
    %cst_153 = arith.constant 5.000000e-01 : f32
    %411 = vector.broadcast %cst_153 : f32 to vector<8x128xf32>
    %412 = arith.addf %410, %411 : vector<8x128xf32>
    %413 = arith.mulf %402, %341 : vector<8x128xf32>
    %414 = arith.mulf %394, %404 : vector<8x128xf32>
    %415 = arith.addf %413, %414 : vector<8x128xf32>
    %416 = math.tanh %415 : vector<8x128xf32>
    %417 = arith.mulf %412, %416 : vector<8x128xf32>
    %418 = tpu.concatenate %417, %379 in 1 : vector<8x128xf32>, vector<8x128xf32> -> vector<8x256xf32>
    %419 = arith.truncf %418 : vector<8x256xf32> to vector<8x256xbf16>
    %c0_154 = arith.constant 0 : index
    %c0_155 = arith.constant 0 : index
    %420 = vector.load %arg3[%c0_154, %c0_155] : memref<256x512xbf16, #tpu.memory_space<vmem>>, vector<256x512xbf16>
    %cst_156 = arith.constant dense<0.000000e+00> : vector<8x512xf32>
    %421 = tpu.matmul %419, %420, %cst_156 {dimension_numbers = #tpu.dot_dimension_numbers<[1], [0], [0], [1], [0, 0, 1, 1], [], []>} : vector<8x256xbf16>, vector<256x512xbf16>, vector<8x512xf32> -> vector<8x512xf32>
    %422 = arith.addf %421, %5 : vector<8x512xf32>
    %423 = vector.extract_strided_slice %422 {offsets = [0, 0], sizes = [8, 128], strides = [1, 1]} : vector<8x512xf32> to vector<8x128xf32>
    %cst_157 = arith.constant 5.000000e-01 : f32
    %424 = vector.broadcast %cst_157 : f32 to vector<8x128xf32>
    %425 = arith.mulf %424, %423 : vector<8x128xf32>
    %426 = math.tanh %425 : vector<8x128xf32>
    %cst_158 = arith.constant 5.000000e-01 : f32
    %427 = vector.broadcast %cst_158 : f32 to vector<8x128xf32>
    %428 = arith.mulf %427, %426 : vector<8x128xf32>
    %cst_159 = arith.constant 5.000000e-01 : f32
    %429 = vector.broadcast %cst_159 : f32 to vector<8x128xf32>
    %430 = arith.addf %428, %429 : vector<8x128xf32>
    %431 = vector.extract_strided_slice %422 {offsets = [0, 128], sizes = [8, 128], strides = [1, 1]} : vector<8x512xf32> to vector<8x128xf32>
    %cst_160 = arith.constant 5.000000e-01 : f32
    %432 = vector.broadcast %cst_160 : f32 to vector<8x128xf32>
    %433 = arith.mulf %432, %431 : vector<8x128xf32>
    %434 = math.tanh %433 : vector<8x128xf32>
    %cst_161 = arith.constant 5.000000e-01 : f32
    %435 = vector.broadcast %cst_161 : f32 to vector<8x128xf32>
    %436 = arith.mulf %435, %434 : vector<8x128xf32>
    %cst_162 = arith.constant 5.000000e-01 : f32
    %437 = vector.broadcast %cst_162 : f32 to vector<8x128xf32>
    %438 = arith.addf %436, %437 : vector<8x128xf32>
    %439 = vector.extract_strided_slice %422 {offsets = [0, 256], sizes = [8, 128], strides = [1, 1]} : vector<8x512xf32> to vector<8x128xf32>
    %440 = math.tanh %439 : vector<8x128xf32>
    %441 = vector.extract_strided_slice %422 {offsets = [0, 384], sizes = [8, 128], strides = [1, 1]} : vector<8x512xf32> to vector<8x128xf32>
    %cst_163 = arith.constant 5.000000e-01 : f32
    %442 = vector.broadcast %cst_163 : f32 to vector<8x128xf32>
    %443 = arith.mulf %442, %441 : vector<8x128xf32>
    %444 = math.tanh %443 : vector<8x128xf32>
    %cst_164 = arith.constant 5.000000e-01 : f32
    %445 = vector.broadcast %cst_164 : f32 to vector<8x128xf32>
    %446 = arith.mulf %445, %444 : vector<8x128xf32>
    %cst_165 = arith.constant 5.000000e-01 : f32
    %447 = vector.broadcast %cst_165 : f32 to vector<8x128xf32>
    %448 = arith.addf %446, %447 : vector<8x128xf32>
    %449 = arith.mulf %438, %377 : vector<8x128xf32>
    %450 = arith.mulf %430, %440 : vector<8x128xf32>
    %451 = arith.addf %449, %450 : vector<8x128xf32>
    %452 = math.tanh %451 : vector<8x128xf32>
    %453 = arith.mulf %448, %452 : vector<8x128xf32>
    %c6_i32 = arith.constant 6 : i32
    %454 = arith.index_cast %c6_i32 : i32 to index
    %c0_166 = arith.constant 0 : index
    %c0_167 = arith.constant 0 : index
    %455 = vector.load %arg1[%454, %c0_166, %c0_167] : memref<8x8x512xf32, #tpu.memory_space<vmem>>, vector<1x8x512xf32>
    %456 = vector.shape_cast %455 : vector<1x8x512xf32> to vector<8x512xf32>
    %457 = arith.truncf %417 : vector<8x128xf32> to vector<8x128xbf16>
    %c0_168 = arith.constant 0 : index
    %c0_169 = arith.constant 0 : index
    %458 = vector.load %arg2[%c0_168, %c0_169] : memref<128x512xbf16, #tpu.memory_space<vmem>>, vector<128x512xbf16>
    %cst_170 = arith.constant dense<0.000000e+00> : vector<8x512xf32>
    %459 = tpu.matmul %457, %458, %cst_170 {dimension_numbers = #tpu.dot_dimension_numbers<[1], [0], [0], [1], [0, 0, 1, 1], [], []>} : vector<8x128xbf16>, vector<128x512xbf16>, vector<8x512xf32> -> vector<8x512xf32>
    %460 = arith.addf %456, %459 : vector<8x512xf32>
    %461 = vector.extract_strided_slice %460 {offsets = [0, 0], sizes = [8, 128], strides = [1, 1]} : vector<8x512xf32> to vector<8x128xf32>
    %cst_171 = arith.constant 5.000000e-01 : f32
    %462 = vector.broadcast %cst_171 : f32 to vector<8x128xf32>
    %463 = arith.mulf %462, %461 : vector<8x128xf32>
    %464 = math.tanh %463 : vector<8x128xf32>
    %cst_172 = arith.constant 5.000000e-01 : f32
    %465 = vector.broadcast %cst_172 : f32 to vector<8x128xf32>
    %466 = arith.mulf %465, %464 : vector<8x128xf32>
    %cst_173 = arith.constant 5.000000e-01 : f32
    %467 = vector.broadcast %cst_173 : f32 to vector<8x128xf32>
    %468 = arith.addf %466, %467 : vector<8x128xf32>
    %469 = vector.extract_strided_slice %460 {offsets = [0, 128], sizes = [8, 128], strides = [1, 1]} : vector<8x512xf32> to vector<8x128xf32>
    %cst_174 = arith.constant 5.000000e-01 : f32
    %470 = vector.broadcast %cst_174 : f32 to vector<8x128xf32>
    %471 = arith.mulf %470, %469 : vector<8x128xf32>
    %472 = math.tanh %471 : vector<8x128xf32>
    %cst_175 = arith.constant 5.000000e-01 : f32
    %473 = vector.broadcast %cst_175 : f32 to vector<8x128xf32>
    %474 = arith.mulf %473, %472 : vector<8x128xf32>
    %cst_176 = arith.constant 5.000000e-01 : f32
    %475 = vector.broadcast %cst_176 : f32 to vector<8x128xf32>
    %476 = arith.addf %474, %475 : vector<8x128xf32>
    %477 = vector.extract_strided_slice %460 {offsets = [0, 256], sizes = [8, 128], strides = [1, 1]} : vector<8x512xf32> to vector<8x128xf32>
    %478 = math.tanh %477 : vector<8x128xf32>
    %479 = vector.extract_strided_slice %460 {offsets = [0, 384], sizes = [8, 128], strides = [1, 1]} : vector<8x512xf32> to vector<8x128xf32>
    %cst_177 = arith.constant 5.000000e-01 : f32
    %480 = vector.broadcast %cst_177 : f32 to vector<8x128xf32>
    %481 = arith.mulf %480, %479 : vector<8x128xf32>
    %482 = math.tanh %481 : vector<8x128xf32>
    %cst_178 = arith.constant 5.000000e-01 : f32
    %483 = vector.broadcast %cst_178 : f32 to vector<8x128xf32>
    %484 = arith.mulf %483, %482 : vector<8x128xf32>
    %cst_179 = arith.constant 5.000000e-01 : f32
    %485 = vector.broadcast %cst_179 : f32 to vector<8x128xf32>
    %486 = arith.addf %484, %485 : vector<8x128xf32>
    %487 = arith.mulf %476, %415 : vector<8x128xf32>
    %488 = arith.mulf %468, %478 : vector<8x128xf32>
    %489 = arith.addf %487, %488 : vector<8x128xf32>
    %490 = math.tanh %489 : vector<8x128xf32>
    %491 = arith.mulf %486, %490 : vector<8x128xf32>
    %492 = tpu.concatenate %491, %453 in 1 : vector<8x128xf32>, vector<8x128xf32> -> vector<8x256xf32>
    %493 = arith.truncf %492 : vector<8x256xf32> to vector<8x256xbf16>
    %c0_180 = arith.constant 0 : index
    %c0_181 = arith.constant 0 : index
    %494 = vector.load %arg3[%c0_180, %c0_181] : memref<256x512xbf16, #tpu.memory_space<vmem>>, vector<256x512xbf16>
    %cst_182 = arith.constant dense<0.000000e+00> : vector<8x512xf32>
    %495 = tpu.matmul %493, %494, %cst_182 {dimension_numbers = #tpu.dot_dimension_numbers<[1], [0], [0], [1], [0, 0, 1, 1], [], []>} : vector<8x256xbf16>, vector<256x512xbf16>, vector<8x512xf32> -> vector<8x512xf32>
    %496 = arith.addf %495, %5 : vector<8x512xf32>
    %497 = vector.extract_strided_slice %496 {offsets = [0, 0], sizes = [8, 128], strides = [1, 1]} : vector<8x512xf32> to vector<8x128xf32>
    %cst_183 = arith.constant 5.000000e-01 : f32
    %498 = vector.broadcast %cst_183 : f32 to vector<8x128xf32>
    %499 = arith.mulf %498, %497 : vector<8x128xf32>
    %500 = math.tanh %499 : vector<8x128xf32>
    %cst_184 = arith.constant 5.000000e-01 : f32
    %501 = vector.broadcast %cst_184 : f32 to vector<8x128xf32>
    %502 = arith.mulf %501, %500 : vector<8x128xf32>
    %cst_185 = arith.constant 5.000000e-01 : f32
    %503 = vector.broadcast %cst_185 : f32 to vector<8x128xf32>
    %504 = arith.addf %502, %503 : vector<8x128xf32>
    %505 = vector.extract_strided_slice %496 {offsets = [0, 128], sizes = [8, 128], strides = [1, 1]} : vector<8x512xf32> to vector<8x128xf32>
    %cst_186 = arith.constant 5.000000e-01 : f32
    %506 = vector.broadcast %cst_186 : f32 to vector<8x128xf32>
    %507 = arith.mulf %506, %505 : vector<8x128xf32>
    %508 = math.tanh %507 : vector<8x128xf32>
    %cst_187 = arith.constant 5.000000e-01 : f32
    %509 = vector.broadcast %cst_187 : f32 to vector<8x128xf32>
    %510 = arith.mulf %509, %508 : vector<8x128xf32>
    %cst_188 = arith.constant 5.000000e-01 : f32
    %511 = vector.broadcast %cst_188 : f32 to vector<8x128xf32>
    %512 = arith.addf %510, %511 : vector<8x128xf32>
    %513 = vector.extract_strided_slice %496 {offsets = [0, 256], sizes = [8, 128], strides = [1, 1]} : vector<8x512xf32> to vector<8x128xf32>
    %514 = math.tanh %513 : vector<8x128xf32>
    %515 = vector.extract_strided_slice %496 {offsets = [0, 384], sizes = [8, 128], strides = [1, 1]} : vector<8x512xf32> to vector<8x128xf32>
    %cst_189 = arith.constant 5.000000e-01 : f32
    %516 = vector.broadcast %cst_189 : f32 to vector<8x128xf32>
    %517 = arith.mulf %516, %515 : vector<8x128xf32>
    %518 = math.tanh %517 : vector<8x128xf32>
    %cst_190 = arith.constant 5.000000e-01 : f32
    %519 = vector.broadcast %cst_190 : f32 to vector<8x128xf32>
    %520 = arith.mulf %519, %518 : vector<8x128xf32>
    %cst_191 = arith.constant 5.000000e-01 : f32
    %521 = vector.broadcast %cst_191 : f32 to vector<8x128xf32>
    %522 = arith.addf %520, %521 : vector<8x128xf32>
    %523 = arith.mulf %512, %451 : vector<8x128xf32>
    %524 = arith.mulf %504, %514 : vector<8x128xf32>
    %525 = arith.addf %523, %524 : vector<8x128xf32>
    %526 = math.tanh %525 : vector<8x128xf32>
    %527 = arith.mulf %522, %526 : vector<8x128xf32>
    %c7_i32 = arith.constant 7 : i32
    %528 = arith.index_cast %c7_i32 : i32 to index
    %c0_192 = arith.constant 0 : index
    %c0_193 = arith.constant 0 : index
    %529 = vector.load %arg1[%528, %c0_192, %c0_193] : memref<8x8x512xf32, #tpu.memory_space<vmem>>, vector<1x8x512xf32>
    %530 = vector.shape_cast %529 : vector<1x8x512xf32> to vector<8x512xf32>
    %531 = arith.truncf %491 : vector<8x128xf32> to vector<8x128xbf16>
    %c0_194 = arith.constant 0 : index
    %c0_195 = arith.constant 0 : index
    %532 = vector.load %arg2[%c0_194, %c0_195] : memref<128x512xbf16, #tpu.memory_space<vmem>>, vector<128x512xbf16>
    %cst_196 = arith.constant dense<0.000000e+00> : vector<8x512xf32>
    %533 = tpu.matmul %531, %532, %cst_196 {dimension_numbers = #tpu.dot_dimension_numbers<[1], [0], [0], [1], [0, 0, 1, 1], [], []>} : vector<8x128xbf16>, vector<128x512xbf16>, vector<8x512xf32> -> vector<8x512xf32>
    %534 = arith.addf %530, %533 : vector<8x512xf32>
    %535 = vector.extract_strided_slice %534 {offsets = [0, 0], sizes = [8, 128], strides = [1, 1]} : vector<8x512xf32> to vector<8x128xf32>
    %cst_197 = arith.constant 5.000000e-01 : f32
    %536 = vector.broadcast %cst_197 : f32 to vector<8x128xf32>
    %537 = arith.mulf %536, %535 : vector<8x128xf32>
    %538 = math.tanh %537 : vector<8x128xf32>
    %cst_198 = arith.constant 5.000000e-01 : f32
    %539 = vector.broadcast %cst_198 : f32 to vector<8x128xf32>
    %540 = arith.mulf %539, %538 : vector<8x128xf32>
    %cst_199 = arith.constant 5.000000e-01 : f32
    %541 = vector.broadcast %cst_199 : f32 to vector<8x128xf32>
    %542 = arith.addf %540, %541 : vector<8x128xf32>
    %543 = vector.extract_strided_slice %534 {offsets = [0, 128], sizes = [8, 128], strides = [1, 1]} : vector<8x512xf32> to vector<8x128xf32>
    %cst_200 = arith.constant 5.000000e-01 : f32
    %544 = vector.broadcast %cst_200 : f32 to vector<8x128xf32>
    %545 = arith.mulf %544, %543 : vector<8x128xf32>
    %546 = math.tanh %545 : vector<8x128xf32>
    %cst_201 = arith.constant 5.000000e-01 : f32
    %547 = vector.broadcast %cst_201 : f32 to vector<8x128xf32>
    %548 = arith.mulf %547, %546 : vector<8x128xf32>
    %cst_202 = arith.constant 5.000000e-01 : f32
    %549 = vector.broadcast %cst_202 : f32 to vector<8x128xf32>
    %550 = arith.addf %548, %549 : vector<8x128xf32>
    %551 = vector.extract_strided_slice %534 {offsets = [0, 256], sizes = [8, 128], strides = [1, 1]} : vector<8x512xf32> to vector<8x128xf32>
    %552 = math.tanh %551 : vector<8x128xf32>
    %553 = vector.extract_strided_slice %534 {offsets = [0, 384], sizes = [8, 128], strides = [1, 1]} : vector<8x512xf32> to vector<8x128xf32>
    %cst_203 = arith.constant 5.000000e-01 : f32
    %554 = vector.broadcast %cst_203 : f32 to vector<8x128xf32>
    %555 = arith.mulf %554, %553 : vector<8x128xf32>
    %556 = math.tanh %555 : vector<8x128xf32>
    %cst_204 = arith.constant 5.000000e-01 : f32
    %557 = vector.broadcast %cst_204 : f32 to vector<8x128xf32>
    %558 = arith.mulf %557, %556 : vector<8x128xf32>
    %cst_205 = arith.constant 5.000000e-01 : f32
    %559 = vector.broadcast %cst_205 : f32 to vector<8x128xf32>
    %560 = arith.addf %558, %559 : vector<8x128xf32>
    %561 = arith.mulf %550, %489 : vector<8x128xf32>
    %562 = arith.mulf %542, %552 : vector<8x128xf32>
    %563 = arith.addf %561, %562 : vector<8x128xf32>
    %564 = math.tanh %563 : vector<8x128xf32>
    %565 = arith.mulf %560, %564 : vector<8x128xf32>
    %566 = tpu.concatenate %565, %527 in 1 : vector<8x128xf32>, vector<8x128xf32> -> vector<8x256xf32>
    %567 = arith.truncf %566 : vector<8x256xf32> to vector<8x256xbf16>
    %c0_206 = arith.constant 0 : index
    %c0_207 = arith.constant 0 : index
    %568 = vector.load %arg3[%c0_206, %c0_207] : memref<256x512xbf16, #tpu.memory_space<vmem>>, vector<256x512xbf16>
    %cst_208 = arith.constant dense<0.000000e+00> : vector<8x512xf32>
    %569 = tpu.matmul %567, %568, %cst_208 {dimension_numbers = #tpu.dot_dimension_numbers<[1], [0], [0], [1], [0, 0, 1, 1], [], []>} : vector<8x256xbf16>, vector<256x512xbf16>, vector<8x512xf32> -> vector<8x512xf32>
    %570 = arith.addf %569, %5 : vector<8x512xf32>
    %571 = vector.extract_strided_slice %570 {offsets = [0, 0], sizes = [8, 128], strides = [1, 1]} : vector<8x512xf32> to vector<8x128xf32>
    %cst_209 = arith.constant 5.000000e-01 : f32
    %572 = vector.broadcast %cst_209 : f32 to vector<8x128xf32>
    %573 = arith.mulf %572, %571 : vector<8x128xf32>
    %574 = math.tanh %573 : vector<8x128xf32>
    %cst_210 = arith.constant 5.000000e-01 : f32
    %575 = vector.broadcast %cst_210 : f32 to vector<8x128xf32>
    %576 = arith.mulf %575, %574 : vector<8x128xf32>
    %cst_211 = arith.constant 5.000000e-01 : f32
    %577 = vector.broadcast %cst_211 : f32 to vector<8x128xf32>
    %578 = arith.addf %576, %577 : vector<8x128xf32>
    %579 = vector.extract_strided_slice %570 {offsets = [0, 128], sizes = [8, 128], strides = [1, 1]} : vector<8x512xf32> to vector<8x128xf32>
    %cst_212 = arith.constant 5.000000e-01 : f32
    %580 = vector.broadcast %cst_212 : f32 to vector<8x128xf32>
    %581 = arith.mulf %580, %579 : vector<8x128xf32>
    %582 = math.tanh %581 : vector<8x128xf32>
    %cst_213 = arith.constant 5.000000e-01 : f32
    %583 = vector.broadcast %cst_213 : f32 to vector<8x128xf32>
    %584 = arith.mulf %583, %582 : vector<8x128xf32>
    %cst_214 = arith.constant 5.000000e-01 : f32
    %585 = vector.broadcast %cst_214 : f32 to vector<8x128xf32>
    %586 = arith.addf %584, %585 : vector<8x128xf32>
    %587 = vector.extract_strided_slice %570 {offsets = [0, 256], sizes = [8, 128], strides = [1, 1]} : vector<8x512xf32> to vector<8x128xf32>
    %588 = math.tanh %587 : vector<8x128xf32>
    %589 = vector.extract_strided_slice %570 {offsets = [0, 384], sizes = [8, 128], strides = [1, 1]} : vector<8x512xf32> to vector<8x128xf32>
    %cst_215 = arith.constant 5.000000e-01 : f32
    %590 = vector.broadcast %cst_215 : f32 to vector<8x128xf32>
    %591 = arith.mulf %590, %589 : vector<8x128xf32>
    %592 = math.tanh %591 : vector<8x128xf32>
    %cst_216 = arith.constant 5.000000e-01 : f32
    %593 = vector.broadcast %cst_216 : f32 to vector<8x128xf32>
    %594 = arith.mulf %593, %592 : vector<8x128xf32>
    %cst_217 = arith.constant 5.000000e-01 : f32
    %595 = vector.broadcast %cst_217 : f32 to vector<8x128xf32>
    %596 = arith.addf %594, %595 : vector<8x128xf32>
    %597 = arith.mulf %586, %525 : vector<8x128xf32>
    %598 = arith.mulf %578, %588 : vector<8x128xf32>
    %599 = arith.addf %597, %598 : vector<8x128xf32>
    %600 = math.tanh %599 : vector<8x128xf32>
    %601 = arith.mulf %596, %600 : vector<8x128xf32>
    %c8_i32 = arith.constant 8 : i32
    %c0_218 = arith.constant 0 : index
    %c0_219 = arith.constant 0 : index
    %602 = vector.load %arg6[%c0_218, %c0_219] : memref<8x128xf32, #tpu.memory_space<vmem>>, vector<8x128xf32>
    tpu.vector_store %arg6[%c0_218, %c0_219], %565 {strides = array<i32>} : memref<8x128xf32, #tpu.memory_space<vmem>>, vector<8x128xf32>,
    %c0_220 = arith.constant 0 : index
    %c0_221 = arith.constant 0 : index
    %603 = vector.load %arg7[%c0_220, %c0_221] : memref<8x128xf32, #tpu.memory_space<vmem>>, vector<8x128xf32>
    tpu.vector_store %arg7[%c0_220, %c0_221], %563 {strides = array<i32>} : memref<8x128xf32, #tpu.memory_space<vmem>>, vector<8x128xf32>,
    %c0_222 = arith.constant 0 : index
    %c0_223 = arith.constant 0 : index
    %604 = vector.load %arg8[%c0_222, %c0_223] : memref<8x128xf32, #tpu.memory_space<vmem>>, vector<8x128xf32>
    tpu.vector_store %arg8[%c0_222, %c0_223], %601 {strides = array<i32>} : memref<8x128xf32, #tpu.memory_space<vmem>>, vector<8x128xf32>,
    %c0_224 = arith.constant 0 : index
    %c0_225 = arith.constant 0 : index
    %605 = vector.load %arg9[%c0_224, %c0_225] : memref<8x128xf32, #tpu.memory_space<vmem>>, vector<8x128xf32>
    tpu.vector_store %arg9[%c0_224, %c0_225], %599 {strides = array<i32>} : memref<8x128xf32, #tpu.memory_space<vmem>>, vector<8x128xf32>,
    %c0_i32_226 = arith.constant 0 : i32
    %606 = arith.cmpi eq, %arg0, %c0_i32_226 : i32
    %607 = arith.extui %606 : i1 to i32
    %c0_i32_227 = arith.constant 0 : i32
    %608 = arith.cmpi ne, %607, %c0_i32_227 : i32
    scf.if %608 {
      %c0_228 = arith.constant 0 : index
      %c0_229 = arith.constant 0 : index
      %609 = vector.load %arg5[%c0_228, %c0_229] : memref<8x128xf32, #tpu.memory_space<vmem>>, vector<8x128xf32>
      tpu.vector_store %arg5[%c0_228, %c0_229], %601 {strides = array<i32>} : memref<8x128xf32, #tpu.memory_space<vmem>>, vector<8x128xf32>,
    } else {
    }
    return
  }
  func.func @transform_0(%arg0: i32) -> (i32, i32, i32) {
    %c0_i32 = arith.constant 0 : i32
    %c0_i32_0 = arith.constant 0 : i32
    %c0_i32_1 = arith.constant 0 : i32
    return %arg0, %c0_i32, %c0_i32_0 : i32, i32, i32
  }
  func.func @transform_1(%arg0: i32) -> (i32, i32) {
    %c0_i32 = arith.constant 0 : i32
    %c0_i32_0 = arith.constant 0 : i32
    %c0_i32_1 = arith.constant 0 : i32
    return %c0_i32, %c0_i32_0 : i32, i32
  }
  func.func @transform_2(%arg0: i32) -> (i32, i32) {
    %c0_i32 = arith.constant 0 : i32
    %c0_i32_0 = arith.constant 0 : i32
    %c0_i32_1 = arith.constant 0 : i32
    return %c0_i32, %c0_i32_0 : i32, i32
  }
  func.func @transform_3(%arg0: i32) -> (i32, i32) {
    %c0_i32 = arith.constant 0 : i32
    %c0_i32_0 = arith.constant 0 : i32
    %c0_i32_1 = arith.constant 0 : i32
    return %c0_i32, %c0_i32_0 : i32, i32
  }
  func.func @transform_4(%arg0: i32) -> (i32, i32) {
    %c0_i32 = arith.constant 0 : i32
    %c0_i32_0 = arith.constant 0 : i32
    %c0_i32_1 = arith.constant 0 : i32
    return %c0_i32, %c0_i32_0 : i32, i32
  }
}

</mosaic_0001>

<bundles_post_ra>
// kernel: lstm_forward.1
= control target key start
LH: loop header
LB: loop body
LE: loop exit
PB: predicated region body
PF: predicated region fallthrough
CT: control target
= control target key end

     0   :  { %v5404_v1 = vmov 0   ;;  %v2951_v37 = vmov 0.0|0.0   ;;  %s5399_s1 = inlined_call_operand.vmem [shape: bf16[128,512], index: 1, kind: input, shape index: {}]   ;;  %s5400_s2 = inlined_call_operand.vmem [shape: bf16[256,512], index: 2, kind: input, shape index: {}]   ;;  %s5401_s0 = inlined_call_operand.vmem [shape: f32[8,8,512], index: 0, kind: input, shape index: {}]   ;;  %s5402_s3 = inlined_call_operand.vmem [shape: f32[1,512], index: 3, kind: input, shape index: {}]   ;;  %s5403_s4 = inlined_call_operand.vmem [shape: f32[8,128], index: 4, kind: output, shape index: {}]  }
   0x1   :  { %v2980_v0 = vld [vmem:[%s5399_s1 + $0x4] ss:$16 sps:$4 sm:$0xff]   ;;  %281 = vmatprep.mubr.bf16.mxu0 %v5404_v1  ;;  %322 = vmatprep.mubr.bf16.mxu1 %v5404_v1  ;;  %v2987_v2 = vld [vmem:[%s5399_s1] ss:$16 sps:$4 sm:$0xff]   ;;  %v2999_v4 = vld [vmem:[%s5399_s1 + $0xc] ss:$16 sps:$4 sm:$0xff]  }
   0x2   :  { %5682 = vst [vmem:[#allocation6_spill] sm:$0xff] %v2980_v0  ;;  %249 = vmatprep.subr.bf16.mxu0 %v2980_v0  ;;  %v2993_v3 = vld [vmem:[%s5399_s1 + $0x24] ss:$16 sps:$4 sm:$0xff]   ;;  %5683 = vst [vmem:[#allocation7_spill] sm:$0xff] %v2999_v4  ;;  %v3004_v5 = vld [vmem:[%s5399_s1 + $0x20] ss:$16 sps:$4 sm:$0xff]   ;;  %290 = vmatprep.subr.bf16.mxu1 %v2999_v4 }
   0x3   :  { %250 = vmatpush1.bf16.msra.mxu0 %v2987_v2  ;;  %v3009_v6 = vld [vmem:[%s5399_s1 + $0x8] ss:$16 sps:$4 sm:$0xff]   ;;  %v3015_v7 = vld [vmem:[%s5399_s1 + $0x44] ss:$16 sps:$4 sm:$0xff]   ;;  %v3021_v8 = vld [vmem:[%s5399_s1 + $0x2c] ss:$16 sps:$4 sm:$0xff]  }
   0x4   :  { %251 = vmatprep.subr.bf16.mxu0 %v2993_v3  ;;  %291 = vmatpush1.bf16.msra.mxu1 %v3009_v6  ;;  %v3027_v9 = vld [vmem:[%s5399_s1 + $0x28] ss:$16 sps:$4 sm:$0xff]   ;;  %v3034_v10 = vld [vmem:[%s5399_s1 + $0x40] ss:$16 sps:$4 sm:$0xff]   ;;  %v3040_v11 = vld [vmem:[%s5399_s1 + $0x64] ss:$16 sps:$4 sm:$0xff]  }
   0x5   :  { %292 = vmatprep.subr.bf16.mxu1 %v3021_v8  ;;  %v3045_v12 = vld [vmem:[%s5399_s1 + $0x4c] ss:$16 sps:$4 sm:$0xff]   ;;  %v3051_v13 = vld [vmem:[%s5399_s1 + $0x48] ss:$16 sps:$4 sm:$0xff]   ;;  %v3058_v14 = vld [vmem:[%s5399_s1 + $0x60] ss:$16 sps:$4 sm:$0xff]  }
   0x6   :  { %v3063_v15 = vld [vmem:[%s5399_s1 + $0x6c] ss:$16 sps:$4 sm:$0xff]   ;;  %v3069_v16 = vld [vmem:[%s5399_s1 + $0x84] ss:$16 sps:$4 sm:$0xff]   ;;  %v3075_v17 = vld [vmem:[%s5399_s1 + $0x80] ss:$16 sps:$4 sm:$0xff]  }
   0x7   :  { %252 = vmatpush1.bf16.msra.mxu0 %v3004_v5  ;;  %v3080_v18 = vld [vmem:[%s5399_s1 + $0x68] ss:$16 sps:$4 sm:$0xff]   ;;  %v3087_v19 = vld [vmem:[%s5399_s1 + $0x8c] ss:$16 sps:$4 sm:$0xff]   ;;  %v3093_v20 = vld [vmem:[%s5399_s1 + $0xa4] ss:$16 sps:$4 sm:$0xff]  }
   0x8   :  { %253 = vmatprep.subr.bf16.mxu0 %v3015_v7  ;;  %293 = vmatpush1.bf16.msra.mxu1 %v3027_v9  ;;  %v3099_v21 = vld [vmem:[%s5399_s1 + $0x88] ss:$16 sps:$4 sm:$0xff]   ;;  %v3106_v22 = vld [vmem:[%s5399_s1 + $0xa0] ss:$16 sps:$4 sm:$0xff]   ;;  %v3111_v23 = vld [vmem:[%s5399_s1 + $0xac] ss:$16 sps:$4 sm:$0xff]  }
   0x9   :  { %294 = vmatprep.subr.bf16.mxu1 %v3045_v12  ;;  %v3117_v24 = vld [vmem:[%s5399_s1 + $0xc4] ss:$16 sps:$4 sm:$0xff]   ;;  %v3123_v25 = vld [vmem:[%s5399_s1 + $0xa8] ss:$16 sps:$4 sm:$0xff]   ;;  %v3130_v26 = vld [vmem:[%s5399_s1 + $0xc0] ss:$16 sps:$4 sm:$0xff]  }
   0xa   :  { %v3135_v27 = vld [vmem:[%s5399_s1 + $0xcc] ss:$16 sps:$4 sm:$0xff]   ;;  %v3141_v28 = vld [vmem:[%s5399_s1 + $0xe4] ss:$16 sps:$4 sm:$0xff]   ;;  %v3147_v29 = vld [vmem:[%s5399_s1 + $0xe0] ss:$16 sps:$4 sm:$0xff]  }
   0xb   :  { %254 = vmatpush1.bf16.msra.mxu0 %v3034_v10  ;;  %v3152_v30 = vld [vmem:[%s5399_s1 + $0xc8] ss:$16 sps:$4 sm:$0xff]   ;;  %v3159_v31 = vld [vmem:[%s5399_s1 + $0xec] ss:$16 sps:$4 sm:$0xff]   ;;  %v3165_v32 = vld [vmem:[%s5400_s2 + $0x4] ss:$16 sps:$4 sm:$0xff]  }
   0xc   :  { %255 = vmatprep.subr.bf16.mxu0 %v3040_v11  ;;  %295 = vmatpush1.bf16.msra.mxu1 %v3051_v13  ;;  %v3171_v33 = vld [vmem:[%s5399_s1 + $0xe8] ss:$16 sps:$4 sm:$0xff]   ;;  %v3178_v34 = vld [vmem:[%s5400_s2 + $0xc] ss:$16 sps:$4 sm:$0xff]   ;;  %v3183_v35 = vld [vmem:[%s5400_s2] ss:$16 sps:$4 sm:$0xff]  }
   0xd   :  { %296 = vmatprep.subr.bf16.mxu1 %v3063_v15  ;;  %v3189_v36 = vld [vmem:[%s5400_s2 + $0x24] ss:$16 sps:$4 sm:$0xff]   ;;  %v3195_v38 = vld [vmem:[%s5400_s2 + $0x8] ss:$16 sps:$4 sm:$0xff]   ;;  %v3200_v39 = vld [vmem:[%s5400_s2 + $0x2c] ss:$16 sps:$4 sm:$0xff]  }
   0xe   :  { %v3207_v40 = vld [vmem:[%s5400_s2 + $0x20] ss:$16 sps:$4 sm:$0xff]   ;;  %v3213_v41 = vld [vmem:[%s5400_s2 + $0x44] ss:$16 sps:$4 sm:$0xff]   ;;  %v3218_v42 = vld [vmem:[%s5400_s2 + $0x28] ss:$16 sps:$4 sm:$0xff]  }
   0xf   :  { %256 = vmatpush1.bf16.msra.mxu0 %v3058_v14  ;;  %v3224_v43 = vld [vmem:[%s5400_s2 + $0x4c] ss:$16 sps:$4 sm:$0xff]   ;;  %v3231_v44 = vld [vmem:[%s5400_s2 + $0x40] ss:$16 sps:$4 sm:$0xff]   ;;  %v3236_v45 = vld [vmem:[%s5400_s2 + $0x64] ss:$16 sps:$4 sm:$0xff]  }
  0x10   :  { %257 = vmatprep.subr.bf16.mxu0 %v3069_v16  ;;  %297 = vmatpush1.bf16.msra.mxu1 %v3080_v18  ;;  %v3242_v46 = vld [vmem:[%s5400_s2 + $0x48] ss:$16 sps:$4 sm:$0xff]   ;;  %v3247_v47 = vld [vmem:[%s5400_s2 + $0x6c] ss:$16 sps:$4 sm:$0xff]   ;;  %v3252_v48 = vld [vmem:[%s5400_s2 + $0x60] ss:$16 sps:$4 sm:$0xff]  }
  0x11   :  { %298 = vmatprep.subr.bf16.mxu1 %v3087_v19  ;;  %v3258_v49 = vld [vmem:[%s5400_s2 + $0x84] ss:$16 sps:$4 sm:$0xff]   ;;  %v3266_v50 = vld [vmem:[%s5400_s2 + $0x68] ss:$16 sps:$4 sm:$0xff]   ;;  %v3271_v51 = vld [vmem:[%s5400_s2 + $0x8c] ss:$16 sps:$4 sm:$0xff]  }
  0x12   :  { %5684 = vst [vmem:[#allocation8_spill] sm:$0xff] %v3258_v49  ;;  %5685 = vst [vmem:[#allocation9_spill] sm:$0xff] %v3271_v51  ;;  %v3276_v52 = vld [vmem:[%s5400_s2 + $0x80] ss:$16 sps:$4 sm:$0xff]   ;;  %v3282_v53 = vld [vmem:[%s5400_s2 + $0xa4] ss:$16 sps:$4 sm:$0xff]  }
  0x13   :  { %258 = vmatpush1.bf16.msra.mxu0 %v3075_v17  ;;  %5686 = vst [vmem:[#allocation10_spill] sm:$0xff] %v3276_v52  ;;  %5687 = vst [vmem:[#allocation11_spill] sm:$0xff] %v3282_v53  ;;  %v3290_v54 = vld [vmem:[%s5400_s2 + $0x88] ss:$16 sps:$4 sm:$0xff]   ;;  %v3295_v55 = vld [vmem:[%s5400_s2 + $0xac] ss:$16 sps:$4 sm:$0xff]  }
  0x14   :  { %259 = vmatprep.subr.bf16.mxu0 %v3093_v20  ;;  %299 = vmatpush1.bf16.msra.mxu1 %v3099_v21  ;;  %5688 = vst [vmem:[#allocation12_spill] sm:$0xff] %v3290_v54  ;;  %5689 = vst [vmem:[#allocation13_spill] sm:$0xff] %v3295_v55  ;;  %v3303_v56 = vld [vmem:[%s5400_s2 + $0xa0] ss:$16 sps:$4 sm:$0xff]   ;;  %v3309_v57 = vld [vmem:[%s5400_s2 + $0xc4] ss:$16 sps:$4 sm:$0xff]  }
  0x15   :  { %300 = vmatprep.subr.bf16.mxu1 %v3111_v23  ;;  %5690 = vst [vmem:[#allocation14_spill] sm:$0xff] %v3303_v56  ;;  %5691 = vst [vmem:[#allocation15_spill] sm:$0xff] %v3309_v57  ;;  %v3315_v58 = vld [vmem:[%s5400_s2 + $0xa8] ss:$16 sps:$4 sm:$0xff]   ;;  %v3322_v59 = vld [vmem:[%s5400_s2 + $0xcc] ss:$16 sps:$4 sm:$0xff]  }
  0x16   :  { %5692 = vst [vmem:[#allocation16_spill] sm:$0xff] %v3315_v58  ;;  %5693 = vst [vmem:[#allocation17_spill] sm:$0xff] %v3322_v59  ;;  %v3330_v60 = vld [vmem:[%s5400_s2 + $0xc0] ss:$16 sps:$4 sm:$0xff]   ;;  %v3335_v61 = vld [vmem:[%s5400_s2 + $0xc8] ss:$16 sps:$4 sm:$0xff]  }
  0x17   :  { %260 = vmatpush1.bf16.msra.mxu0 %v3106_v22  ;;  %5694 = vst [vmem:[#allocation18_spill] sm:$0xff] %v3330_v60  ;;  %5695 = vst [vmem:[#allocation19_spill] sm:$0xff] %v3335_v61  ;;  %v3342_v62 = vld [vmem:[%s5400_s2 + $0xe4] ss:$16 sps:$4 sm:$0xff]   ;;  %v3347_v63 = vld [vmem:[%s5400_s2 + $0xec] ss:$16 sps:$4 sm:$0xff]  }
  0x18   :  { %261 = vmatprep.subr.bf16.mxu0 %v3117_v24  ;;  %301 = vmatpush1.bf16.msra.mxu1 %v3123_v25  ;;  %5696 = vst [vmem:[#allocation20_spill] sm:$0xff] %v3342_v62  ;;  %5697 = vst [vmem:[#allocation21_spill] sm:$0xff] %v3347_v63  ;;  %v3357_v1 = vld [vmem:[%s5400_s2 + $0xe8] ss:$16 sps:$4 sm:$0xff]  }
  0x19   :  { %302 = vmatprep.subr.bf16.mxu1 %v3135_v27  ;;  %5699 = vst [vmem:[#allocation23_spill] sm:$0xff] %v3357_v1 }
  0x1b   :  { %262 = vmatpush1.bf16.msra.mxu0 %v3130_v26 }
  0x1c   :  { %263 = vmatprep.subr.bf16.mxu0 %v3141_v28  ;;  %303 = vmatpush1.bf16.msra.mxu1 %v3152_v30 }
  0x1d   :  { %304 = vmatprep.subr.bf16.mxu1 %v3159_v31 }
  0x1f   :  { %264 = vmatpush1.bf16.msra.mxu0 %v3147_v29 }
  0x20   :  { %739 = vmatprep.subr.bf16.mxu0 %v3165_v32  ;;  %305 = vmatpush1.bf16.msra.mxu1 %v3171_v33 }
  0x21   :  { %780 = vmatprep.subr.bf16.mxu1 %v3178_v34 }
  0x22   :  { %282 = vmatmul.mubr.bf16.vlgmr.msra.gmra.mrb[0].mxu0 %v2951_v37 }
  0x23   :  { %740 = vmatpush1.bf16.msra.mxu0 %v3183_v35  ;;  %771 = vmatprep.mubr.bf16.mxu0 %v2951_v37 }
  0x24   :  { %741 = vmatprep.subr.bf16.mxu0 %v3189_v36  ;;  %323 = vmatmul.mubr.bf16.vlgmr.msra.gmra.mrb[0].mxu1 %v2951_v37 }
  0x25   :  { %781 = vmatpush1.bf16.msra.mxu1 %v3195_v38  ;;  %812 = vmatprep.mubr.bf16.mxu1 %v2951_v37  ;;  %v3352_v37 = vld [vmem:[%s5400_s2 + $0xe0] ss:$16 sps:$4 sm:$0xff]  }
  0x26   :  { %782 = vmatprep.subr.bf16.mxu1 %v3200_v39  ;;  %5698 = vst [vmem:[#allocation22_spill] sm:$0xff] %v3352_v37 }
  0x27   :  { %742 = vmatpush1.bf16.msra.mxu0 %v3207_v40 }
  0x28   :  { %743 = vmatprep.subr.bf16.mxu0 %v3213_v41 }
  0x29   :  { %783 = vmatpush1.bf16.msra.mxu1 %v3218_v42 }
  0x2a   :  { %784 = vmatprep.subr.bf16.mxu1 %v3224_v43 }
  0x2b   :  { %744 = vmatpush1.bf16.msra.mxu0 %v3231_v44 }
  0x2c   :  { %745 = vmatprep.subr.bf16.mxu0 %v3236_v45 }
  0x2d   :  { %785 = vmatpush1.bf16.msra.mxu1 %v3242_v46 }
  0x2e   :  { %786 = vmatprep.subr.bf16.mxu1 %v3247_v47 }
  0x2f   :  { %746 = vmatpush1.bf16.msra.mxu0 %v3252_v48 }
  0x30   :  { %747 = vmatprep.subr.bf16.mxu0 %v3258_v49 }
  0x31   :  { %787 = vmatpush1.bf16.msra.mxu1 %v3266_v50 }
  0x32   :  { %788 = vmatprep.subr.bf16.mxu1 %v3271_v51 }
  0x33   :  { %748 = vmatpush1.bf16.msra.mxu0 %v3276_v52 }
  0x34   :  { %749 = vmatprep.subr.bf16.mxu0 %v3282_v53 }
  0x35   :  { %789 = vmatpush1.bf16.msra.mxu1 %v3290_v54 }
  0x36   :  { %790 = vmatprep.subr.bf16.mxu1 %v3295_v55 }
  0x37   :  { %750 = vmatpush1.bf16.msra.mxu0 %v3303_v56 }
  0x38   :  { %751 = vmatprep.subr.bf16.mxu0 %v3309_v57 }
  0x39   :  { %791 = vmatpush1.bf16.msra.mxu1 %v3315_v58 }
  0x3a   :  { %792 = vmatprep.subr.bf16.mxu1 %v3322_v59 }
  0x3b   :  { %752 = vmatpush1.bf16.msra.mxu0 %v3330_v60  ;;  %v3371_v60 = vld [vmem:[%s5400_s2 + $0x10c] ss:$16 sps:$4 sm:$0xff]  }
  0x3c   :  { %753 = vmatprep.subr.bf16.mxu0 %v3342_v62  ;;  %5701 = vst [vmem:[#allocation25_spill] sm:$0xff] %v3371_v60  ;;  %v3376_v62 = vld [vmem:[%s5400_s2 + $0x100] ss:$16 sps:$4 sm:$0xff]  }
  0x3d   :  { %793 = vmatpush1.bf16.msra.mxu1 %v3335_v61  ;;  %v3366_v61 = vld [vmem:[%s5400_s2 + $0x104] ss:$16 sps:$4 sm:$0xff]   ;;  %5702 = vst [vmem:[#allocation26_spill] sm:$0xff] %v3376_v62 }
  0x3e   :  { %794 = vmatprep.subr.bf16.mxu1 %v3347_v63  ;;  %5700 = vst [vmem:[#allocation24_spill] sm:$0xff] %v3366_v61  ;;  %v3395_v63 = vld [vmem:[%s5400_s2 + $0x12c] ss:$16 sps:$4 sm:$0xff]  }
  0x3f   :  { %754 = vmatpush1.bf16.msra.mxu0 %v3352_v37  ;;  %v3381_v37 = vld [vmem:[%s5400_s2 + $0x108] ss:$16 sps:$4 sm:$0xff]   ;;  %5705 = vst [vmem:[#allocation29_spill] sm:$0xff] %v3395_v63 }
  0x40   :  { %5703 = vst [vmem:[#allocation27_spill] sm:$0xff] %v3381_v37  ;;  %755 = vmatprep.subr.bf16.mxu0 %v3366_v61  ;;  %v3400_v61 = vld [vmem:[%s5400_s2 + $0x120] ss:$16 sps:$4 sm:$0xff]  }
  0x41   :  { %795 = vmatpush1.bf16.msra.mxu1 %v3357_v1  ;;  %v3390_v1 = vld [vmem:[%s5400_s2 + $0x124] ss:$16 sps:$4 sm:$0xff]   ;;  %5706 = vst [vmem:[#allocation30_spill] sm:$0xff] %v3400_v61 }
  0x42   :  { %796 = vmatprep.subr.bf16.mxu1 %v3371_v60  ;;  %5704 = vst [vmem:[#allocation28_spill] sm:$0xff] %v3390_v1  ;;  %v3419_v60 = vld [vmem:[%s5400_s2 + $0x14c] ss:$16 sps:$4 sm:$0xff]  }
  0x43   :  { %756 = vmatpush1.bf16.msra.mxu0 %v3376_v62  ;;  %v3405_v62 = vld [vmem:[%s5400_s2 + $0x128] ss:$16 sps:$4 sm:$0xff]   ;;  %5709 = vst [vmem:[#allocation33_spill] sm:$0xff] %v3419_v60 }
  0x44   :  { %5707 = vst [vmem:[#allocation31_spill] sm:$0xff] %v3405_v62  ;;  %757 = vmatprep.subr.bf16.mxu0 %v3390_v1  ;;  %v3424_v1 = vld [vmem:[%s5400_s2 + $0x140] ss:$16 sps:$4 sm:$0xff]  }
  0x45   :  { %797 = vmatpush1.bf16.msra.mxu1 %v3381_v37  ;;  %v3414_v37 = vld [vmem:[%s5400_s2 + $0x144] ss:$16 sps:$4 sm:$0xff]   ;;  %5710 = vst [vmem:[#allocation34_spill] sm:$0xff] %v3424_v1 }
  0x46   :  { %798 = vmatprep.subr.bf16.mxu1 %v3395_v63  ;;  %5708 = vst [vmem:[#allocation32_spill] sm:$0xff] %v3414_v37  ;;  %v3443_v63 = vld [vmem:[%s5400_s2 + $0x16c] ss:$16 sps:$4 sm:$0xff]  }
  0x47   :  { %758 = vmatpush1.bf16.msra.mxu0 %v3400_v61  ;;  %v3429_v61 = vld [vmem:[%s5400_s2 + $0x148] ss:$16 sps:$4 sm:$0xff]   ;;  %5713 = vst [vmem:[#allocation37_spill] sm:$0xff] %v3443_v63 }
  0x48   :  { %5711 = vst [vmem:[#allocation35_spill] sm:$0xff] %v3429_v61  ;;  %759 = vmatprep.subr.bf16.mxu0 %v3414_v37  ;;  %v3448_v37 = vld [vmem:[%s5400_s2 + $0x160] ss:$16 sps:$4 sm:$0xff]  }
  0x49   :  { %799 = vmatpush1.bf16.msra.mxu1 %v3405_v62  ;;  %v3438_v62 = vld [vmem:[%s5400_s2 + $0x164] ss:$16 sps:$4 sm:$0xff]   ;;  %5714 = vst [vmem:[#allocation38_spill] sm:$0xff] %v3448_v37 }
  0x4a   :  { %800 = vmatprep.subr.bf16.mxu1 %v3419_v60  ;;  %5712 = vst [vmem:[#allocation36_spill] sm:$0xff] %v3438_v62  ;;  %v3467_v60 = vld [vmem:[%s5400_s2 + $0x18c] ss:$16 sps:$4 sm:$0xff]  }
  0x4b   :  { %760 = vmatpush1.bf16.msra.mxu0 %v3424_v1  ;;  %v3453_v1 = vld [vmem:[%s5400_s2 + $0x168] ss:$16 sps:$4 sm:$0xff]   ;;  %5717 = vst [vmem:[#allocation41_spill] sm:$0xff] %v3467_v60 }
  0x4c   :  { %5715 = vst [vmem:[#allocation39_spill] sm:$0xff] %v3453_v1  ;;  %761 = vmatprep.subr.bf16.mxu0 %v3438_v62  ;;  %v3472_v62 = vld [vmem:[%s5400_s2 + $0x180] ss:$16 sps:$4 sm:$0xff]  }
  0x4d   :  { %801 = vmatpush1.bf16.msra.mxu1 %v3429_v61  ;;  %v3462_v61 = vld [vmem:[%s5400_s2 + $0x184] ss:$16 sps:$4 sm:$0xff]   ;;  %5718 = vst [vmem:[#allocation42_spill] sm:$0xff] %v3472_v62 }
  0x4e   :  { %802 = vmatprep.subr.bf16.mxu1 %v3443_v63  ;;  %5716 = vst [vmem:[#allocation40_spill] sm:$0xff] %v3462_v61  ;;  %v3491_v63 = vld [vmem:[%s5400_s2 + $0x1ac] ss:$16 sps:$4 sm:$0xff]  }
  0x4f   :  { %762 = vmatpush1.bf16.msra.mxu0 %v3448_v37  ;;  %v3477_v37 = vld [vmem:[%s5400_s2 + $0x188] ss:$16 sps:$4 sm:$0xff]   ;;  %5721 = vst [vmem:[#allocation45_spill] sm:$0xff] %v3491_v63 }
  0x50   :  { %5719 = vst [vmem:[#allocation43_spill] sm:$0xff] %v3477_v37  ;;  %763 = vmatprep.subr.bf16.mxu0 %v3462_v61  ;;  %v3496_v61 = vld [vmem:[%s5400_s2 + $0x1a0] ss:$16 sps:$4 sm:$0xff]  }
  0x51   :  { %803 = vmatpush1.bf16.msra.mxu1 %v3453_v1  ;;  %v3486_v1 = vld [vmem:[%s5400_s2 + $0x1a4] ss:$16 sps:$4 sm:$0xff]   ;;  %5722 = vst [vmem:[#allocation46_spill] sm:$0xff] %v3496_v61 }
  0x52   :  { %804 = vmatprep.subr.bf16.mxu1 %v3467_v60  ;;  %5720 = vst [vmem:[#allocation44_spill] sm:$0xff] %v3486_v1  ;;  %v3515_v60 = vld [vmem:[%s5400_s2 + $0x1cc] ss:$16 sps:$4 sm:$0xff]  }
  0x53   :  { %764 = vmatpush1.bf16.msra.mxu0 %v3472_v62  ;;  %v3501_v62 = vld [vmem:[%s5400_s2 + $0x1a8] ss:$16 sps:$4 sm:$0xff]   ;;  %5725 = vst [vmem:[#allocation49_spill] sm:$0xff] %v3515_v60 }
  0x54   :  { %5723 = vst [vmem:[#allocation47_spill] sm:$0xff] %v3501_v62  ;;  %765 = vmatprep.subr.bf16.mxu0 %v3486_v1  ;;  %v3520_v1 = vld [vmem:[%s5400_s2 + $0x1c0] ss:$16 sps:$4 sm:$0xff]  }
  0x55   :  { %805 = vmatpush1.bf16.msra.mxu1 %v3477_v37  ;;  %v3510_v37 = vld [vmem:[%s5400_s2 + $0x1c4] ss:$16 sps:$4 sm:$0xff]   ;;  %5726 = vst [vmem:[#allocation50_spill] sm:$0xff] %v3520_v1 }
  0x56   :  { %806 = vmatprep.subr.bf16.mxu1 %v3491_v63  ;;  %5724 = vst [vmem:[#allocation48_spill] sm:$0xff] %v3510_v37  ;;  %v3539_v63 = vld [vmem:[%s5400_s2 + $0x1ec] ss:$16 sps:$4 sm:$0xff]  }
  0x57   :  { %766 = vmatpush1.bf16.msra.mxu0 %v3496_v61  ;;  %v3525_v61 = vld [vmem:[%s5400_s2 + $0x1c8] ss:$16 sps:$4 sm:$0xff]   ;;  %5729 = vst [vmem:[#allocation53_spill] sm:$0xff] %v3539_v63 }
  0x58   :  { %5727 = vst [vmem:[#allocation51_spill] sm:$0xff] %v3525_v61  ;;  %767 = vmatprep.subr.bf16.mxu0 %v3510_v37  ;;  %v3544_v37 = vld [vmem:[%s5400_s2 + $0x1e0] ss:$16 sps:$4 sm:$0xff]  }
  0x59   :  { %807 = vmatpush1.bf16.msra.mxu1 %v3501_v62  ;;  %v3534_v62 = vld [vmem:[%s5400_s2 + $0x1e4] ss:$16 sps:$4 sm:$0xff]   ;;  %5730 = vst [vmem:[#allocation54_spill] sm:$0xff] %v3544_v37 }
  0x5a   :  { %808 = vmatprep.subr.bf16.mxu1 %v3515_v60  ;;  %5728 = vst [vmem:[#allocation52_spill] sm:$0xff] %v3534_v62  ;;  %v53_v60 = vld [vmem:[%s5401_s0 + $0x8] sm:$0xff] }
  0x5b   :  { %768 = vmatpush1.bf16.msra.mxu0 %v3520_v1  ;;  %v3549_v1 = vld [vmem:[%s5400_s2 + $0x1e8] ss:$16 sps:$4 sm:$0xff]  }
  0x5c   :  { %5731 = vst [vmem:[#allocation55_spill] sm:$0xff] %v3549_v1  ;;  %769 = vmatprep.subr.bf16.mxu0 %v3534_v62 }
  0x5d   :  { %809 = vmatpush1.bf16.msra.mxu1 %v3525_v61  ;;  %v52_v61 = vld [vmem:[%s5401_s0] sm:$0xff] }
  0x5e   :  { %810 = vmatprep.subr.bf16.mxu1 %v3539_v63 }
  0x5f   :  { %770 = vmatpush1.bf16.msra.mxu0 %v3544_v37  ;;  %v54_v37 = vld [vmem:[%s5401_s0 + $0x10] sm:$0xff] }
  0x60   :  { %844 = vmatprep.subr.bf16.mxu0 %v2980_v0 }
  0x61   :  { %811 = vmatpush1.bf16.msra.mxu1 %v3549_v1 }
  0x62   :  { %885 = vmatprep.subr.bf16.mxu1 %v2999_v4 }
  0xf5   :  { %v283_v59 = vpop.f32.mrb[0].mxu0 }
  0xf6   :  { %v331_v62 = vadd.f32 %v283_v59, %v52_v61  ;;  %v285_v57 = vpop.f32.mrb[1].mxu0  ;;  %v55_v59 = vld [vmem:[%s5401_s0 + $0x18] sm:$0xff] }
  0xf7   :  { %v332_v1 = vadd.f32 %v285_v57, %v53_v60  ;;  %v287_v63 = vpop.f32.mrb[2].mxu0  ;;  %v324_v4 = vpop.f32.mrb[0].mxu1 }
  0xf8   :  { %v335_v0 = vmul.f32 0.5, %v331_v62  ;;  %v288_v58 = vpop.f32.mrb[3].mxu0  ;;  %v333_v55 = vadd.f32 %v324_v4, %v54_v37  ;;  %v326_v53 = vpop.f32.mrb[1].mxu1 }
  0xf9   :  { %v339_v56 = vmul.f32 0.5, %v332_v1  ;;  %v328_v54 = vpop.f32.mrb[2].mxu1  ;;  %v334_v52 = vadd.f32 %v326_v53, %v55_v59  ;;  %v5743_v59 = vld [vmem:[#allocation18_spill] sm:$0xff] }
  0xfa   :  { %2598 = vtanh.f32 %v335_v0  ;;  %v329_v61 = vpop.f32.mrb[3].mxu1 }
  0xfb   :  { %2600 = vtanh.f32 %v339_v56  ;;  %v344_v51 = vmul.f32 0.5, %v334_v52 }
  0xfc   :  { %2602 = vtanh.f32 %v333_v55 }
  0xfd   :  { %2604 = vtanh.f32 %v344_v51  ;;  %v5742_v51 = vld [vmem:[#allocation17_spill] sm:$0xff] }
 0x104   :  { %v2599_v49 = vpop.eup %2598 }
 0x105   :  { %v2601_v57 = vpop.eup %2600  ;;  %v337_v60 = vmul.f32 0.5, %v2599_v49  ;;  %v5732_v49 = vmov 0  }
 0x106   :  { %v2603_v62 = vpop.eup %2602  ;;  %v341_v58 = vmul.f32 0.5, %v2601_v57  ;;  %v5744_v57 = vld [vmem:[#allocation19_spill] sm:$0xff] }
 0x107   :  { %v338_v1 = vadd.f32 0.5, %v337_v60  ;;  %v2605_v56 = vpop.eup %2604  ;;  %v5745_v60 = vld [vmem:[#allocation20_spill] sm:$0xff] }
 0x108   :  { %v342_v4 = vadd.f32 0.5, %v341_v58  ;;  %v346_v37 = vmul.f32 0.5, %v2605_v56  ;;  %v5747_v58 = vld [vmem:[#allocation22_spill] sm:$0xff]  ;;  %v5752_v56 = vld [vmem:[#allocation27_spill] sm:$0xff] }
 0x109   :  { %v349_v63 = vmul.f32 %v2603_v62, %v338_v1  ;;  %v5746_v62 = vld [vmem:[#allocation21_spill] sm:$0xff]  ;;  %v5748_v1 = vld [vmem:[#allocation23_spill] sm:$0xff] }
 0x10a   :  { %v348_v0 = vmul.f32 0.0, %v342_v4  ;;  %v347_v61 = vadd.f32 0.5, %v346_v37  ;;  %v5749_v4 = vld [vmem:[#allocation24_spill] sm:$0xff] }
 0x10b   :  { %v5753_v37 = vld [vmem:[#allocation28_spill] sm:$0xff] }
 0x10c   :  { %v3569_v54 = vadd.f32 %v349_v63, %v348_v0  ;;  %v5750_v63 = vld [vmem:[#allocation25_spill] sm:$0xff]  ;;  %v5751_v0 = vld [vmem:[#allocation26_spill] sm:$0xff] }
 0x10e   :  { %2606 = vtanh.f32 %v3569_v54 }
 0x118   :  { %v2607_v55 = vpop.eup %2606 }
 0x119   :  { %v352_v53 = vmul.f32 %v2607_v55, %v347_v61  ;;  %v5754_v61 = vld [vmem:[#allocation29_spill] sm:$0xff]  ;;  %v5755_v55 = vld [vmem:[#allocation30_spill] sm:$0xff] }
 0x11b   :  { %v353_v52 = vpack.c.bf16 %v352_v53, %v352_v53  ;;  %v5756_v53 = vld [vmem:[#allocation31_spill] sm:$0xff] }
 0x11d   :  { %772 = vmatmul.mubr.bf16.vlgmr.msra.gmra.mrb[4].mxu0 %v353_v52  ;;  %813 = vmatmul.mubr.bf16.vlgmr.msra.gmra.mrb[4].mxu1 %v353_v52 }
 0x11e   :  { %845 = vmatpush1.bf16.msra.mxu0 %v2987_v2  ;;  %886 = vmatpush1.bf16.msra.mxu1 %v3009_v6  ;;  %v5733_v2 = vld [vmem:[#allocation8_spill] sm:$0xff] }
 0x11f   :  { %846 = vmatprep.subr.bf16.mxu0 %v2993_v3  ;;  %887 = vmatprep.subr.bf16.mxu1 %v3021_v8  ;;  %v5734_v3 = vld [vmem:[#allocation9_spill] sm:$0xff]  ;;  %v5736_v6 = vld [vmem:[#allocation12_spill] sm:$0xff] }
 0x120   :  { %876 = vmatprep.mubr.bf16.mxu0 %v5732_v49  ;;  %917 = vmatprep.mubr.bf16.mxu1 %v5732_v49  ;;  %v5738_v8 = vld [vmem:[#allocation13_spill] sm:$0xff] }
 0x122   :  { %847 = vmatpush1.bf16.msra.mxu0 %v3004_v5  ;;  %888 = vmatpush1.bf16.msra.mxu1 %v3027_v9  ;;  %v5735_v5 = vld [vmem:[#allocation10_spill] sm:$0xff] }
 0x123   :  { %848 = vmatprep.subr.bf16.mxu0 %v3015_v7  ;;  %889 = vmatprep.subr.bf16.mxu1 %v3045_v12  ;;  %v5737_v7 = vld [vmem:[#allocation11_spill] sm:$0xff]  ;;  %v5739_v9 = vld [vmem:[#allocation14_spill] sm:$0xff] }
 0x126   :  { %849 = vmatpush1.bf16.msra.mxu0 %v3034_v10  ;;  %890 = vmatpush1.bf16.msra.mxu1 %v3051_v13  ;;  %v5740_v10 = vld [vmem:[#allocation16_spill] sm:$0xff] }
 0x127   :  { %850 = vmatprep.subr.bf16.mxu0 %v3040_v11  ;;  %891 = vmatprep.subr.bf16.mxu1 %v3063_v15  ;;  %v5741_v11 = vld [vmem:[#allocation15_spill] sm:$0xff] }
 0x12a   :  { %851 = vmatpush1.bf16.msra.mxu0 %v3058_v14  ;;  %892 = vmatpush1.bf16.msra.mxu1 %v3080_v18 }
 0x12b   :  { %852 = vmatprep.subr.bf16.mxu0 %v3069_v16  ;;  %893 = vmatprep.subr.bf16.mxu1 %v3087_v19 }
 0x12e   :  { %853 = vmatpush1.bf16.msra.mxu0 %v3075_v17  ;;  %894 = vmatpush1.bf16.msra.mxu1 %v3099_v21 }
 0x12f   :  { %854 = vmatprep.subr.bf16.mxu0 %v3093_v20  ;;  %895 = vmatprep.subr.bf16.mxu1 %v3111_v23 }
 0x132   :  { %855 = vmatpush1.bf16.msra.mxu0 %v3106_v22  ;;  %896 = vmatpush1.bf16.msra.mxu1 %v3123_v25 }
 0x133   :  { %856 = vmatprep.subr.bf16.mxu0 %v3117_v24  ;;  %897 = vmatprep.subr.bf16.mxu1 %v3135_v27 }
 0x136   :  { %857 = vmatpush1.bf16.msra.mxu0 %v3130_v26  ;;  %898 = vmatpush1.bf16.msra.mxu1 %v3152_v30 }
 0x137   :  { %858 = vmatprep.subr.bf16.mxu0 %v3141_v28  ;;  %899 = vmatprep.subr.bf16.mxu1 %v3159_v31 }
 0x13a   :  { %859 = vmatpush1.bf16.msra.mxu0 %v3147_v29  ;;  %900 = vmatpush1.bf16.msra.mxu1 %v3171_v33 }
 0x13b   :  { %950 = vmatprep.subr.bf16.mxu0 %v3165_v32  ;;  %991 = vmatprep.subr.bf16.mxu1 %v3178_v34 }
 0x13d   :  { %877 = vmatmul.mubr.bf16.vlgmr.msra.gmra.mrb[8].mxu0 %v353_v52  ;;  %918 = vmatmul.mubr.bf16.vlgmr.msra.gmra.mrb[8].mxu1 %v353_v52  ;;  %v5757_v52 = vld [vmem:[#allocation32_spill] sm:$0xff] }
 0x13e   :  { %951 = vmatpush1.bf16.msra.mxu0 %v3183_v35  ;;  %992 = vmatpush1.bf16.msra.mxu1 %v3195_v38 }
 0x13f   :  { %952 = vmatprep.subr.bf16.mxu0 %v3189_v36  ;;  %993 = vmatprep.subr.bf16.mxu1 %v3200_v39 }
 0x142   :  { %953 = vmatpush1.bf16.msra.mxu0 %v3207_v40  ;;  %994 = vmatpush1.bf16.msra.mxu1 %v3218_v42 }
 0x143   :  { %954 = vmatprep.subr.bf16.mxu0 %v3213_v41  ;;  %995 = vmatprep.subr.bf16.mxu1 %v3224_v43 }
 0x146   :  { %955 = vmatpush1.bf16.msra.mxu0 %v3231_v44  ;;  %996 = vmatpush1.bf16.msra.mxu1 %v3242_v46 }
 0x147   :  { %956 = vmatprep.subr.bf16.mxu0 %v3236_v45  ;;  %997 = vmatprep.subr.bf16.mxu1 %v3247_v47 }
 0x14a   :  { %957 = vmatpush1.bf16.msra.mxu0 %v3252_v48  ;;  %998 = vmatpush1.bf16.msra.mxu1 %v3266_v50 }
 0x14b   :  { %958 = vmatprep.subr.bf16.mxu0 %v5733_v2  ;;  %999 = vmatprep.subr.bf16.mxu1 %v5734_v3 }
 0x14e   :  { %959 = vmatpush1.bf16.msra.mxu0 %v5735_v5  ;;  %1000 = vmatpush1.bf16.msra.mxu1 %v5736_v6 }
 0x14f   :  { %960 = vmatprep.subr.bf16.mxu0 %v5737_v7  ;;  %1001 = vmatprep.subr.bf16.mxu1 %v5738_v8 }
 0x152   :  { %961 = vmatpush1.bf16.msra.mxu0 %v5739_v9  ;;  %1002 = vmatpush1.bf16.msra.mxu1 %v5740_v10 }
 0x153   :  { %962 = vmatprep.subr.bf16.mxu0 %v5741_v11  ;;  %1003 = vmatprep.subr.bf16.mxu1 %v5742_v51 }
 0x156   :  { %963 = vmatpush1.bf16.msra.mxu0 %v5743_v59  ;;  %1004 = vmatpush1.bf16.msra.mxu1 %v5744_v57 }
 0x157   :  { %964 = vmatprep.subr.bf16.mxu0 %v5745_v60  ;;  %1005 = vmatprep.subr.bf16.mxu1 %v5746_v62 }
 0x15a   :  { %965 = vmatpush1.bf16.msra.mxu0 %v5747_v58  ;;  %1006 = vmatpush1.bf16.msra.mxu1 %v5748_v1  ;;  %v5758_v58 = vld [vmem:[#allocation33_spill] sm:$0xff]  ;;  %v5759_v1 = vld [vmem:[#allocation34_spill] sm:$0xff] }
 0x15b   :  { %966 = vmatprep.subr.bf16.mxu0 %v5749_v4  ;;  %1007 = vmatprep.subr.bf16.mxu1 %v5750_v63  ;;  %v5760_v4 = vld [vmem:[#allocation35_spill] sm:$0xff]  ;;  %v5761_v63 = vld [vmem:[#allocation36_spill] sm:$0xff] }
 0x15e   :  { %967 = vmatpush1.bf16.msra.mxu0 %v5751_v0  ;;  %1008 = vmatpush1.bf16.msra.mxu1 %v5752_v56  ;;  %v5762_v0 = vld [vmem:[#allocation37_spill] sm:$0xff]  ;;  %v5763_v56 = vld [vmem:[#allocation38_spill] sm:$0xff] }
 0x15f   :  { %968 = vmatprep.subr.bf16.mxu0 %v5753_v37  ;;  %1009 = vmatprep.subr.bf16.mxu1 %v5754_v61  ;;  %v5764_v37 = vld [vmem:[#allocation39_spill] sm:$0xff]  ;;  %v5765_v61 = vld [vmem:[#allocation40_spill] sm:$0xff] }
 0x162   :  { %969 = vmatpush1.bf16.msra.mxu0 %v5755_v55  ;;  %1010 = vmatpush1.bf16.msra.mxu1 %v5756_v53  ;;  %v5766_v55 = vld [vmem:[#allocation41_spill] sm:$0xff]  ;;  %v5767_v53 = vld [vmem:[#allocation42_spill] sm:$0xff] }
 0x163   :  { %970 = vmatprep.subr.bf16.mxu0 %v5757_v52  ;;  %1011 = vmatprep.subr.bf16.mxu1 %v5758_v58  ;;  %v5768_v52 = vld [vmem:[#allocation43_spill] sm:$0xff]  ;;  %v5769_v58 = vld [vmem:[#allocation44_spill] sm:$0xff] }
 0x166   :  { %971 = vmatpush1.bf16.msra.mxu0 %v5759_v1  ;;  %1012 = vmatpush1.bf16.msra.mxu1 %v5760_v4  ;;  %v5770_v1 = vld [vmem:[#allocation45_spill] sm:$0xff]  ;;  %v5771_v4 = vld [vmem:[#allocation46_spill] sm:$0xff] }
 0x167   :  { %972 = vmatprep.subr.bf16.mxu0 %v5761_v63  ;;  %1013 = vmatprep.subr.bf16.mxu1 %v5762_v0  ;;  %v5772_v63 = vld [vmem:[#allocation47_spill] sm:$0xff]  ;;  %v5773_v0 = vld [vmem:[#allocation48_spill] sm:$0xff] }
 0x16a   :  { %973 = vmatpush1.bf16.msra.mxu0 %v5763_v56  ;;  %1014 = vmatpush1.bf16.msra.mxu1 %v5764_v37  ;;  %v5774_v56 = vld [vmem:[#allocation49_spill] sm:$0xff]  ;;  %v5775_v37 = vld [vmem:[#allocation50_spill] sm:$0xff] }
 0x16b   :  { %974 = vmatprep.subr.bf16.mxu0 %v5765_v61  ;;  %1015 = vmatprep.subr.bf16.mxu1 %v5766_v55  ;;  %v5776_v61 = vld [vmem:[#allocation51_spill] sm:$0xff]  ;;  %v5777_v55 = vld [vmem:[#allocation52_spill] sm:$0xff] }
 0x16e   :  { %975 = vmatpush1.bf16.msra.mxu0 %v5767_v53  ;;  %1016 = vmatpush1.bf16.msra.mxu1 %v5768_v52  ;;  %v5778_v53 = vld [vmem:[#allocation53_spill] sm:$0xff]  ;;  %v5779_v52 = vld [vmem:[#allocation54_spill] sm:$0xff] }
 0x16f   :  { %976 = vmatprep.subr.bf16.mxu0 %v5769_v58  ;;  %1017 = vmatprep.subr.bf16.mxu1 %v5770_v1  ;;  %v5780_v58 = vld [vmem:[#allocation55_spill] sm:$0xff]  ;;  %v5781_v1 = vld [vmem:[#allocation6_spill] sm:$0xff] }
 0x172   :  { %977 = vmatpush1.bf16.msra.mxu0 %v5771_v4  ;;  %1018 = vmatpush1.bf16.msra.mxu1 %v5772_v63  ;;  %v5782_v4 = vld [vmem:[#allocation7_spill] sm:$0xff]  ;;  %v28_v63 = vlaneseq }
 0x173   :  { %978 = vmatprep.subr.bf16.mxu0 %v5773_v0  ;;  %1019 = vmatprep.subr.bf16.mxu1 %v5774_v56 }
 0x174   :  { %v29_v0 = vshrl.u32 %v28_v63, 7 }
 0x176   :  { %979 = vmatpush1.bf16.msra.mxu0 %v5775_v37  ;;  %1020 = vmatpush1.bf16.msra.mxu1 %v5776_v61  ;;  %v30_v62 = vsub.s32 0, %v29_v0  ;;  %v26_v37 = vld [vmem:[%s5402_s3] sm:$0xf]  ;;  %v34_v61 = vsub.s32 1, %v29_v0  ;;  %v42_v57 = vsub.s32 3, %v29_v0 }
 0x177   :  { %980 = vmatprep.subr.bf16.mxu0 %v5777_v55  ;;  %1021 = vmatprep.subr.bf16.mxu1 %v5778_v53  ;;  %v38_v55 = vsub.s32 2, %v29_v0 }
 0x178   :  { %v3673_v56 = vrot.slane %v26_v37, %v30_v62  ;;  %v3675_v53 = vrot.slane %v26_v37, %v34_v61  ;;  %v3682_v7 = vrot.slane %v26_v37, %v42_v57 }
 0x17a   :  { %981 = vmatpush1.bf16.msra.mxu0 %v5779_v52  ;;  %1022 = vmatpush1.bf16.msra.mxu1 %v5780_v58  ;;  %5783 = vst [vmem:[#allocation8_spill] sm:$0xff] %v3673_v56  ;;  %5785 = vst [vmem:[#allocation10_spill] sm:$0xff] %v3682_v7 }
 0x17b   :  { %1055 = vmatprep.subr.bf16.mxu0 %v5781_v1  ;;  %1096 = vmatprep.subr.bf16.mxu1 %v5782_v4  ;;  %v3678_v1 = vrot.slane %v26_v37, %v38_v55 }
 0x17d   :  { %5784 = vst [vmem:[#allocation9_spill] sm:$0xff] %v3678_v1 }
 0x1f0   :  { %v773_v52 = vpop.f32.mrb[4].mxu0  ;;  %v814_v60 = vpop.f32.mrb[4].mxu1 }
 0x1f1   :  { %v774_v58 = vadd.f32 %v773_v52, %v3673_v56  ;;  %v775_v4 = vpop.f32.mrb[5].mxu0  ;;  %v816_v63 = vpop.f32.mrb[5].mxu1  ;;  %v815_v61 = vadd.f32 %v814_v60, %v3678_v1  ;;  %v2424_v60 = vld [vmem:[%s5401_s0 + $0x20] sm:$0xff] }
 0x1f2   :  { %v776_v59 = vadd.f32 %v775_v4, %v3675_v53  ;;  %v777_v51 = vpop.f32.mrb[6].mxu0  ;;  %v818_v11 = vpop.f32.mrb[6].mxu1  ;;  %v817_v55 = vadd.f32 %v816_v63, %v3682_v7 }
 0x1f3   :  { %v821_v10 = vmul.f32 0.5, %v774_v58  ;;  %v778_v9 = vpop.f32.mrb[7].mxu0  ;;  %v819_v62 = vpop.f32.mrb[7].mxu1 }
 0x1f4   :  { %v825_v8 = vmul.f32 0.5, %v776_v59  ;;  %v830_v52 = vmul.f32 0.5, %v817_v55 }
 0x1f5   :  { %2608 = vtanh.f32 %v821_v10 }
 0x1f6   :  { %2610 = vtanh.f32 %v825_v8 }
 0x1f7   :  { %2612 = vtanh.f32 %v815_v61 }
 0x1f8   :  { %2614 = vtanh.f32 %v830_v52  ;;  %v2426_v52 = vld [vmem:[%s5401_s0 + $0x30] sm:$0xff] }
 0x1ff   :  { %v2609_v0 = vpop.eup %2608 }
 0x200   :  { %v2611_v56 = vpop.eup %2610  ;;  %v823_v6 = vmul.f32 0.5, %v2609_v0 }
 0x201   :  { %v827_v4 = vmul.f32 0.5, %v2611_v56  ;;  %v2613_v51 = vpop.eup %2612  ;;  %v2425_v56 = vld [vmem:[%s5401_s0 + $0x28] sm:$0xff] }
 0x202   :  { %v824_v11 = vadd.f32 0.5, %v823_v6  ;;  %v2615_v57 = vpop.eup %2614 }
 0x203   :  { %v828_v9 = vadd.f32 0.5, %v827_v4  ;;  %v832_v8 = vmul.f32 0.5, %v2615_v57 }
 0x204   :  { %v835_v58 = vmul.f32 %v2613_v51, %v824_v11 }
 0x205   :  { %v834_v59 = vmul.f32 0.0, %v828_v9  ;;  %v833_v55 = vadd.f32 0.5, %v832_v8  ;;  %v2427_v8 = vld [vmem:[%s5401_s0 + $0x38] sm:$0xff] }
 0x207   :  { %v3685_v10 = vadd.f32 %v835_v58, %v834_v59 }
 0x209   :  { %5786 = vst [vmem:[#allocation6_spill] sm:$0xff] %v3685_v10  ;;  %2616 = vtanh.f32 %v3685_v10 }
 0x210   :  { %v878_v37 = vpop.f32.mrb[8].mxu0  ;;  %v919_v6 = vpop.f32.mrb[8].mxu1 }
 0x211   :  { %v926_v63 = vadd.f32 %v2424_v60, %v878_v37  ;;  %v880_v62 = vpop.f32.mrb[9].mxu0  ;;  %v921_v61 = vpop.f32.mrb[9].mxu1  ;;  %v928_v7 = vadd.f32 %v2426_v52, %v919_v6 }
 0x212   :  { %v927_v0 = vadd.f32 %v2425_v56, %v880_v62  ;;  %v882_v4 = vpop.f32.mrb[10].mxu0  ;;  %v923_v11 = vpop.f32.mrb[10].mxu1  ;;  %v929_v56 = vadd.f32 %v2427_v8, %v921_v61  ;;  %v3707_v8 = vld [vmem:[%s5399_s1] ss:$16 sps:$4 sm:$0xff]  }
 0x213   :  { %v2617_v51 = vpop.eup %2616  ;;  %v930_v9 = vmul.f32 0.5, %v926_v63  ;;  %v883_v58 = vpop.f32.mrb[11].mxu0 }
 0x214   :  { %v924_v59 = vpop.f32.mrb[11].mxu1  ;;  %v934_v57 = vmul.f32 0.5, %v927_v0  ;;  %v838_v10 = vmul.f32 %v2617_v51, %v833_v55  ;;  %v939_v37 = vmul.f32 0.5, %v929_v56  ;;  %v3725_v56 = vld [vmem:[%s5399_s1 + $0x2c] ss:$16 sps:$4 sm:$0xff]  }
 0x215   :  { %2618 = vtanh.f32 %v930_v9 }
 0x216   :  { %2620 = vtanh.f32 %v934_v57  ;;  %v949_v60 = vpack.c.bf16 %v838_v10, %v838_v10 }
 0x217   :  { %2622 = vtanh.f32 %v928_v7 }
 0x218   :  { %982 = vmatprep.mubr.bf16.mxu0 %v949_v60  ;;  %1023 = vmatprep.mubr.bf16.mxu1 %v949_v60  ;;  %2624 = vtanh.f32 %v939_v37  ;;  %v3719_v60 = vld [vmem:[%s5399_s1 + $0x24] ss:$16 sps:$4 sm:$0xff]   ;;  %v3733_v37 = vld [vmem:[%s5399_s1 + $0x20] ss:$16 sps:$4 sm:$0xff]  }
 0x21f   :  { %v2619_v62 = vpop.eup %2618 }
 0x220   :  { %v2621_v4 = vpop.eup %2620  ;;  %v932_v63 = vmul.f32 0.5, %v2619_v62  ;;  %v3739_v62 = vld [vmem:[%s5399_s1 + $0x28] ss:$16 sps:$4 sm:$0xff]  }
 0x221   :  { %v936_v11 = vmul.f32 0.5, %v2621_v4  ;;  %v2623_v55 = vpop.eup %2622  ;;  %v3745_v4 = vld [vmem:[%s5399_s1 + $0x44] ss:$16 sps:$4 sm:$0xff]  }
 0x222   :  { %v933_v0 = vadd.f32 0.5, %v932_v63  ;;  %v2625_v10 = vpop.eup %2624  ;;  %v3752_v63 = vld [vmem:[%s5399_s1 + $0x40] ss:$16 sps:$4 sm:$0xff]  }
 0x223   :  { %v937_v51 = vadd.f32 0.5, %v936_v11  ;;  %v941_v58 = vmul.f32 0.5, %v2625_v10  ;;  %v3759_v11 = vld [vmem:[%s5399_s1 + $0x64] ss:$16 sps:$4 sm:$0xff]  }
 0x224   :  { %v944_v6 = vmul.f32 %v2623_v55, %v933_v0  ;;  %v5827_v0 = vld [vmem:[#allocation51_spill] sm:$0xff]  ;;  %v5828_v55 = vld [vmem:[#allocation52_spill] sm:$0xff] }
 0x225   :  { %v943_v52 = vmul.f32 %v937_v51, %v3569_v54  ;;  %v942_v7 = vadd.f32 0.5, %v941_v58  ;;  %v3713_v54 = vld [vmem:[%s5399_s1 + $0x8] ss:$16 sps:$4 sm:$0xff]   ;;  %v3848_v10 = vld [vmem:[%s5399_s1 + $0x4] ss:$16 sps:$4 sm:$0xff]  }
 0x226   :  { %v5829_v51 = vld [vmem:[#allocation53_spill] sm:$0xff]  ;;  %5832 = vst [vmem:[#allocation7_spill] sm:$0xff] %v3848_v10 }
 0x227   :  { %v3701_v9 = vadd.f32 %v944_v6, %v943_v52  ;;  %v5830_v6 = vld [vmem:[#allocation54_spill] sm:$0xff]  ;;  %v5831_v52 = vld [vmem:[#allocation55_spill] sm:$0xff] }
 0x228   :  { %v3854_v58 = vld [vmem:[%s5399_s1 + $0xc] ss:$16 sps:$4 sm:$0xff]  }
 0x229   :  { %2626 = vtanh.f32 %v3701_v9 }
 0x233   :  { %v2627_v61 = vpop.eup %2626 }
 0x234   :  { %v947_v59 = vmul.f32 %v2627_v61, %v942_v7 }
 0x236   :  { %v948_v57 = vpack.c.bf16 %v947_v59, %v947_v59  ;;  %v5834_v59 = vld [vmem:[#allocation8_spill] sm:$0xff] }
 0x238   :  { %983 = vmatmul.mubr.bf16.vlgmr.msra.gmra.mrb[12].mxu0 %v948_v57  ;;  %1024 = vmatmul.mubr.bf16.vlgmr.msra.gmra.mrb[12].mxu1 %v948_v57 }
 0x239   :  { %1056 = vmatpush1.bf16.msra.mxu0 %v3707_v8  ;;  %1097 = vmatpush1.bf16.msra.mxu1 %v3713_v54 }
 0x23a   :  { %1057 = vmatprep.subr.bf16.mxu0 %v3719_v60  ;;  %1098 = vmatprep.subr.bf16.mxu1 %v3725_v56 }
 0x23b   :  { %1087 = vmatprep.mubr.bf16.mxu0 %v5732_v49  ;;  %1128 = vmatprep.mubr.bf16.mxu1 %v5732_v49 }
 0x23d   :  { %1058 = vmatpush1.bf16.msra.mxu0 %v3733_v37  ;;  %1099 = vmatpush1.bf16.msra.mxu1 %v3739_v62 }
 0x23e   :  { %1059 = vmatprep.subr.bf16.mxu0 %v3745_v4  ;;  %1100 = vmatprep.subr.bf16.mxu1 %v3045_v12  ;;  %v5787_v12 = vld [vmem:[#allocation12_spill] sm:$0xff] }
 0x23f   :  { %5833 = vst [vmem:[#allocation12_spill] sm:$0xff] %v3854_v58 }
 0x241   :  { %1060 = vmatpush1.bf16.msra.mxu0 %v3752_v63  ;;  %1101 = vmatpush1.bf16.msra.mxu1 %v3051_v13  ;;  %v5788_v13 = vld [vmem:[#allocation11_spill] sm:$0xff] }
 0x242   :  { %1061 = vmatprep.subr.bf16.mxu0 %v3759_v11  ;;  %1102 = vmatprep.subr.bf16.mxu1 %v3063_v15  ;;  %v5790_v15 = vld [vmem:[#allocation14_spill] sm:$0xff] }
 0x245   :  { %1062 = vmatpush1.bf16.msra.mxu0 %v3058_v14  ;;  %1103 = vmatpush1.bf16.msra.mxu1 %v3080_v18  ;;  %v5789_v14 = vld [vmem:[#allocation13_spill] sm:$0xff] }
 0x246   :  { %1063 = vmatprep.subr.bf16.mxu0 %v3069_v16  ;;  %1104 = vmatprep.subr.bf16.mxu1 %v3087_v19  ;;  %v5791_v16 = vld [vmem:[#allocation16_spill] sm:$0xff]  ;;  %v5793_v18 = vld [vmem:[#allocation17_spill] sm:$0xff]  ;;  %v5794_v19 = vld [vmem:[#allocation18_spill] sm:$0xff] }
 0x249   :  { %1064 = vmatpush1.bf16.msra.mxu0 %v3075_v17  ;;  %1105 = vmatpush1.bf16.msra.mxu1 %v3099_v21  ;;  %v5792_v17 = vld [vmem:[#allocation15_spill] sm:$0xff]  ;;  %v5796_v21 = vld [vmem:[#allocation20_spill] sm:$0xff] }
 0x24a   :  { %1065 = vmatprep.subr.bf16.mxu0 %v3093_v20  ;;  %1106 = vmatprep.subr.bf16.mxu1 %v3111_v23  ;;  %v5795_v20 = vld [vmem:[#allocation19_spill] sm:$0xff]  ;;  %v5798_v23 = vld [vmem:[#allocation22_spill] sm:$0xff] }
 0x24d   :  { %1066 = vmatpush1.bf16.msra.mxu0 %v3106_v22  ;;  %1107 = vmatpush1.bf16.msra.mxu1 %v3123_v25  ;;  %v5797_v22 = vld [vmem:[#allocation21_spill] sm:$0xff]  ;;  %v5800_v25 = vld [vmem:[#allocation24_spill] sm:$0xff] }
 0x24e   :  { %1067 = vmatprep.subr.bf16.mxu0 %v3117_v24  ;;  %1108 = vmatprep.subr.bf16.mxu1 %v3135_v27  ;;  %v5799_v24 = vld [vmem:[#allocation23_spill] sm:$0xff]  ;;  %v5802_v27 = vld [vmem:[#allocation26_spill] sm:$0xff] }
 0x251   :  { %1068 = vmatpush1.bf16.msra.mxu0 %v3130_v26  ;;  %1109 = vmatpush1.bf16.msra.mxu1 %v3152_v30  ;;  %v5801_v26 = vld [vmem:[#allocation25_spill] sm:$0xff] }
 0x252   :  { %1069 = vmatprep.subr.bf16.mxu0 %v3141_v28  ;;  %1110 = vmatprep.subr.bf16.mxu1 %v3159_v31  ;;  %v5803_v28 = vld [vmem:[#allocation27_spill] sm:$0xff]  ;;  %v5805_v30 = vld [vmem:[#allocation29_spill] sm:$0xff]  ;;  %v5806_v31 = vld [vmem:[#allocation30_spill] sm:$0xff] }
 0x255   :  { %1070 = vmatpush1.bf16.msra.mxu0 %v3147_v29  ;;  %1111 = vmatpush1.bf16.msra.mxu1 %v3171_v33  ;;  %v5804_v29 = vld [vmem:[#allocation28_spill] sm:$0xff] }
 0x256   :  { %1161 = vmatprep.subr.bf16.mxu0 %v3165_v32  ;;  %1202 = vmatprep.subr.bf16.mxu1 %v3178_v34  ;;  %v5807_v32 = vld [vmem:[#allocation31_spill] sm:$0xff]  ;;  %v5808_v33 = vld [vmem:[#allocation32_spill] sm:$0xff]  ;;  %v5809_v34 = vld [vmem:[#allocation33_spill] sm:$0xff] }
 0x258   :  { %1088 = vmatmul.mubr.bf16.vlgmr.msra.gmra.mrb[16].mxu0 %v948_v57  ;;  %1129 = vmatmul.mubr.bf16.vlgmr.msra.gmra.mrb[16].mxu1 %v948_v57 }
 0x259   :  { %1162 = vmatpush1.bf16.msra.mxu0 %v3183_v35  ;;  %1203 = vmatpush1.bf16.msra.mxu1 %v3195_v38  ;;  %v5810_v35 = vld [vmem:[#allocation34_spill] sm:$0xff]  ;;  %v5812_v38 = vld [vmem:[#allocation36_spill] sm:$0xff] }
 0x25a   :  { %1163 = vmatprep.subr.bf16.mxu0 %v3189_v36  ;;  %1204 = vmatprep.subr.bf16.mxu1 %v3200_v39  ;;  %v5811_v36 = vld [vmem:[#allocation35_spill] sm:$0xff]  ;;  %v5813_v39 = vld [vmem:[#allocation37_spill] sm:$0xff] }
 0x25d   :  { %1164 = vmatpush1.bf16.msra.mxu0 %v3207_v40  ;;  %1205 = vmatpush1.bf16.msra.mxu1 %v3218_v42  ;;  %v5814_v40 = vld [vmem:[#allocation38_spill] sm:$0xff]  ;;  %v5816_v42 = vld [vmem:[#allocation40_spill] sm:$0xff] }
 0x25e   :  { %1165 = vmatprep.subr.bf16.mxu0 %v3213_v41  ;;  %1206 = vmatprep.subr.bf16.mxu1 %v3224_v43  ;;  %v5815_v41 = vld [vmem:[#allocation39_spill] sm:$0xff]  ;;  %v5817_v43 = vld [vmem:[#allocation41_spill] sm:$0xff] }
 0x261   :  { %1166 = vmatpush1.bf16.msra.mxu0 %v3231_v44  ;;  %1207 = vmatpush1.bf16.msra.mxu1 %v3242_v46  ;;  %v5818_v44 = vld [vmem:[#allocation42_spill] sm:$0xff]  ;;  %v5820_v46 = vld [vmem:[#allocation44_spill] sm:$0xff] }
 0x262   :  { %1167 = vmatprep.subr.bf16.mxu0 %v3236_v45  ;;  %1208 = vmatprep.subr.bf16.mxu1 %v3247_v47  ;;  %v5819_v45 = vld [vmem:[#allocation43_spill] sm:$0xff]  ;;  %v5821_v47 = vld [vmem:[#allocation45_spill] sm:$0xff] }
 0x265   :  { %1168 = vmatpush1.bf16.msra.mxu0 %v3252_v48  ;;  %1209 = vmatpush1.bf16.msra.mxu1 %v3266_v50  ;;  %v5822_v48 = vld [vmem:[#allocation46_spill] sm:$0xff]  ;;  %v5823_v50 = vld [vmem:[#allocation47_spill] sm:$0xff] }
 0x266   :  { %1169 = vmatprep.subr.bf16.mxu0 %v5733_v2  ;;  %1210 = vmatprep.subr.bf16.mxu1 %v5734_v3  ;;  %v5824_v2 = vld [vmem:[#allocation48_spill] sm:$0xff]  ;;  %v5825_v3 = vld [vmem:[#allocation49_spill] sm:$0xff] }
 0x269   :  { %1170 = vmatpush1.bf16.msra.mxu0 %v5735_v5  ;;  %1211 = vmatpush1.bf16.msra.mxu1 %v5787_v12  ;;  %v5826_v5 = vld [vmem:[#allocation50_spill] sm:$0xff] }
 0x26a   :  { %1171 = vmatprep.subr.bf16.mxu0 %v5788_v13  ;;  %1212 = vmatprep.subr.bf16.mxu1 %v5789_v14 }
 0x26d   :  { %1172 = vmatpush1.bf16.msra.mxu0 %v5790_v15  ;;  %1213 = vmatpush1.bf16.msra.mxu1 %v5791_v16 }
 0x26e   :  { %1173 = vmatprep.subr.bf16.mxu0 %v5792_v17  ;;  %1214 = vmatprep.subr.bf16.mxu1 %v5793_v18 }
 0x271   :  { %1174 = vmatpush1.bf16.msra.mxu0 %v5794_v19  ;;  %1215 = vmatpush1.bf16.msra.mxu1 %v5795_v20 }
 0x272   :  { %1175 = vmatprep.subr.bf16.mxu0 %v5796_v21  ;;  %1216 = vmatprep.subr.bf16.mxu1 %v5797_v22  ;;  %v5835_v22 = vld [vmem:[#allocation10_spill] sm:$0xff] }
 0x275   :  { %1176 = vmatpush1.bf16.msra.mxu0 %v5798_v23  ;;  %1217 = vmatpush1.bf16.msra.mxu1 %v5799_v24 }
 0x276   :  { %1177 = vmatprep.subr.bf16.mxu0 %v5800_v25  ;;  %1218 = vmatprep.subr.bf16.mxu1 %v5801_v26 }
 0x279   :  { %1178 = vmatpush1.bf16.msra.mxu0 %v5802_v27  ;;  %1219 = vmatpush1.bf16.msra.mxu1 %v5803_v28 }
 0x27a   :  { %1179 = vmatprep.subr.bf16.mxu0 %v5804_v29  ;;  %1220 = vmatprep.subr.bf16.mxu1 %v5805_v30 }
 0x27d   :  { %1180 = vmatpush1.bf16.msra.mxu0 %v5806_v31  ;;  %1221 = vmatpush1.bf16.msra.mxu1 %v5807_v32 }
 0x27e   :  { %1181 = vmatprep.subr.bf16.mxu0 %v5808_v33  ;;  %1222 = vmatprep.subr.bf16.mxu1 %v5809_v34  ;;  %v5836_v33 = vld [vmem:[#allocation6_spill] sm:$0xff] }
 0x281   :  { %1182 = vmatpush1.bf16.msra.mxu0 %v5810_v35  ;;  %1223 = vmatpush1.bf16.msra.mxu1 %v5811_v36 }
 0x282   :  { %1183 = vmatprep.subr.bf16.mxu0 %v5812_v38  ;;  %1224 = vmatprep.subr.bf16.mxu1 %v5813_v39  ;;  %v2428_v39 = vld [vmem:[%s5401_s0 + $0x40] sm:$0xff] }
 0x285   :  { %1184 = vmatpush1.bf16.msra.mxu0 %v5814_v40  ;;  %1225 = vmatpush1.bf16.msra.mxu1 %v5815_v41  ;;  %v2429_v40 = vld [vmem:[%s5401_s0 + $0x48] sm:$0xff] }
 0x286   :  { %1185 = vmatprep.subr.bf16.mxu0 %v5816_v42  ;;  %1226 = vmatprep.subr.bf16.mxu1 %v5817_v43 }
 0x289   :  { %1186 = vmatpush1.bf16.msra.mxu0 %v5818_v44  ;;  %1227 = vmatpush1.bf16.msra.mxu1 %v5819_v45 }
 0x28a   :  { %1187 = vmatprep.subr.bf16.mxu0 %v5820_v46  ;;  %1228 = vmatprep.subr.bf16.mxu1 %v5821_v47  ;;  %v2430_v47 = vld [vmem:[%s5401_s0 + $0x50] sm:$0xff] }
 0x28d   :  { %1188 = vmatpush1.bf16.msra.mxu0 %v5822_v48  ;;  %1229 = vmatpush1.bf16.msra.mxu1 %v5823_v50 }
 0x28e   :  { %1189 = vmatprep.subr.bf16.mxu0 %v5824_v2  ;;  %1230 = vmatprep.subr.bf16.mxu1 %v5825_v3 }
 0x291   :  { %1190 = vmatpush1.bf16.msra.mxu0 %v5826_v5  ;;  %1231 = vmatpush1.bf16.msra.mxu1 %v5827_v0 }
 0x292   :  { %1191 = vmatprep.subr.bf16.mxu0 %v5828_v55  ;;  %1232 = vmatprep.subr.bf16.mxu1 %v5829_v51 }
 0x295   :  { %1192 = vmatpush1.bf16.msra.mxu0 %v5830_v6  ;;  %1233 = vmatpush1.bf16.msra.mxu1 %v5831_v52 }
 0x296   :  { %1266 = vmatprep.subr.bf16.mxu0 %v3848_v10  ;;  %1307 = vmatprep.subr.bf16.mxu1 %v3854_v58 }
 0x30b   :  { %v984_v7 = vpop.f32.mrb[12].mxu0  ;;  %v1025_v61 = vpop.f32.mrb[12].mxu1 }
 0x30c   :  { %v985_v57 = vadd.f32 %v984_v7, %v5834_v59  ;;  %v986_v12 = vpop.f32.mrb[13].mxu0  ;;  %v1027_v13 = vpop.f32.mrb[13].mxu1  ;;  %v1026_v21 = vadd.f32 %v1025_v61, %v3678_v1  ;;  %v2431_v7 = vld [vmem:[%s5401_s0 + $0x58] sm:$0xff] }
 0x30d   :  { %v987_v14 = vadd.f32 %v986_v12, %v3675_v53  ;;  %v988_v15 = vpop.f32.mrb[14].mxu0  ;;  %v1029_v16 = vpop.f32.mrb[14].mxu1  ;;  %v1028_v23 = vadd.f32 %v1027_v13, %v5835_v22 }
 0x30e   :  { %v1032_v17 = vmul.f32 0.5, %v985_v57  ;;  %v989_v18 = vpop.f32.mrb[15].mxu0  ;;  %v1030_v19 = vpop.f32.mrb[15].mxu1 }
 0x30f   :  { %v1036_v20 = vmul.f32 0.5, %v987_v14  ;;  %v1041_v24 = vmul.f32 0.5, %v1028_v23 }
 0x310   :  { %2628 = vtanh.f32 %v1032_v17 }
 0x311   :  { %2630 = vtanh.f32 %v1036_v20 }
 0x312   :  { %2632 = vtanh.f32 %v1026_v21 }
 0x313   :  { %2634 = vtanh.f32 %v1041_v24 }
 0x31a   :  { %v2629_v25 = vpop.eup %2628 }
 0x31b   :  { %v2631_v26 = vpop.eup %2630  ;;  %v1034_v27 = vmul.f32 0.5, %v2629_v25 }
 0x31c   :  { %v1038_v28 = vmul.f32 0.5, %v2631_v26  ;;  %v2633_v30 = vpop.eup %2632 }
 0x31d   :  { %v1035_v29 = vadd.f32 0.5, %v1034_v27  ;;  %v2635_v36 = vpop.eup %2634 }
 0x31e   :  { %v1039_v31 = vadd.f32 0.5, %v1038_v28  ;;  %v1043_v38 = vmul.f32 0.5, %v2635_v36  ;;  %v3931_v36 = vld [vmem:[%s5399_s1 + $0x8c] ss:$16 sps:$4 sm:$0xff]  }
 0x31f   :  { %v1046_v32 = vmul.f32 %v2633_v30, %v1035_v29  ;;  %v3900_v30 = vld [vmem:[%s5399_s1 + $0x48] ss:$16 sps:$4 sm:$0xff]  }
 0x320   :  { %v1045_v34 = vmul.f32 %v1039_v31, %v5836_v33  ;;  %v1044_v46 = vadd.f32 0.5, %v1043_v38  ;;  %v3907_v31 = vld [vmem:[%s5399_s1 + $0x6c] ss:$16 sps:$4 sm:$0xff]   ;;  %v3919_v33 = vld [vmem:[%s5399_s1 + $0x68] ss:$16 sps:$4 sm:$0xff]  }
 0x321   :  { %v3937_v38 = vld [vmem:[%s5399_s1 + $0x80] ss:$16 sps:$4 sm:$0xff]  }
 0x322   :  { %v3862_v35 = vadd.f32 %v1046_v32, %v1045_v34  ;;  %v3913_v32 = vld [vmem:[%s5399_s1 + $0x60] ss:$16 sps:$4 sm:$0xff]   ;;  %v3925_v34 = vld [vmem:[%s5399_s1 + $0x84] ss:$16 sps:$4 sm:$0xff]  }
 0x324   :  { %2636 = vtanh.f32 %v3862_v35 }
 0x32b   :  { %v1089_v41 = vpop.f32.mrb[16].mxu0  ;;  %v1130_v42 = vpop.f32.mrb[16].mxu1 }
 0x32c   :  { %v1137_v43 = vadd.f32 %v2428_v39, %v1089_v41  ;;  %v1091_v44 = vpop.f32.mrb[17].mxu0  ;;  %v1132_v45 = vpop.f32.mrb[17].mxu1  ;;  %v1139_v52 = vadd.f32 %v2430_v47, %v1130_v42  ;;  %v3943_v39 = vld [vmem:[%s5399_s1 + $0x88] ss:$16 sps:$4 sm:$0xff]   ;;  %v3955_v41 = vld [vmem:[%s5399_s1 + $0xac] ss:$16 sps:$4 sm:$0xff]  }
 0x32d   :  { %v1138_v48 = vadd.f32 %v2429_v40, %v1091_v44  ;;  %v1093_v50 = vpop.f32.mrb[18].mxu0  ;;  %v1134_v2 = vpop.f32.mrb[18].mxu1  ;;  %v1140_v57 = vadd.f32 %v2431_v7, %v1132_v45  ;;  %v3949_v40 = vld [vmem:[%s5399_s1 + $0xa4] ss:$16 sps:$4 sm:$0xff]   ;;  %v3961_v42 = vld [vmem:[%s5399_s1 + $0xa0] ss:$16 sps:$4 sm:$0xff]  }
 0x32e   :  { %v2637_v3 = vpop.eup %2636  ;;  %v1141_v5 = vmul.f32 0.5, %v1137_v43  ;;  %v1094_v0 = vpop.f32.mrb[19].mxu0  ;;  %v3967_v43 = vld [vmem:[%s5399_s1 + $0xa8] ss:$16 sps:$4 sm:$0xff]   ;;  %v3973_v44 = vld [vmem:[%s5399_s1 + $0xc4] ss:$16 sps:$4 sm:$0xff]  }
 0x32f   :  { %v1135_v55 = vpop.f32.mrb[19].mxu1  ;;  %v1145_v51 = vmul.f32 0.5, %v1138_v48  ;;  %v1049_v6 = vmul.f32 %v2637_v3, %v1044_v46  ;;  %v1150_v12 = vmul.f32 0.5, %v1140_v57  ;;  %v3979_v45 = vld [vmem:[%s5399_s1 + $0xcc] ss:$16 sps:$4 sm:$0xff]  }
 0x330   :  { %2638 = vtanh.f32 %v1141_v5  ;;  %v3985_v46 = vld [vmem:[%s5399_s1 + $0xc0] ss:$16 sps:$4 sm:$0xff]   ;;  %v3991_v47 = vld [vmem:[%s5399_s1 + $0xc8] ss:$16 sps:$4 sm:$0xff]   ;;  %v3997_v48 = vld [vmem:[%s5399_s1 + $0xe4] ss:$16 sps:$4 sm:$0xff]  }
 0x331   :  { %2640 = vtanh.f32 %v1145_v51  ;;  %v1160_v61 = vpack.c.bf16 %v1049_v6, %v1049_v6  ;;  %v4003_v50 = vld [vmem:[%s5399_s1 + $0xec] ss:$16 sps:$4 sm:$0xff]   ;;  %v4009_v2 = vld [vmem:[%s5399_s1 + $0xe0] ss:$16 sps:$4 sm:$0xff]   ;;  %v4015_v3 = vld [vmem:[%s5399_s1 + $0xe8] ss:$16 sps:$4 sm:$0xff]  }
 0x332   :  { %2642 = vtanh.f32 %v1139_v52  ;;  %v4021_v5 = vld [vmem:[%s5400_s2 + $0x4] ss:$16 sps:$4 sm:$0xff]   ;;  %v4027_v0 = vld [vmem:[%s5400_s2 + $0xc] ss:$16 sps:$4 sm:$0xff]   ;;  %v4033_v55 = vld [vmem:[%s5400_s2] ss:$16 sps:$4 sm:$0xff]  }
 0x333   :  { %1193 = vmatprep.mubr.bf16.mxu0 %v1160_v61  ;;  %1234 = vmatprep.mubr.bf16.mxu1 %v1160_v61  ;;  %2644 = vtanh.f32 %v1150_v12  ;;  %v4039_v51 = vld [vmem:[%s5400_s2 + $0x8] ss:$16 sps:$4 sm:$0xff]   ;;  %v4045_v6 = vld [vmem:[%s5400_s2 + $0x24] ss:$16 sps:$4 sm:$0xff]   ;;  %v4051_v52 = vld [vmem:[%s5400_s2 + $0x2c] ss:$16 sps:$4 sm:$0xff]  }
 0x334   :  { %v4057_v7 = vld [vmem:[%s5400_s2 + $0x20] ss:$16 sps:$4 sm:$0xff]   ;;  %v4063_v61 = vld [vmem:[%s5400_s2 + $0x28] ss:$16 sps:$4 sm:$0xff]   ;;  %v4069_v57 = vld [vmem:[%s5400_s2 + $0x44] ss:$16 sps:$4 sm:$0xff]  }
 0x335   :  { %v4075_v12 = vld [vmem:[%s5400_s2 + $0x4c] ss:$16 sps:$4 sm:$0xff]  }
 0x33a   :  { %v2639_v13 = vpop.eup %2638 }
 0x33b   :  { %v2641_v14 = vpop.eup %2640  ;;  %v1143_v15 = vmul.f32 0.5, %v2639_v13  ;;  %v4081_v13 = vld [vmem:[%s5400_s2 + $0x40] ss:$16 sps:$4 sm:$0xff]  }
 0x33c   :  { %v1147_v16 = vmul.f32 0.5, %v2641_v14  ;;  %v2643_v18 = vpop.eup %2642  ;;  %5837 = vst [vmem:[#allocation11_spill] sm:$0xff] %v4081_v13  ;;  %v4087_v14 = vld [vmem:[%s5400_s2 + $0x48] ss:$16 sps:$4 sm:$0xff]  }
 0x33d   :  { %v1144_v17 = vadd.f32 0.5, %v1143_v15  ;;  %v2645_v24 = vpop.eup %2644  ;;  %5838 = vst [vmem:[#allocation13_spill] sm:$0xff] %v4087_v14  ;;  %v4093_v15 = vld [vmem:[%s5400_s2 + $0x64] ss:$16 sps:$4 sm:$0xff]  }
 0x33e   :  { %v1148_v19 = vadd.f32 0.5, %v1147_v16  ;;  %v1152_v25 = vmul.f32 0.5, %v2645_v24  ;;  %5839 = vst [vmem:[#allocation14_spill] sm:$0xff] %v4093_v15  ;;  %v4099_v16 = vld [vmem:[%s5400_s2 + $0x6c] ss:$16 sps:$4 sm:$0xff]  }
 0x33f   :  { %v1155_v20 = vmul.f32 %v2643_v18, %v1144_v17  ;;  %5840 = vst [vmem:[#allocation16_spill] sm:$0xff] %v4099_v16  ;;  %v4105_v17 = vld [vmem:[%s5400_s2 + $0x60] ss:$16 sps:$4 sm:$0xff]   ;;  %v4111_v18 = vld [vmem:[%s5400_s2 + $0x68] ss:$16 sps:$4 sm:$0xff]  }
 0x340   :  { %v1154_v21 = vmul.f32 %v1148_v19, %v3701_v9  ;;  %v1153_v26 = vadd.f32 0.5, %v1152_v25  ;;  %v3893_v9 = vld [vmem:[%s5399_s1 + $0x4c] ss:$16 sps:$4 sm:$0xff]   ;;  %5841 = vst [vmem:[#allocation15_spill] sm:$0xff] %v4105_v17  ;;  %5842 = vst [vmem:[#allocation17_spill] sm:$0xff] %v4111_v18 }
 0x341   :  { %v4117_v19 = vld [vmem:[%s5400_s2 + $0x84] ss:$16 sps:$4 sm:$0xff]   ;;  %v4135_v24 = vld [vmem:[%s5400_s2 + $0x88] ss:$16 sps:$4 sm:$0xff]  }
 0x342   :  { %v3878_v23 = vadd.f32 %v1155_v20, %v1154_v21  ;;  %5843 = vst [vmem:[#allocation18_spill] sm:$0xff] %v4117_v19  ;;  %v4123_v20 = vld [vmem:[%s5400_s2 + $0x8c] ss:$16 sps:$4 sm:$0xff]   ;;  %v4129_v21 = vld [vmem:[%s5400_s2 + $0x80] ss:$16 sps:$4 sm:$0xff]   ;;  %5846 = vst [vmem:[#allocation21_spill] sm:$0xff] %v4135_v24 }
 0x343   :  { %5844 = vst [vmem:[#allocation19_spill] sm:$0xff] %v4123_v20  ;;  %5845 = vst [vmem:[#allocation20_spill] sm:$0xff] %v4129_v21  ;;  %v4141_v25 = vld [vmem:[%s5400_s2 + $0xa4] ss:$16 sps:$4 sm:$0xff]  }
 0x344   :  { %2646 = vtanh.f32 %v3878_v23  ;;  %5847 = vst [vmem:[#allocation22_spill] sm:$0xff] %v4141_v25 }
 0x34e   :  { %v2647_v27 = vpop.eup %2646 }
 0x34f   :  { %v1158_v28 = vmul.f32 %v2647_v27, %v1153_v26  ;;  %v4147_v26 = vld [vmem:[%s5400_s2 + $0xac] ss:$16 sps:$4 sm:$0xff]   ;;  %v4153_v27 = vld [vmem:[%s5400_s2 + $0xa0] ss:$16 sps:$4 sm:$0xff]  }
 0x350   :  { %5848 = vst [vmem:[#allocation23_spill] sm:$0xff] %v4147_v26  ;;  %5849 = vst [vmem:[#allocation24_spill] sm:$0xff] %v4153_v27 }
 0x351   :  { %v1159_v29 = vpack.c.bf16 %v1158_v28, %v1158_v28  ;;  %v4159_v28 = vld [vmem:[%s5400_s2 + $0xa8] ss:$16 sps:$4 sm:$0xff]  }
 0x352   :  { %5850 = vst [vmem:[#allocation25_spill] sm:$0xff] %v4159_v28 }
 0x353   :  { %1194 = vmatmul.mubr.bf16.vlgmr.msra.gmra.mrb[20].mxu0 %v1159_v29  ;;  %1235 = vmatmul.mubr.bf16.vlgmr.msra.gmra.mrb[20].mxu1 %v1159_v29 }
 0x354   :  { %1267 = vmatpush1.bf16.msra.mxu0 %v3707_v8  ;;  %1308 = vmatpush1.bf16.msra.mxu1 %v3713_v54 }
 0x355   :  { %1268 = vmatprep.subr.bf16.mxu0 %v3719_v60  ;;  %1309 = vmatprep.subr.bf16.mxu1 %v3725_v56 }
 0x356   :  { %1298 = vmatprep.mubr.bf16.mxu0 %v5732_v49  ;;  %1339 = vmatprep.mubr.bf16.mxu1 %v5732_v49 }
 0x358   :  { %1269 = vmatpush1.bf16.msra.mxu0 %v3733_v37  ;;  %1310 = vmatpush1.bf16.msra.mxu1 %v3739_v62 }
 0x359   :  { %1270 = vmatprep.subr.bf16.mxu0 %v3745_v4  ;;  %1311 = vmatprep.subr.bf16.mxu1 %v3893_v9 }
 0x35c   :  { %1271 = vmatpush1.bf16.msra.mxu0 %v3752_v63  ;;  %1312 = vmatpush1.bf16.msra.mxu1 %v3900_v30 }
 0x35d   :  { %1272 = vmatprep.subr.bf16.mxu0 %v3759_v11  ;;  %1313 = vmatprep.subr.bf16.mxu1 %v3907_v31 }
 0x360   :  { %1273 = vmatpush1.bf16.msra.mxu0 %v3913_v32  ;;  %1314 = vmatpush1.bf16.msra.mxu1 %v3919_v33 }
 0x361   :  { %1274 = vmatprep.subr.bf16.mxu0 %v3925_v34  ;;  %1315 = vmatprep.subr.bf16.mxu1 %v3931_v36 }
 0x364   :  { %1275 = vmatpush1.bf16.msra.mxu0 %v3937_v38  ;;  %1316 = vmatpush1.bf16.msra.mxu1 %v3943_v39 }
 0x365   :  { %1276 = vmatprep.subr.bf16.mxu0 %v3949_v40  ;;  %1317 = vmatprep.subr.bf16.mxu1 %v3955_v41 }
 0x368   :  { %1277 = vmatpush1.bf16.msra.mxu0 %v3961_v42  ;;  %1318 = vmatpush1.bf16.msra.mxu1 %v3967_v43 }
 0x369   :  { %1278 = vmatprep.subr.bf16.mxu0 %v3973_v44  ;;  %1319 = vmatprep.subr.bf16.mxu1 %v3979_v45 }
 0x36c   :  { %1279 = vmatpush1.bf16.msra.mxu0 %v3985_v46  ;;  %1320 = vmatpush1.bf16.msra.mxu1 %v3991_v47 }
 0x36d   :  { %1280 = vmatprep.subr.bf16.mxu0 %v3997_v48  ;;  %1321 = vmatprep.subr.bf16.mxu1 %v4003_v50 }
 0x370   :  { %1281 = vmatpush1.bf16.msra.mxu0 %v4009_v2  ;;  %1322 = vmatpush1.bf16.msra.mxu1 %v4015_v3 }
 0x371   :  { %1372 = vmatprep.subr.bf16.mxu0 %v4021_v5  ;;  %1413 = vmatprep.subr.bf16.mxu1 %v4027_v0 }
 0x373   :  { %1299 = vmatmul.mubr.bf16.vlgmr.msra.gmra.mrb[24].mxu0 %v1159_v29  ;;  %1340 = vmatmul.mubr.bf16.vlgmr.msra.gmra.mrb[24].mxu1 %v1159_v29  ;;  %v4165_v29 = vld [vmem:[%s5400_s2 + $0xc4] ss:$16 sps:$4 sm:$0xff]  }
 0x374   :  { %1373 = vmatpush1.bf16.msra.mxu0 %v4033_v55  ;;  %1414 = vmatpush1.bf16.msra.mxu1 %v4039_v51  ;;  %5851 = vst [vmem:[#allocation26_spill] sm:$0xff] %v4165_v29 }
 0x375   :  { %1374 = vmatprep.subr.bf16.mxu0 %v4045_v6  ;;  %1415 = vmatprep.subr.bf16.mxu1 %v4051_v52 }
 0x378   :  { %1375 = vmatpush1.bf16.msra.mxu0 %v4057_v7  ;;  %1416 = vmatpush1.bf16.msra.mxu1 %v4063_v61 }
 0x379   :  { %1376 = vmatprep.subr.bf16.mxu0 %v4069_v57  ;;  %1417 = vmatprep.subr.bf16.mxu1 %v4075_v12 }
 0x37c   :  { %1377 = vmatpush1.bf16.msra.mxu0 %v4081_v13  ;;  %1418 = vmatpush1.bf16.msra.mxu1 %v4087_v14 }
 0x37d   :  { %1378 = vmatprep.subr.bf16.mxu0 %v4093_v15  ;;  %1419 = vmatprep.subr.bf16.mxu1 %v4099_v16 }
 0x380   :  { %1379 = vmatpush1.bf16.msra.mxu0 %v4105_v17  ;;  %1420 = vmatpush1.bf16.msra.mxu1 %v4111_v18 }
 0x381   :  { %1380 = vmatprep.subr.bf16.mxu0 %v4117_v19  ;;  %1421 = vmatprep.subr.bf16.mxu1 %v4123_v20 }
 0x384   :  { %1381 = vmatpush1.bf16.msra.mxu0 %v4129_v21  ;;  %1422 = vmatpush1.bf16.msra.mxu1 %v4135_v24 }
 0x385   :  { %1382 = vmatprep.subr.bf16.mxu0 %v4141_v25  ;;  %1423 = vmatprep.subr.bf16.mxu1 %v4147_v26  ;;  %v4171_v26 = vld [vmem:[%s5400_s2 + $0xcc] ss:$16 sps:$4 sm:$0xff]  }
 0x386   :  { %5852 = vst [vmem:[#allocation27_spill] sm:$0xff] %v4171_v26 }
 0x388   :  { %1383 = vmatpush1.bf16.msra.mxu0 %v4153_v27  ;;  %1424 = vmatpush1.bf16.msra.mxu1 %v4159_v28  ;;  %v4177_v27 = vld [vmem:[%s5400_s2 + $0xc0] ss:$16 sps:$4 sm:$0xff]   ;;  %v4183_v28 = vld [vmem:[%s5400_s2 + $0xc8] ss:$16 sps:$4 sm:$0xff]  }
 0x389   :  { %1384 = vmatprep.subr.bf16.mxu0 %v4165_v29  ;;  %1425 = vmatprep.subr.bf16.mxu1 %v4171_v26  ;;  %5853 = vst [vmem:[#allocation28_spill] sm:$0xff] %v4177_v27  ;;  %5854 = vst [vmem:[#allocation29_spill] sm:$0xff] %v4183_v28  ;;  %v4189_v29 = vld [vmem:[%s5400_s2 + $0xe4] ss:$16 sps:$4 sm:$0xff]   ;;  %v4195_v26 = vld [vmem:[%s5400_s2 + $0xec] ss:$16 sps:$4 sm:$0xff]  }
 0x38a   :  { %5855 = vst [vmem:[#allocation30_spill] sm:$0xff] %v4189_v29  ;;  %5856 = vst [vmem:[#allocation31_spill] sm:$0xff] %v4195_v26 }
 0x38c   :  { %1385 = vmatpush1.bf16.msra.mxu0 %v4177_v27  ;;  %1426 = vmatpush1.bf16.msra.mxu1 %v4183_v28  ;;  %v4201_v27 = vld [vmem:[%s5400_s2 + $0xe0] ss:$16 sps:$4 sm:$0xff]   ;;  %v4207_v28 = vld [vmem:[%s5400_s2 + $0xe8] ss:$16 sps:$4 sm:$0xff]  }
 0x38d   :  { %1386 = vmatprep.subr.bf16.mxu0 %v4189_v29  ;;  %1427 = vmatprep.subr.bf16.mxu1 %v4195_v26  ;;  %5857 = vst [vmem:[#allocation32_spill] sm:$0xff] %v4201_v27  ;;  %5858 = vst [vmem:[#allocation33_spill] sm:$0xff] %v4207_v28  ;;  %v4213_v29 = vld [vmem:[%s5400_s2 + $0x104] ss:$16 sps:$4 sm:$0xff]   ;;  %v4219_v26 = vld [vmem:[%s5400_s2 + $0x10c] ss:$16 sps:$4 sm:$0xff]  }
 0x38e   :  { %5859 = vst [vmem:[#allocation34_spill] sm:$0xff] %v4213_v29  ;;  %5860 = vst [vmem:[#allocation35_spill] sm:$0xff] %v4219_v26 }
 0x390   :  { %1387 = vmatpush1.bf16.msra.mxu0 %v4201_v27  ;;  %1428 = vmatpush1.bf16.msra.mxu1 %v4207_v28  ;;  %v4225_v27 = vld [vmem:[%s5400_s2 + $0x100] ss:$16 sps:$4 sm:$0xff]   ;;  %v4231_v28 = vld [vmem:[%s5400_s2 + $0x108] ss:$16 sps:$4 sm:$0xff]  }
 0x391   :  { %1388 = vmatprep.subr.bf16.mxu0 %v4213_v29  ;;  %1429 = vmatprep.subr.bf16.mxu1 %v4219_v26  ;;  %5861 = vst [vmem:[#allocation36_spill] sm:$0xff] %v4225_v27  ;;  %5862 = vst [vmem:[#allocation37_spill] sm:$0xff] %v4231_v28  ;;  %v4237_v29 = vld [vmem:[%s5400_s2 + $0x124] ss:$16 sps:$4 sm:$0xff]   ;;  %v4243_v26 = vld [vmem:[%s5400_s2 + $0x12c] ss:$16 sps:$4 sm:$0xff]  }
 0x392   :  { %5863 = vst [vmem:[#allocation38_spill] sm:$0xff] %v4237_v29  ;;  %5864 = vst [vmem:[#allocation39_spill] sm:$0xff] %v4243_v26 }
 0x394   :  { %1389 = vmatpush1.bf16.msra.mxu0 %v4225_v27  ;;  %1430 = vmatpush1.bf16.msra.mxu1 %v4231_v28  ;;  %v4249_v27 = vld [vmem:[%s5400_s2 + $0x120] ss:$16 sps:$4 sm:$0xff]   ;;  %v4255_v28 = vld [vmem:[%s5400_s2 + $0x128] ss:$16 sps:$4 sm:$0xff]  }
 0x395   :  { %1390 = vmatprep.subr.bf16.mxu0 %v4237_v29  ;;  %1431 = vmatprep.subr.bf16.mxu1 %v4243_v26  ;;  %5865 = vst [vmem:[#allocation40_spill] sm:$0xff] %v4249_v27  ;;  %5866 = vst [vmem:[#allocation41_spill] sm:$0xff] %v4255_v28  ;;  %v4261_v29 = vld [vmem:[%s5400_s2 + $0x144] ss:$16 sps:$4 sm:$0xff]   ;;  %v4267_v26 = vld [vmem:[%s5400_s2 + $0x14c] ss:$16 sps:$4 sm:$0xff]  }
 0x396   :  { %5867 = vst [vmem:[#allocation42_spill] sm:$0xff] %v4261_v29  ;;  %5868 = vst [vmem:[#allocation43_spill] sm:$0xff] %v4267_v26 }
 0x398   :  { %1391 = vmatpush1.bf16.msra.mxu0 %v4249_v27  ;;  %1432 = vmatpush1.bf16.msra.mxu1 %v4255_v28  ;;  %v4273_v27 = vld [vmem:[%s5400_s2 + $0x140] ss:$16 sps:$4 sm:$0xff]   ;;  %v4279_v28 = vld [vmem:[%s5400_s2 + $0x148] ss:$16 sps:$4 sm:$0xff]  }
 0x399   :  { %1392 = vmatprep.subr.bf16.mxu0 %v4261_v29  ;;  %1433 = vmatprep.subr.bf16.mxu1 %v4267_v26  ;;  %5869 = vst [vmem:[#allocation44_spill] sm:$0xff] %v4273_v27  ;;  %5870 = vst [vmem:[#allocation45_spill] sm:$0xff] %v4279_v28  ;;  %v4285_v29 = vld [vmem:[%s5400_s2 + $0x164] ss:$16 sps:$4 sm:$0xff]   ;;  %v4291_v26 = vld [vmem:[%s5400_s2 + $0x16c] ss:$16 sps:$4 sm:$0xff]  }
 0x39a   :  { %5871 = vst [vmem:[#allocation46_spill] sm:$0xff] %v4285_v29  ;;  %5872 = vst [vmem:[#allocation47_spill] sm:$0xff] %v4291_v26 }
 0x39c   :  { %1393 = vmatpush1.bf16.msra.mxu0 %v4273_v27  ;;  %1434 = vmatpush1.bf16.msra.mxu1 %v4279_v28  ;;  %v4297_v27 = vld [vmem:[%s5400_s2 + $0x160] ss:$16 sps:$4 sm:$0xff]   ;;  %v4303_v28 = vld [vmem:[%s5400_s2 + $0x168] ss:$16 sps:$4 sm:$0xff]  }
 0x39d   :  { %1394 = vmatprep.subr.bf16.mxu0 %v4285_v29  ;;  %1435 = vmatprep.subr.bf16.mxu1 %v4291_v26  ;;  %5873 = vst [vmem:[#allocation48_spill] sm:$0xff] %v4297_v27  ;;  %5874 = vst [vmem:[#allocation49_spill] sm:$0xff] %v4303_v28  ;;  %v4309_v29 = vld [vmem:[%s5400_s2 + $0x184] ss:$16 sps:$4 sm:$0xff]   ;;  %v4315_v26 = vld [vmem:[%s5400_s2 + $0x18c] ss:$16 sps:$4 sm:$0xff]  }
 0x39e   :  { %5875 = vst [vmem:[#allocation50_spill] sm:$0xff] %v4309_v29  ;;  %5876 = vst [vmem:[#allocation51_spill] sm:$0xff] %v4315_v26 }
 0x3a0   :  { %1395 = vmatpush1.bf16.msra.mxu0 %v4297_v27  ;;  %1436 = vmatpush1.bf16.msra.mxu1 %v4303_v28  ;;  %v4321_v27 = vld [vmem:[%s5400_s2 + $0x180] ss:$16 sps:$4 sm:$0xff]   ;;  %v4327_v28 = vld [vmem:[%s5400_s2 + $0x188] ss:$16 sps:$4 sm:$0xff]  }
 0x3a1   :  { %1396 = vmatprep.subr.bf16.mxu0 %v4309_v29  ;;  %1437 = vmatprep.subr.bf16.mxu1 %v4315_v26  ;;  %5877 = vst [vmem:[#allocation52_spill] sm:$0xff] %v4321_v27  ;;  %5878 = vst [vmem:[#allocation53_spill] sm:$0xff] %v4327_v28  ;;  %v4333_v29 = vld [vmem:[%s5400_s2 + $0x1a4] ss:$16 sps:$4 sm:$0xff]   ;;  %v4339_v26 = vld [vmem:[%s5400_s2 + $0x1ac] ss:$16 sps:$4 sm:$0xff]  }
 0x3a2   :  { %5879 = vst [vmem:[#allocation54_spill] sm:$0xff] %v4333_v29  ;;  %5880 = vst [vmem:[#allocation55_spill] sm:$0xff] %v4339_v26 }
 0x3a4   :  { %1397 = vmatpush1.bf16.msra.mxu0 %v4321_v27  ;;  %1438 = vmatpush1.bf16.msra.mxu1 %v4327_v28  ;;  %v4345_v27 = vld [vmem:[%s5400_s2 + $0x1a0] ss:$16 sps:$4 sm:$0xff]   ;;  %v4351_v28 = vld [vmem:[%s5400_s2 + $0x1a8] ss:$16 sps:$4 sm:$0xff]  }
 0x3a5   :  { %1398 = vmatprep.subr.bf16.mxu0 %v4333_v29  ;;  %1439 = vmatprep.subr.bf16.mxu1 %v4339_v26  ;;  %5881 = vst [vmem:[#allocation6_spill] sm:$0xff] %v4345_v27  ;;  %5882 = vst [vmem:[#allocation56_spill] sm:$0xff] %v4351_v28  ;;  %v4357_v29 = vld [vmem:[%s5400_s2 + $0x1c4] ss:$16 sps:$4 sm:$0xff]   ;;  %v4363_v26 = vld [vmem:[%s5400_s2 + $0x1cc] ss:$16 sps:$4 sm:$0xff]  }
 0x3a6   :  { %5883 = vst [vmem:[#allocation57_spill] sm:$0xff] %v4357_v29  ;;  %5884 = vst [vmem:[#allocation58_spill] sm:$0xff] %v4363_v26 }
 0x3a8   :  { %1399 = vmatpush1.bf16.msra.mxu0 %v4345_v27  ;;  %1440 = vmatpush1.bf16.msra.mxu1 %v4351_v28  ;;  %v4369_v27 = vld [vmem:[%s5400_s2 + $0x1c0] ss:$16 sps:$4 sm:$0xff]   ;;  %v4375_v28 = vld [vmem:[%s5400_s2 + $0x1c8] ss:$16 sps:$4 sm:$0xff]  }
 0x3a9   :  { %1400 = vmatprep.subr.bf16.mxu0 %v4357_v29  ;;  %1441 = vmatprep.subr.bf16.mxu1 %v4363_v26  ;;  %5885 = vst [vmem:[#allocation59_spill] sm:$0xff] %v4369_v27  ;;  %5886 = vst [vmem:[#allocation60_spill] sm:$0xff] %v4375_v28  ;;  %v4381_v29 = vld [vmem:[%s5400_s2 + $0x1e4] ss:$16 sps:$4 sm:$0xff]   ;;  %v4387_v26 = vld [vmem:[%s5400_s2 + $0x1ec] ss:$16 sps:$4 sm:$0xff]  }
 0x3aa   :  { %5887 = vst [vmem:[#allocation61_spill] sm:$0xff] %v4381_v29  ;;  %5888 = vst [vmem:[#allocation62_spill] sm:$0xff] %v4387_v26 }
 0x3ac   :  { %1401 = vmatpush1.bf16.msra.mxu0 %v4369_v27  ;;  %1442 = vmatpush1.bf16.msra.mxu1 %v4375_v28  ;;  %v4393_v27 = vld [vmem:[%s5400_s2 + $0x1e0] ss:$16 sps:$4 sm:$0xff]   ;;  %v4399_v28 = vld [vmem:[%s5400_s2 + $0x1e8] ss:$16 sps:$4 sm:$0xff]  }
 0x3ad   :  { %1402 = vmatprep.subr.bf16.mxu0 %v4381_v29  ;;  %1443 = vmatprep.subr.bf16.mxu1 %v4387_v26  ;;  %5889 = vst [vmem:[#allocation63_spill] sm:$0xff] %v4393_v27  ;;  %5890 = vst [vmem:[#allocation64_spill] sm:$0xff] %v4399_v28 }
 0x3b0   :  { %1403 = vmatpush1.bf16.msra.mxu0 %v4393_v27  ;;  %1444 = vmatpush1.bf16.msra.mxu1 %v4399_v28 }
 0x3b1   :  { %1477 = vmatprep.subr.bf16.mxu0 %v3848_v10  ;;  %1518 = vmatprep.subr.bf16.mxu1 %v3854_v58 }
 0x426   :  { %v1195_v29 = vpop.f32.mrb[20].mxu0  ;;  %v1236_v26 = vpop.f32.mrb[20].mxu1 }
 0x427   :  { %v1196_v25 = vadd.f32 %v1195_v29, %v5834_v59  ;;  %v1197_v24 = vpop.f32.mrb[21].mxu0  ;;  %v1238_v21 = vpop.f32.mrb[21].mxu1  ;;  %v1237_v28 = vadd.f32 %v1236_v26, %v3678_v1  ;;  %v2434_v26 = vld [vmem:[%s5401_s0 + $0x70] sm:$0xff] }
 0x428   :  { %v1198_v20 = vadd.f32 %v1197_v24, %v3675_v53  ;;  %v1199_v27 = vpop.f32.mrb[22].mxu0  ;;  %v1240_v19 = vpop.f32.mrb[22].mxu1  ;;  %v1239_v58 = vadd.f32 %v1238_v21, %v5835_v22 }
 0x429   :  { %v1243_v18 = vmul.f32 0.5, %v1196_v25  ;;  %v1200_v17 = vpop.f32.mrb[23].mxu0  ;;  %v1241_v16 = vpop.f32.mrb[23].mxu1 }
 0x42a   :  { %v1247_v15 = vmul.f32 0.5, %v1198_v20  ;;  %v1252_v10 = vmul.f32 0.5, %v1239_v58  ;;  %v2432_v58 = vld [vmem:[%s5401_s0 + $0x60] sm:$0xff] }
 0x42b   :  { %2648 = vtanh.f32 %v1243_v18 }
 0x42c   :  { %2650 = vtanh.f32 %v1247_v15 }
 0x42d   :  { %2652 = vtanh.f32 %v1237_v28 }
 0x42e   :  { %2654 = vtanh.f32 %v1252_v10  ;;  %v2433_v10 = vld [vmem:[%s5401_s0 + $0x68] sm:$0xff] }
 0x435   :  { %v2649_v14 = vpop.eup %2648 }
 0x436   :  { %v2651_v29 = vpop.eup %2650  ;;  %v1245_v59 = vmul.f32 0.5, %v2649_v14 }
 0x437   :  { %v1249_v13 = vmul.f32 0.5, %v2651_v29  ;;  %v2653_v27 = vpop.eup %2652 }
 0x438   :  { %v1246_v24 = vadd.f32 0.5, %v1245_v59  ;;  %v2655_v15 = vpop.eup %2654 }
 0x439   :  { %v1250_v19 = vadd.f32 0.5, %v1249_v13  ;;  %v1254_v18 = vmul.f32 0.5, %v2655_v15 }
 0x43a   :  { %v1257_v25 = vmul.f32 %v2653_v27, %v1246_v24 }
 0x43b   :  { %v1256_v16 = vmul.f32 %v1250_v19, %v3862_v35  ;;  %v1255_v35 = vadd.f32 0.5, %v1254_v18  ;;  %v2435_v18 = vld [vmem:[%s5401_s0 + $0x78] sm:$0xff] }
 0x43d   :  { %v4409_v17 = vadd.f32 %v1257_v25, %v1256_v16 }
 0x43f   :  { %5891 = vst [vmem:[#allocation65_spill] sm:$0xff] %v4409_v17  ;;  %2656 = vtanh.f32 %v4409_v17 }
 0x446   :  { %v1300_v59 = vpop.f32.mrb[24].mxu0  ;;  %v1341_v14 = vpop.f32.mrb[24].mxu1 }
 0x447   :  { %v1348_v13 = vadd.f32 %v2432_v58, %v1300_v59  ;;  %v1302_v20 = vpop.f32.mrb[25].mxu0  ;;  %v1343_v21 = vpop.f32.mrb[25].mxu1  ;;  %v1350_v22 = vadd.f32 %v2434_v26, %v1341_v14 }
 0x448   :  { %v1349_v28 = vadd.f32 %v2433_v10, %v1302_v20  ;;  %v1304_v29 = vpop.f32.mrb[26].mxu0  ;;  %v1345_v24 = vpop.f32.mrb[26].mxu1  ;;  %v1351_v10 = vadd.f32 %v2435_v18, %v1343_v21  ;;  %v5902_v18 = vld [vmem:[#allocation22_spill] sm:$0xff] }
 0x449   :  { %v2657_v27 = vpop.eup %2656  ;;  %v1352_v19 = vmul.f32 0.5, %v1348_v13  ;;  %v1305_v25 = vpop.f32.mrb[27].mxu0 }
 0x44a   :  { %v1346_v16 = vpop.f32.mrb[27].mxu1  ;;  %v1356_v15 = vmul.f32 0.5, %v1349_v28  ;;  %v1260_v17 = vmul.f32 %v2657_v27, %v1255_v35  ;;  %v1361_v59 = vmul.f32 0.5, %v1351_v10  ;;  %v5904_v10 = vld [vmem:[#allocation24_spill] sm:$0xff] }
 0x44b   :  { %2658 = vtanh.f32 %v1352_v19 }
 0x44c   :  { %2660 = vtanh.f32 %v1356_v15  ;;  %v1371_v58 = vpack.c.bf16 %v1260_v17, %v1260_v17 }
 0x44d   :  { %2662 = vtanh.f32 %v1350_v22 }
 0x44e   :  { %1404 = vmatprep.mubr.bf16.mxu0 %v1371_v58  ;;  %1445 = vmatprep.mubr.bf16.mxu1 %v1371_v58  ;;  %2664 = vtanh.f32 %v1361_v59  ;;  %v5903_v58 = vld [vmem:[#allocation23_spill] sm:$0xff]  ;;  %v5905_v59 = vld [vmem:[#allocation25_spill] sm:$0xff] }
 0x455   :  { %v2659_v20 = vpop.eup %2658 }
 0x456   :  { %v2661_v29 = vpop.eup %2660  ;;  %v1354_v13 = vmul.f32 0.5, %v2659_v20  ;;  %v5906_v20 = vld [vmem:[#allocation26_spill] sm:$0xff] }
 0x457   :  { %v1358_v24 = vmul.f32 0.5, %v2661_v29  ;;  %v2663_v35 = vpop.eup %2662  ;;  %v5907_v29 = vld [vmem:[#allocation27_spill] sm:$0xff] }
 0x458   :  { %v1355_v28 = vadd.f32 0.5, %v1354_v13  ;;  %v2665_v17 = vpop.eup %2664  ;;  %v5908_v13 = vld [vmem:[#allocation28_spill] sm:$0xff] }
 0x459   :  { %v1359_v27 = vadd.f32 0.5, %v1358_v24  ;;  %v1363_v25 = vmul.f32 0.5, %v2665_v17  ;;  %v5909_v24 = vld [vmem:[#allocation29_spill] sm:$0xff]  ;;  %v5915_v17 = vld [vmem:[#allocation35_spill] sm:$0xff] }
 0x45a   :  { %v1366_v14 = vmul.f32 %v2663_v35, %v1355_v28  ;;  %v5910_v28 = vld [vmem:[#allocation30_spill] sm:$0xff]  ;;  %v5911_v35 = vld [vmem:[#allocation31_spill] sm:$0xff] }
 0x45b   :  { %v1365_v26 = vmul.f32 %v1359_v27, %v3878_v23  ;;  %v1364_v22 = vadd.f32 0.5, %v1363_v25  ;;  %v5901_v23 = vld [vmem:[#allocation21_spill] sm:$0xff]  ;;  %v5912_v27 = vld [vmem:[#allocation32_spill] sm:$0xff] }
 0x45c   :  { %v5916_v25 = vld [vmem:[#allocation36_spill] sm:$0xff] }
 0x45d   :  { %v4425_v19 = vadd.f32 %v1366_v14, %v1365_v26  ;;  %v5913_v14 = vld [vmem:[#allocation33_spill] sm:$0xff]  ;;  %v5914_v26 = vld [vmem:[#allocation34_spill] sm:$0xff] }
 0x45f   :  { %2666 = vtanh.f32 %v4425_v19 }
 0x469   :  { %v2667_v21 = vpop.eup %2666 }
 0x46a   :  { %v1369_v16 = vmul.f32 %v2667_v21, %v1364_v22  ;;  %v5917_v22 = vld [vmem:[#allocation37_spill] sm:$0xff]  ;;  %v5918_v21 = vld [vmem:[#allocation38_spill] sm:$0xff] }
 0x46c   :  { %v1370_v15 = vpack.c.bf16 %v1369_v16, %v1369_v16  ;;  %v5919_v16 = vld [vmem:[#allocation39_spill] sm:$0xff] }
 0x46e   :  { %1405 = vmatmul.mubr.bf16.vlgmr.msra.gmra.mrb[28].mxu0 %v1370_v15  ;;  %1446 = vmatmul.mubr.bf16.vlgmr.msra.gmra.mrb[28].mxu1 %v1370_v15 }
 0x46f   :  { %1478 = vmatpush1.bf16.msra.mxu0 %v3707_v8  ;;  %1519 = vmatpush1.bf16.msra.mxu1 %v3713_v54  ;;  %v5892_v8 = vld [vmem:[#allocation11_spill] sm:$0xff]  ;;  %v5893_v54 = vld [vmem:[#allocation13_spill] sm:$0xff] }
 0x470   :  { %1479 = vmatprep.subr.bf16.mxu0 %v3719_v60  ;;  %1520 = vmatprep.subr.bf16.mxu1 %v3725_v56  ;;  %v5894_v60 = vld [vmem:[#allocation14_spill] sm:$0xff]  ;;  %v5895_v56 = vld [vmem:[#allocation16_spill] sm:$0xff] }
 0x471   :  { %1509 = vmatprep.mubr.bf16.mxu0 %v5732_v49  ;;  %1550 = vmatprep.mubr.bf16.mxu1 %v5732_v49 }
 0x473   :  { %1480 = vmatpush1.bf16.msra.mxu0 %v3733_v37  ;;  %1521 = vmatpush1.bf16.msra.mxu1 %v3739_v62  ;;  %v5896_v37 = vld [vmem:[#allocation15_spill] sm:$0xff]  ;;  %v5897_v62 = vld [vmem:[#allocation17_spill] sm:$0xff] }
 0x474   :  { %1481 = vmatprep.subr.bf16.mxu0 %v3745_v4  ;;  %1522 = vmatprep.subr.bf16.mxu1 %v3893_v9  ;;  %v5898_v4 = vld [vmem:[#allocation18_spill] sm:$0xff] }
 0x477   :  { %1482 = vmatpush1.bf16.msra.mxu0 %v3752_v63  ;;  %1523 = vmatpush1.bf16.msra.mxu1 %v3900_v30  ;;  %v5899_v63 = vld [vmem:[#allocation19_spill] sm:$0xff] }
 0x478   :  { %1483 = vmatprep.subr.bf16.mxu0 %v3759_v11  ;;  %1524 = vmatprep.subr.bf16.mxu1 %v3907_v31  ;;  %v5900_v11 = vld [vmem:[#allocation20_spill] sm:$0xff] }
 0x47b   :  { %1484 = vmatpush1.bf16.msra.mxu0 %v3913_v32  ;;  %1525 = vmatpush1.bf16.msra.mxu1 %v3919_v33 }
 0x47c   :  { %1485 = vmatprep.subr.bf16.mxu0 %v3925_v34  ;;  %1526 = vmatprep.subr.bf16.mxu1 %v3931_v36 }
 0x47f   :  { %1486 = vmatpush1.bf16.msra.mxu0 %v3937_v38  ;;  %1527 = vmatpush1.bf16.msra.mxu1 %v3943_v39 }
 0x480   :  { %1487 = vmatprep.subr.bf16.mxu0 %v3949_v40  ;;  %1528 = vmatprep.subr.bf16.mxu1 %v3955_v41 }
 0x483   :  { %1488 = vmatpush1.bf16.msra.mxu0 %v3961_v42  ;;  %1529 = vmatpush1.bf16.msra.mxu1 %v3967_v43 }
 0x484   :  { %1489 = vmatprep.subr.bf16.mxu0 %v3973_v44  ;;  %1530 = vmatprep.subr.bf16.mxu1 %v3979_v45 }
 0x487   :  { %1490 = vmatpush1.bf16.msra.mxu0 %v3985_v46  ;;  %1531 = vmatpush1.bf16.msra.mxu1 %v3991_v47 }
 0x488   :  { %1491 = vmatprep.subr.bf16.mxu0 %v3997_v48  ;;  %1532 = vmatprep.subr.bf16.mxu1 %v4003_v50 }
 0x48b   :  { %1492 = vmatpush1.bf16.msra.mxu0 %v4009_v2  ;;  %1533 = vmatpush1.bf16.msra.mxu1 %v4015_v3 }
 0x48c   :  { %1583 = vmatprep.subr.bf16.mxu0 %v4021_v5  ;;  %1624 = vmatprep.subr.bf16.mxu1 %v4027_v0 }
 0x48e   :  { %1510 = vmatmul.mubr.bf16.vlgmr.msra.gmra.mrb[32].mxu0 %v1370_v15  ;;  %1551 = vmatmul.mubr.bf16.vlgmr.msra.gmra.mrb[32].mxu1 %v1370_v15  ;;  %v5920_v15 = vld [vmem:[#allocation40_spill] sm:$0xff] }
 0x48f   :  { %1584 = vmatpush1.bf16.msra.mxu0 %v4033_v55  ;;  %1625 = vmatpush1.bf16.msra.mxu1 %v4039_v51 }
 0x490   :  { %1585 = vmatprep.subr.bf16.mxu0 %v4045_v6  ;;  %1626 = vmatprep.subr.bf16.mxu1 %v4051_v52 }
 0x493   :  { %1586 = vmatpush1.bf16.msra.mxu0 %v4057_v7  ;;  %1627 = vmatpush1.bf16.msra.mxu1 %v4063_v61 }
 0x494   :  { %1587 = vmatprep.subr.bf16.mxu0 %v4069_v57  ;;  %1628 = vmatprep.subr.bf16.mxu1 %v4075_v12 }
 0x497   :  { %1588 = vmatpush1.bf16.msra.mxu0 %v5892_v8  ;;  %1629 = vmatpush1.bf16.msra.mxu1 %v5893_v54 }
 0x498   :  { %1589 = vmatprep.subr.bf16.mxu0 %v5894_v60  ;;  %1630 = vmatprep.subr.bf16.mxu1 %v5895_v56 }
 0x49b   :  { %1590 = vmatpush1.bf16.msra.mxu0 %v5896_v37  ;;  %1631 = vmatpush1.bf16.msra.mxu1 %v5897_v62 }
 0x49c   :  { %1591 = vmatprep.subr.bf16.mxu0 %v5898_v4  ;;  %1632 = vmatprep.subr.bf16.mxu1 %v5899_v63 }
 0x49f   :  { %1592 = vmatpush1.bf16.msra.mxu0 %v5900_v11  ;;  %1633 = vmatpush1.bf16.msra.mxu1 %v5901_v23 }
 0x4a0   :  { %1593 = vmatprep.subr.bf16.mxu0 %v5902_v18  ;;  %1634 = vmatprep.subr.bf16.mxu1 %v5903_v58 }
 0x4a3   :  { %1594 = vmatpush1.bf16.msra.mxu0 %v5904_v10  ;;  %1635 = vmatpush1.bf16.msra.mxu1 %v5905_v59 }
 0x4a4   :  { %1595 = vmatprep.subr.bf16.mxu0 %v5906_v20  ;;  %1636 = vmatprep.subr.bf16.mxu1 %v5907_v29 }
 0x4a7   :  { %1596 = vmatpush1.bf16.msra.mxu0 %v5908_v13  ;;  %1637 = vmatpush1.bf16.msra.mxu1 %v5909_v24  ;;  %v5948_v24 = vld [vmem:[#allocation8_spill] sm:$0xff] }
 0x4a8   :  { %1597 = vmatprep.subr.bf16.mxu0 %v5910_v28  ;;  %1638 = vmatprep.subr.bf16.mxu1 %v5911_v35  ;;  %v5921_v28 = vld [vmem:[#allocation41_spill] sm:$0xff]  ;;  %v5922_v35 = vld [vmem:[#allocation42_spill] sm:$0xff] }
 0x4ab   :  { %1598 = vmatpush1.bf16.msra.mxu0 %v5912_v27  ;;  %1639 = vmatpush1.bf16.msra.mxu1 %v5913_v14  ;;  %v5923_v27 = vld [vmem:[#allocation43_spill] sm:$0xff]  ;;  %v5924_v14 = vld [vmem:[#allocation44_spill] sm:$0xff] }
 0x4ac   :  { %1599 = vmatprep.subr.bf16.mxu0 %v5914_v26  ;;  %1640 = vmatprep.subr.bf16.mxu1 %v5915_v17  ;;  %v5925_v26 = vld [vmem:[#allocation45_spill] sm:$0xff]  ;;  %v5926_v17 = vld [vmem:[#allocation46_spill] sm:$0xff] }
 0x4af   :  { %1600 = vmatpush1.bf16.msra.mxu0 %v5916_v25  ;;  %1641 = vmatpush1.bf16.msra.mxu1 %v5917_v22  ;;  %v5927_v25 = vld [vmem:[#allocation47_spill] sm:$0xff]  ;;  %v5928_v22 = vld [vmem:[#allocation48_spill] sm:$0xff] }
 0x4b0   :  { %1601 = vmatprep.subr.bf16.mxu0 %v5918_v21  ;;  %1642 = vmatprep.subr.bf16.mxu1 %v5919_v16  ;;  %v5929_v21 = vld [vmem:[#allocation49_spill] sm:$0xff]  ;;  %v5930_v16 = vld [vmem:[#allocation50_spill] sm:$0xff] }
 0x4b3   :  { %1602 = vmatpush1.bf16.msra.mxu0 %v5920_v15  ;;  %1643 = vmatpush1.bf16.msra.mxu1 %v5921_v28  ;;  %v5931_v15 = vld [vmem:[#allocation51_spill] sm:$0xff]  ;;  %v5932_v28 = vld [vmem:[#allocation52_spill] sm:$0xff] }
 0x4b4   :  { %1603 = vmatprep.subr.bf16.mxu0 %v5922_v35  ;;  %1644 = vmatprep.subr.bf16.mxu1 %v5923_v27  ;;  %v5933_v35 = vld [vmem:[#allocation53_spill] sm:$0xff]  ;;  %v5934_v27 = vld [vmem:[#allocation54_spill] sm:$0xff] }
 0x4b7   :  { %1604 = vmatpush1.bf16.msra.mxu0 %v5924_v14  ;;  %1645 = vmatpush1.bf16.msra.mxu1 %v5925_v26  ;;  %v5935_v14 = vld [vmem:[#allocation55_spill] sm:$0xff]  ;;  %v5936_v26 = vld [vmem:[#allocation6_spill] sm:$0xff] }
 0x4b8   :  { %1605 = vmatprep.subr.bf16.mxu0 %v5926_v17  ;;  %1646 = vmatprep.subr.bf16.mxu1 %v5927_v25  ;;  %v5937_v17 = vld [vmem:[#allocation56_spill] sm:$0xff]  ;;  %v5938_v25 = vld [vmem:[#allocation57_spill] sm:$0xff] }
 0x4bb   :  { %1606 = vmatpush1.bf16.msra.mxu0 %v5928_v22  ;;  %1647 = vmatpush1.bf16.msra.mxu1 %v5929_v21  ;;  %v5939_v22 = vld [vmem:[#allocation58_spill] sm:$0xff]  ;;  %v5940_v21 = vld [vmem:[#allocation59_spill] sm:$0xff] }
 0x4bc   :  { %1607 = vmatprep.subr.bf16.mxu0 %v5930_v16  ;;  %1648 = vmatprep.subr.bf16.mxu1 %v5931_v15  ;;  %v5941_v16 = vld [vmem:[#allocation60_spill] sm:$0xff]  ;;  %v5942_v15 = vld [vmem:[#allocation61_spill] sm:$0xff] }
 0x4bf   :  { %1608 = vmatpush1.bf16.msra.mxu0 %v5932_v28  ;;  %1649 = vmatpush1.bf16.msra.mxu1 %v5933_v35  ;;  %v5943_v28 = vld [vmem:[#allocation62_spill] sm:$0xff]  ;;  %v5944_v35 = vld [vmem:[#allocation63_spill] sm:$0xff] }
 0x4c0   :  { %1609 = vmatprep.subr.bf16.mxu0 %v5934_v27  ;;  %1650 = vmatprep.subr.bf16.mxu1 %v5935_v14  ;;  %v5945_v27 = vld [vmem:[#allocation64_spill] sm:$0xff]  ;;  %v5946_v14 = vld [vmem:[#allocation7_spill] sm:$0xff] }
 0x4c3   :  { %1610 = vmatpush1.bf16.msra.mxu0 %v5936_v26  ;;  %1651 = vmatpush1.bf16.msra.mxu1 %v5937_v17  ;;  %v5947_v26 = vld [vmem:[#allocation12_spill] sm:$0xff] }
 0x4c4   :  { %1611 = vmatprep.subr.bf16.mxu0 %v5938_v25  ;;  %1652 = vmatprep.subr.bf16.mxu1 %v5939_v22 }
 0x4c7   :  { %1612 = vmatpush1.bf16.msra.mxu0 %v5940_v21  ;;  %1653 = vmatpush1.bf16.msra.mxu1 %v5941_v16 }
 0x4c8   :  { %1613 = vmatprep.subr.bf16.mxu0 %v5942_v15  ;;  %1654 = vmatprep.subr.bf16.mxu1 %v5943_v28 }
 0x4cb   :  { %1614 = vmatpush1.bf16.msra.mxu0 %v5944_v35  ;;  %1655 = vmatpush1.bf16.msra.mxu1 %v5945_v27 }
 0x4cc   :  { %1688 = vmatprep.subr.bf16.mxu0 %v5946_v14  ;;  %1729 = vmatprep.subr.bf16.mxu1 %v5947_v26  ;;  %v5949_v14 = vld [vmem:[#allocation10_spill] sm:$0xff] }
 0x541   :  { %v1406_v17 = vpop.f32.mrb[28].mxu0  ;;  %v1447_v25 = vpop.f32.mrb[28].mxu1 }
 0x542   :  { %v1407_v22 = vadd.f32 %v1406_v17, %v5948_v24  ;;  %v1408_v13 = vpop.f32.mrb[29].mxu0  ;;  %v1449_v21 = vpop.f32.mrb[29].mxu1  ;;  %v1448_v27 = vadd.f32 %v1447_v25, %v3678_v1 }
 0x543   :  { %v1409_v16 = vadd.f32 %v1408_v13, %v3675_v53  ;;  %v1410_v29 = vpop.f32.mrb[30].mxu0  ;;  %v1451_v15 = vpop.f32.mrb[30].mxu1  ;;  %v1450_v26 = vadd.f32 %v1449_v21, %v5949_v14 }
 0x544   :  { %v1454_v20 = vmul.f32 0.5, %v1407_v22  ;;  %v1411_v28 = vpop.f32.mrb[31].mxu0  ;;  %v1452_v59 = vpop.f32.mrb[31].mxu1 }
 0x545   :  { %v1458_v35 = vmul.f32 0.5, %v1409_v16  ;;  %v1463_v10 = vmul.f32 0.5, %v1450_v26  ;;  %v5950_v28 = vld [vmem:[#allocation65_spill] sm:$0xff] }
 0x546   :  { %2668 = vtanh.f32 %v1454_v20 }
 0x547   :  { %2670 = vtanh.f32 %v1458_v35 }
 0x548   :  { %2672 = vtanh.f32 %v1448_v27  ;;  %v2436_v27 = vld [vmem:[%s5401_s0 + $0x80] sm:$0xff] }
 0x549   :  { %2674 = vtanh.f32 %v1463_v10 }
 0x550   :  { %v2669_v58 = vpop.eup %2668 }
 0x551   :  { %v2671_v17 = vpop.eup %2670  ;;  %v1456_v24 = vmul.f32 0.5, %v2669_v58  ;;  %v2437_v58 = vld [vmem:[%s5401_s0 + $0x88] sm:$0xff] }
 0x552   :  { %v1460_v18 = vmul.f32 0.5, %v2671_v17  ;;  %v2673_v29 = vpop.eup %2672  ;;  %v2438_v17 = vld [vmem:[%s5401_s0 + $0x90] sm:$0xff] }
 0x553   :  { %v1457_v13 = vadd.f32 0.5, %v1456_v24  ;;  %v2675_v20 = vpop.eup %2674 }
 0x554   :  { %v1461_v15 = vadd.f32 0.5, %v1460_v18  ;;  %v1465_v35 = vmul.f32 0.5, %v2675_v20 }
 0x555   :  { %v1468_v22 = vmul.f32 %v2673_v29, %v1457_v13 }
 0x556   :  { %v1467_v59 = vmul.f32 %v1461_v15, %v5950_v28  ;;  %v1466_v26 = vadd.f32 0.5, %v1465_v35  ;;  %v2439_v35 = vld [vmem:[%s5401_s0 + $0x98] sm:$0xff] }
 0x558   :  { %v4531_v16 = vadd.f32 %v1468_v22, %v1467_v59 }
 0x55a   :  { %5951 = vst [vmem:[#allocation11_spill] sm:$0xff] %v4531_v16  ;;  %2676 = vtanh.f32 %v4531_v16 }
 0x561   :  { %v1511_v10 = vpop.f32.mrb[32].mxu0  ;;  %v1552_v24 = vpop.f32.mrb[32].mxu1 }
 0x562   :  { %v1559_v18 = vadd.f32 %v2436_v27, %v1511_v10  ;;  %v1513_v25 = vpop.f32.mrb[33].mxu0  ;;  %v1554_v21 = vpop.f32.mrb[33].mxu1  ;;  %v1561_v1 = vadd.f32 %v2438_v17, %v1552_v24 }
 0x563   :  { %v1560_v13 = vadd.f32 %v2437_v58, %v1513_v25  ;;  %v1515_v29 = vpop.f32.mrb[34].mxu0  ;;  %v1556_v15 = vpop.f32.mrb[34].mxu1  ;;  %v1562_v58 = vadd.f32 %v2439_v35, %v1554_v21  ;;  %v4553_v35 = vld [vmem:[%s5399_s1] ss:$16 sps:$4 sm:$0xff]  }
 0x564   :  { %v2677_v22 = vpop.eup %2676  ;;  %v1563_v28 = vmul.f32 0.5, %v1559_v18  ;;  %v1516_v59 = vpop.f32.mrb[35].mxu0 }
 0x565   :  { %v1557_v20 = vpop.f32.mrb[35].mxu1  ;;  %v1567_v16 = vmul.f32 0.5, %v1560_v13  ;;  %v1471_v14 = vmul.f32 %v2677_v22, %v1466_v26  ;;  %v1572_v10 = vmul.f32 0.5, %v1562_v58  ;;  %v4571_v58 = vld [vmem:[%s5399_s1 + $0x2c] ss:$16 sps:$4 sm:$0xff]  }
 0x566   :  { %2678 = vtanh.f32 %v1563_v28 }
 0x567   :  { %2680 = vtanh.f32 %v1567_v16  ;;  %v1582_v27 = vpack.c.bf16 %v1471_v14, %v1471_v14 }
 0x568   :  { %2682 = vtanh.f32 %v1561_v1 }
 0x569   :  { %1615 = vmatprep.mubr.bf16.mxu0 %v1582_v27  ;;  %1656 = vmatprep.mubr.bf16.mxu1 %v1582_v27  ;;  %2684 = vtanh.f32 %v1572_v10  ;;  %v4565_v27 = vld [vmem:[%s5399_s1 + $0x24] ss:$16 sps:$4 sm:$0xff]   ;;  %v4579_v10 = vld [vmem:[%s5399_s1 + $0x20] ss:$16 sps:$4 sm:$0xff]  }
 0x570   :  { %v2679_v25 = vpop.eup %2678 }
 0x571   :  { %v2681_v29 = vpop.eup %2680  ;;  %v1565_v18 = vmul.f32 0.5, %v2679_v25  ;;  %v4585_v25 = vld [vmem:[%s5399_s1 + $0x28] ss:$16 sps:$4 sm:$0xff]  }
 0x572   :  { %v1569_v15 = vmul.f32 0.5, %v2681_v29  ;;  %v2683_v26 = vpop.eup %2682  ;;  %v4591_v29 = vld [vmem:[%s5399_s1 + $0x44] ss:$16 sps:$4 sm:$0xff]  }
 0x573   :  { %v1566_v13 = vadd.f32 0.5, %v1565_v18  ;;  %v2685_v14 = vpop.eup %2684  ;;  %v4598_v18 = vld [vmem:[%s5399_s1 + $0x40] ss:$16 sps:$4 sm:$0xff]  }
 0x574   :  { %v1570_v22 = vadd.f32 0.5, %v1569_v15  ;;  %v1574_v28 = vmul.f32 0.5, %v2685_v14  ;;  %v4605_v15 = vld [vmem:[%s5399_s1 + $0x64] ss:$16 sps:$4 sm:$0xff]  }
 0x575   :  { %v1577_v24 = vmul.f32 %v2683_v26, %v1566_v13  ;;  %v5993_v13 = vld [vmem:[#allocation62_spill] sm:$0xff]  ;;  %v5994_v26 = vld [vmem:[#allocation63_spill] sm:$0xff] }
 0x576   :  { %v1576_v16 = vmul.f32 %v1570_v22, %v4425_v19  ;;  %v1575_v1 = vadd.f32 0.5, %v1574_v28  ;;  %v4559_v19 = vld [vmem:[%s5399_s1 + $0x8] ss:$16 sps:$4 sm:$0xff]   ;;  %v5995_v22 = vld [vmem:[#allocation64_spill] sm:$0xff] }
 0x578   :  { %v4547_v17 = vadd.f32 %v1577_v24, %v1576_v16  ;;  %v4694_v24 = vld [vmem:[%s5399_s1 + $0x4] ss:$16 sps:$4 sm:$0xff]   ;;  %v4700_v16 = vld [vmem:[%s5399_s1 + $0xc] ss:$16 sps:$4 sm:$0xff]  }
 0x57a   :  { %2686 = vtanh.f32 %v4547_v17 }
 0x584   :  { %v2687_v21 = vpop.eup %2686 }
 0x585   :  { %v1580_v59 = vmul.f32 %v2687_v21, %v1575_v1  ;;  %v5996_v1 = vld [vmem:[#allocation8_spill] sm:$0xff] }
 0x587   :  { %v1581_v20 = vpack.c.bf16 %v1580_v59, %v1580_v59 }
 0x589   :  { %1616 = vmatmul.mubr.bf16.vlgmr.msra.gmra.mrb[36].mxu0 %v1581_v20  ;;  %1657 = vmatmul.mubr.bf16.vlgmr.msra.gmra.mrb[36].mxu1 %v1581_v20 }
 0x58a   :  { %1689 = vmatpush1.bf16.msra.mxu0 %v4553_v35  ;;  %1730 = vmatpush1.bf16.msra.mxu1 %v4559_v19 }
 0x58b   :  { %1690 = vmatprep.subr.bf16.mxu0 %v4565_v27  ;;  %1731 = vmatprep.subr.bf16.mxu1 %v4571_v58 }
 0x58c   :  { %1720 = vmatprep.mubr.bf16.mxu0 %v5732_v49  ;;  %1761 = vmatprep.mubr.bf16.mxu1 %v5732_v49 }
 0x58e   :  { %1691 = vmatpush1.bf16.msra.mxu0 %v4579_v10  ;;  %1732 = vmatpush1.bf16.msra.mxu1 %v4585_v25 }
 0x58f   :  { %1692 = vmatprep.subr.bf16.mxu0 %v4591_v29  ;;  %1733 = vmatprep.subr.bf16.mxu1 %v3893_v9  ;;  %v5952_v9 = vld [vmem:[#allocation22_spill] sm:$0xff] }
 0x592   :  { %1693 = vmatpush1.bf16.msra.mxu0 %v4598_v18  ;;  %1734 = vmatpush1.bf16.msra.mxu1 %v3900_v30  ;;  %v5953_v30 = vld [vmem:[#allocation23_spill] sm:$0xff] }
 0x593   :  { %1694 = vmatprep.subr.bf16.mxu0 %v4605_v15  ;;  %1735 = vmatprep.subr.bf16.mxu1 %v3907_v31  ;;  %v5954_v31 = vld [vmem:[#allocation24_spill] sm:$0xff] }
 0x596   :  { %1695 = vmatpush1.bf16.msra.mxu0 %v3913_v32  ;;  %1736 = vmatpush1.bf16.msra.mxu1 %v3919_v33  ;;  %v5955_v32 = vld [vmem:[#allocation25_spill] sm:$0xff]  ;;  %v5956_v33 = vld [vmem:[#allocation26_spill] sm:$0xff] }
 0x597   :  { %1696 = vmatprep.subr.bf16.mxu0 %v3925_v34  ;;  %1737 = vmatprep.subr.bf16.mxu1 %v3931_v36  ;;  %v5957_v34 = vld [vmem:[#allocation27_spill] sm:$0xff]  ;;  %v5958_v36 = vld [vmem:[#allocation28_spill] sm:$0xff] }
 0x59a   :  { %1697 = vmatpush1.bf16.msra.mxu0 %v3937_v38  ;;  %1738 = vmatpush1.bf16.msra.mxu1 %v3943_v39  ;;  %v5959_v38 = vld [vmem:[#allocation29_spill] sm:$0xff]  ;;  %v5960_v39 = vld [vmem:[#allocation30_spill] sm:$0xff] }
 0x59b   :  { %1698 = vmatprep.subr.bf16.mxu0 %v3949_v40  ;;  %1739 = vmatprep.subr.bf16.mxu1 %v3955_v41  ;;  %v5961_v40 = vld [vmem:[#allocation31_spill] sm:$0xff]  ;;  %v5962_v41 = vld [vmem:[#allocation32_spill] sm:$0xff] }
 0x59e   :  { %1699 = vmatpush1.bf16.msra.mxu0 %v3961_v42  ;;  %1740 = vmatpush1.bf16.msra.mxu1 %v3967_v43  ;;  %v5963_v42 = vld [vmem:[#allocation33_spill] sm:$0xff]  ;;  %v5964_v43 = vld [vmem:[#allocation34_spill] sm:$0xff] }
 0x59f   :  { %1700 = vmatprep.subr.bf16.mxu0 %v3973_v44  ;;  %1741 = vmatprep.subr.bf16.mxu1 %v3979_v45  ;;  %v5965_v44 = vld [vmem:[#allocation35_spill] sm:$0xff]  ;;  %v5966_v45 = vld [vmem:[#allocation36_spill] sm:$0xff] }
 0x5a2   :  { %1701 = vmatpush1.bf16.msra.mxu0 %v3985_v46  ;;  %1742 = vmatpush1.bf16.msra.mxu1 %v3991_v47  ;;  %v5967_v46 = vld [vmem:[#allocation37_spill] sm:$0xff]  ;;  %v5968_v47 = vld [vmem:[#allocation38_spill] sm:$0xff] }
 0x5a3   :  { %1702 = vmatprep.subr.bf16.mxu0 %v3997_v48  ;;  %1743 = vmatprep.subr.bf16.mxu1 %v4003_v50  ;;  %v5969_v48 = vld [vmem:[#allocation39_spill] sm:$0xff]  ;;  %v5970_v50 = vld [vmem:[#allocation40_spill] sm:$0xff] }
 0x5a6   :  { %1703 = vmatpush1.bf16.msra.mxu0 %v4009_v2  ;;  %1744 = vmatpush1.bf16.msra.mxu1 %v4015_v3  ;;  %v5971_v2 = vld [vmem:[#allocation41_spill] sm:$0xff]  ;;  %v5972_v3 = vld [vmem:[#allocation42_spill] sm:$0xff] }
 0x5a7   :  { %1794 = vmatprep.subr.bf16.mxu0 %v4021_v5  ;;  %1835 = vmatprep.subr.bf16.mxu1 %v4027_v0  ;;  %v5973_v5 = vld [vmem:[#allocation43_spill] sm:$0xff]  ;;  %v5974_v0 = vld [vmem:[#allocation44_spill] sm:$0xff] }
 0x5a9   :  { %1721 = vmatmul.mubr.bf16.vlgmr.msra.gmra.mrb[40].mxu0 %v1581_v20  ;;  %1762 = vmatmul.mubr.bf16.vlgmr.msra.gmra.mrb[40].mxu1 %v1581_v20 }
 0x5aa   :  { %1795 = vmatpush1.bf16.msra.mxu0 %v4033_v55  ;;  %1836 = vmatpush1.bf16.msra.mxu1 %v4039_v51  ;;  %v5975_v55 = vld [vmem:[#allocation45_spill] sm:$0xff]  ;;  %v5976_v51 = vld [vmem:[#allocation46_spill] sm:$0xff] }
 0x5ab   :  { %1796 = vmatprep.subr.bf16.mxu0 %v4045_v6  ;;  %1837 = vmatprep.subr.bf16.mxu1 %v4051_v52  ;;  %v5977_v6 = vld [vmem:[#allocation47_spill] sm:$0xff]  ;;  %v5978_v52 = vld [vmem:[#allocation48_spill] sm:$0xff] }
 0x5ae   :  { %1797 = vmatpush1.bf16.msra.mxu0 %v4057_v7  ;;  %1838 = vmatpush1.bf16.msra.mxu1 %v4063_v61  ;;  %v5979_v7 = vld [vmem:[#allocation49_spill] sm:$0xff]  ;;  %v5980_v61 = vld [vmem:[#allocation50_spill] sm:$0xff] }
 0x5af   :  { %1798 = vmatprep.subr.bf16.mxu0 %v4069_v57  ;;  %1839 = vmatprep.subr.bf16.mxu1 %v4075_v12  ;;  %v5981_v57 = vld [vmem:[#allocation51_spill] sm:$0xff]  ;;  %v5982_v12 = vld [vmem:[#allocation52_spill] sm:$0xff] }
 0x5b2   :  { %1799 = vmatpush1.bf16.msra.mxu0 %v5892_v8  ;;  %1840 = vmatpush1.bf16.msra.mxu1 %v5893_v54  ;;  %v5983_v8 = vld [vmem:[#allocation53_spill] sm:$0xff]  ;;  %v5984_v54 = vld [vmem:[#allocation54_spill] sm:$0xff] }
 0x5b3   :  { %1800 = vmatprep.subr.bf16.mxu0 %v5894_v60  ;;  %1841 = vmatprep.subr.bf16.mxu1 %v5895_v56  ;;  %v5985_v60 = vld [vmem:[#allocation55_spill] sm:$0xff]  ;;  %v5986_v56 = vld [vmem:[#allocation6_spill] sm:$0xff] }
 0x5b6   :  { %1801 = vmatpush1.bf16.msra.mxu0 %v5896_v37  ;;  %1842 = vmatpush1.bf16.msra.mxu1 %v5897_v62  ;;  %v5987_v37 = vld [vmem:[#allocation56_spill] sm:$0xff]  ;;  %v5988_v62 = vld [vmem:[#allocation57_spill] sm:$0xff] }
 0x5b7   :  { %1802 = vmatprep.subr.bf16.mxu0 %v5898_v4  ;;  %1843 = vmatprep.subr.bf16.mxu1 %v5899_v63  ;;  %v5989_v4 = vld [vmem:[#allocation58_spill] sm:$0xff]  ;;  %v5990_v63 = vld [vmem:[#allocation59_spill] sm:$0xff] }
 0x5ba   :  { %1803 = vmatpush1.bf16.msra.mxu0 %v5900_v11  ;;  %1844 = vmatpush1.bf16.msra.mxu1 %v5901_v23  ;;  %v5991_v11 = vld [vmem:[#allocation60_spill] sm:$0xff]  ;;  %v5992_v23 = vld [vmem:[#allocation61_spill] sm:$0xff] }
 0x5bb   :  { %1804 = vmatprep.subr.bf16.mxu0 %v5952_v9  ;;  %1845 = vmatprep.subr.bf16.mxu1 %v5953_v30 }
 0x5be   :  { %1805 = vmatpush1.bf16.msra.mxu0 %v5954_v31  ;;  %1846 = vmatpush1.bf16.msra.mxu1 %v5955_v32 }
 0x5bf   :  { %1806 = vmatprep.subr.bf16.mxu0 %v5956_v33  ;;  %1847 = vmatprep.subr.bf16.mxu1 %v5957_v34 }
 0x5c2   :  { %1807 = vmatpush1.bf16.msra.mxu0 %v5958_v36  ;;  %1848 = vmatpush1.bf16.msra.mxu1 %v5959_v38  ;;  %v5997_v38 = vld [vmem:[#allocation9_spill] sm:$0xff] }
 0x5c3   :  { %1808 = vmatprep.subr.bf16.mxu0 %v5960_v39  ;;  %1849 = vmatprep.subr.bf16.mxu1 %v5961_v40  ;;  %v5998_v40 = vld [vmem:[#allocation10_spill] sm:$0xff] }
 0x5c6   :  { %1809 = vmatpush1.bf16.msra.mxu0 %v5962_v41  ;;  %1850 = vmatpush1.bf16.msra.mxu1 %v5963_v42 }
 0x5c7   :  { %1810 = vmatprep.subr.bf16.mxu0 %v5964_v43  ;;  %1851 = vmatprep.subr.bf16.mxu1 %v5965_v44 }
 0x5ca   :  { %1811 = vmatpush1.bf16.msra.mxu0 %v5966_v45  ;;  %1852 = vmatpush1.bf16.msra.mxu1 %v5967_v46 }
 0x5cb   :  { %1812 = vmatprep.subr.bf16.mxu0 %v5968_v47  ;;  %1853 = vmatprep.subr.bf16.mxu1 %v5969_v48 }
 0x5ce   :  { %1813 = vmatpush1.bf16.msra.mxu0 %v5970_v50  ;;  %1854 = vmatpush1.bf16.msra.mxu1 %v5971_v2 }
 0x5cf   :  { %1814 = vmatprep.subr.bf16.mxu0 %v5972_v3  ;;  %1855 = vmatprep.subr.bf16.mxu1 %v5973_v5  ;;  %v5999_v3 = vld [vmem:[#allocation11_spill] sm:$0xff] }
 0x5d2   :  { %1815 = vmatpush1.bf16.msra.mxu0 %v5974_v0  ;;  %1856 = vmatpush1.bf16.msra.mxu1 %v5975_v55 }
 0x5d3   :  { %1816 = vmatprep.subr.bf16.mxu0 %v5976_v51  ;;  %1857 = vmatprep.subr.bf16.mxu1 %v5977_v6  ;;  %v2440_v6 = vld [vmem:[%s5401_s0 + $0xa0] sm:$0xff] }
 0x5d6   :  { %1817 = vmatpush1.bf16.msra.mxu0 %v5978_v52  ;;  %1858 = vmatpush1.bf16.msra.mxu1 %v5979_v7  ;;  %v2441_v52 = vld [vmem:[%s5401_s0 + $0xa8] sm:$0xff] }
 0x5d7   :  { %1818 = vmatprep.subr.bf16.mxu0 %v5980_v61  ;;  %1859 = vmatprep.subr.bf16.mxu1 %v5981_v57 }
 0x5da   :  { %1819 = vmatpush1.bf16.msra.mxu0 %v5982_v12  ;;  %1860 = vmatpush1.bf16.msra.mxu1 %v5983_v8 }
 0x5db   :  { %1820 = vmatprep.subr.bf16.mxu0 %v5984_v54  ;;  %1861 = vmatprep.subr.bf16.mxu1 %v5985_v60  ;;  %v2442_v60 = vld [vmem:[%s5401_s0 + $0xb0] sm:$0xff] }
 0x5de   :  { %1821 = vmatpush1.bf16.msra.mxu0 %v5986_v56  ;;  %1862 = vmatpush1.bf16.msra.mxu1 %v5987_v37 }
 0x5df   :  { %1822 = vmatprep.subr.bf16.mxu0 %v5988_v62  ;;  %1863 = vmatprep.subr.bf16.mxu1 %v5989_v4 }
 0x5e2   :  { %1823 = vmatpush1.bf16.msra.mxu0 %v5990_v63  ;;  %1864 = vmatpush1.bf16.msra.mxu1 %v5991_v11 }
 0x5e3   :  { %1824 = vmatprep.subr.bf16.mxu0 %v5992_v23  ;;  %1865 = vmatprep.subr.bf16.mxu1 %v5993_v13 }
 0x5e6   :  { %1825 = vmatpush1.bf16.msra.mxu0 %v5994_v26  ;;  %1866 = vmatpush1.bf16.msra.mxu1 %v5995_v22 }
 0x5e7   :  { %1899 = vmatprep.subr.bf16.mxu0 %v4694_v24  ;;  %1940 = vmatprep.subr.bf16.mxu1 %v4700_v16 }
 0x65c   :  { %v1617_v14 = vpop.f32.mrb[36].mxu0  ;;  %v1658_v28 = vpop.f32.mrb[36].mxu1 }
 0x65d   :  { %v1618_v21 = vadd.f32 %v1617_v14, %v5996_v1  ;;  %v1619_v59 = vpop.f32.mrb[37].mxu0  ;;  %v1660_v20 = vpop.f32.mrb[37].mxu1  ;;  %v1659_v39 = vadd.f32 %v1658_v28, %v5997_v38  ;;  %v2443_v14 = vld [vmem:[%s5401_s0 + $0xb8] sm:$0xff] }
 0x65e   :  { %v1620_v9 = vadd.f32 %v1619_v59, %v3675_v53  ;;  %v1621_v30 = vpop.f32.mrb[38].mxu0  ;;  %v1662_v31 = vpop.f32.mrb[38].mxu1  ;;  %v1661_v41 = vadd.f32 %v1660_v20, %v5998_v40 }
 0x65f   :  { %v1665_v32 = vmul.f32 0.5, %v1618_v21  ;;  %v1622_v33 = vpop.f32.mrb[39].mxu0  ;;  %v1663_v34 = vpop.f32.mrb[39].mxu1 }
 0x660   :  { %v1669_v36 = vmul.f32 0.5, %v1620_v9  ;;  %v1674_v42 = vmul.f32 0.5, %v1661_v41 }
 0x661   :  { %2688 = vtanh.f32 %v1665_v32 }
 0x662   :  { %2690 = vtanh.f32 %v1669_v36 }
 0x663   :  { %2692 = vtanh.f32 %v1659_v39 }
 0x664   :  { %2694 = vtanh.f32 %v1674_v42 }
 0x66b   :  { %v2689_v43 = vpop.eup %2688 }
 0x66c   :  { %v2691_v44 = vpop.eup %2690  ;;  %v1667_v45 = vmul.f32 0.5, %v2689_v43 }
 0x66d   :  { %v1671_v46 = vmul.f32 0.5, %v2691_v44  ;;  %v2693_v48 = vpop.eup %2692 }
 0x66e   :  { %v1668_v47 = vadd.f32 0.5, %v1667_v45  ;;  %v2695_v55 = vpop.eup %2694 }
 0x66f   :  { %v1672_v50 = vadd.f32 0.5, %v1671_v46  ;;  %v1676_v51 = vmul.f32 0.5, %v2695_v55  ;;  %v4777_v55 = vld [vmem:[%s5399_s1 + $0x8c] ss:$16 sps:$4 sm:$0xff]  }
 0x670   :  { %v1679_v2 = vmul.f32 %v2693_v48, %v1668_v47  ;;  %v4746_v48 = vld [vmem:[%s5399_s1 + $0x48] ss:$16 sps:$4 sm:$0xff]  }
 0x671   :  { %v1678_v5 = vmul.f32 %v1672_v50, %v5999_v3  ;;  %v1677_v54 = vadd.f32 0.5, %v1676_v51  ;;  %v4753_v50 = vld [vmem:[%s5399_s1 + $0x6c] ss:$16 sps:$4 sm:$0xff]   ;;  %v4765_v3 = vld [vmem:[%s5399_s1 + $0x68] ss:$16 sps:$4 sm:$0xff]  }
 0x672   :  { %v4783_v51 = vld [vmem:[%s5399_s1 + $0x80] ss:$16 sps:$4 sm:$0xff]  }
 0x673   :  { %v4708_v0 = vadd.f32 %v1679_v2, %v1678_v5  ;;  %v4759_v2 = vld [vmem:[%s5399_s1 + $0x60] ss:$16 sps:$4 sm:$0xff]   ;;  %v4771_v5 = vld [vmem:[%s5399_s1 + $0x84] ss:$16 sps:$4 sm:$0xff]  }
 0x675   :  { %2696 = vtanh.f32 %v4708_v0 }
 0x67c   :  { %v1722_v7 = vpop.f32.mrb[40].mxu0  ;;  %v1763_v61 = vpop.f32.mrb[40].mxu1 }
 0x67d   :  { %v1770_v57 = vadd.f32 %v2440_v6, %v1722_v7  ;;  %v1724_v12 = vpop.f32.mrb[41].mxu0  ;;  %v1765_v8 = vpop.f32.mrb[41].mxu1  ;;  %v1772_v22 = vadd.f32 %v2442_v60, %v1763_v61  ;;  %v4789_v6 = vld [vmem:[%s5399_s1 + $0x88] ss:$16 sps:$4 sm:$0xff]   ;;  %v4801_v7 = vld [vmem:[%s5399_s1 + $0xac] ss:$16 sps:$4 sm:$0xff]  }
 0x67e   :  { %v1771_v56 = vadd.f32 %v2441_v52, %v1724_v12  ;;  %v1726_v37 = vpop.f32.mrb[42].mxu0  ;;  %v1767_v62 = vpop.f32.mrb[42].mxu1  ;;  %v1773_v21 = vadd.f32 %v2443_v14, %v1765_v8  ;;  %v4795_v52 = vld [vmem:[%s5399_s1 + $0xa4] ss:$16 sps:$4 sm:$0xff]   ;;  %v4807_v61 = vld [vmem:[%s5399_s1 + $0xa0] ss:$16 sps:$4 sm:$0xff]  }
 0x67f   :  { %v2697_v4 = vpop.eup %2696  ;;  %v1774_v63 = vmul.f32 0.5, %v1770_v57  ;;  %v1727_v11 = vpop.f32.mrb[43].mxu0  ;;  %v4813_v57 = vld [vmem:[%s5399_s1 + $0xa8] ss:$16 sps:$4 sm:$0xff]   ;;  %v4819_v12 = vld [vmem:[%s5399_s1 + $0xc4] ss:$16 sps:$4 sm:$0xff]  }
 0x680   :  { %v1768_v23 = vpop.f32.mrb[43].mxu1  ;;  %v1778_v13 = vmul.f32 0.5, %v1771_v56  ;;  %v1682_v26 = vmul.f32 %v2697_v4, %v1677_v54  ;;  %v1783_v59 = vmul.f32 0.5, %v1773_v21  ;;  %v4825_v8 = vld [vmem:[%s5399_s1 + $0xcc] ss:$16 sps:$4 sm:$0xff]  }
 0x681   :  { %2698 = vtanh.f32 %v1774_v63  ;;  %v4831_v54 = vld [vmem:[%s5399_s1 + $0xc0] ss:$16 sps:$4 sm:$0xff]   ;;  %v4837_v60 = vld [vmem:[%s5399_s1 + $0xc8] ss:$16 sps:$4 sm:$0xff]   ;;  %v4843_v56 = vld [vmem:[%s5399_s1 + $0xe4] ss:$16 sps:$4 sm:$0xff]  }
 0x682   :  { %2700 = vtanh.f32 %v1778_v13  ;;  %v1793_v28 = vpack.c.bf16 %v1682_v26, %v1682_v26  ;;  %v4849_v37 = vld [vmem:[%s5399_s1 + $0xec] ss:$16 sps:$4 sm:$0xff]   ;;  %v4855_v62 = vld [vmem:[%s5399_s1 + $0xe0] ss:$16 sps:$4 sm:$0xff]   ;;  %v4861_v4 = vld [vmem:[%s5399_s1 + $0xe8] ss:$16 sps:$4 sm:$0xff]  }
 0x683   :  { %2702 = vtanh.f32 %v1772_v22  ;;  %v4867_v63 = vld [vmem:[%s5400_s2 + $0x4] ss:$16 sps:$4 sm:$0xff]   ;;  %v4873_v11 = vld [vmem:[%s5400_s2 + $0xc] ss:$16 sps:$4 sm:$0xff]   ;;  %v4879_v23 = vld [vmem:[%s5400_s2] ss:$16 sps:$4 sm:$0xff]  }
 0x684   :  { %1826 = vmatprep.mubr.bf16.mxu0 %v1793_v28  ;;  %1867 = vmatprep.mubr.bf16.mxu1 %v1793_v28  ;;  %2704 = vtanh.f32 %v1783_v59  ;;  %v4885_v13 = vld [vmem:[%s5400_s2 + $0x8] ss:$16 sps:$4 sm:$0xff]   ;;  %v4891_v26 = vld [vmem:[%s5400_s2 + $0x24] ss:$16 sps:$4 sm:$0xff]   ;;  %v4897_v22 = vld [vmem:[%s5400_s2 + $0x2c] ss:$16 sps:$4 sm:$0xff]  }
 0x685   :  { %v4903_v14 = vld [vmem:[%s5400_s2 + $0x20] ss:$16 sps:$4 sm:$0xff]   ;;  %v4909_v28 = vld [vmem:[%s5400_s2 + $0x28] ss:$16 sps:$4 sm:$0xff]   ;;  %v4915_v21 = vld [vmem:[%s5400_s2 + $0x44] ss:$16 sps:$4 sm:$0xff]  }
 0x686   :  { %v4921_v59 = vld [vmem:[%s5400_s2 + $0x4c] ss:$16 sps:$4 sm:$0xff]  }
 0x68b   :  { %v2699_v20 = vpop.eup %2698 }
 0x68c   :  { %v2701_v9 = vpop.eup %2700  ;;  %v1776_v30 = vmul.f32 0.5, %v2699_v20  ;;  %v4927_v20 = vld [vmem:[%s5400_s2 + $0x40] ss:$16 sps:$4 sm:$0xff]  }
 0x68d   :  { %v1780_v31 = vmul.f32 0.5, %v2701_v9  ;;  %v2703_v33 = vpop.eup %2702  ;;  %6000 = vst [vmem:[#allocation13_spill] sm:$0xff] %v4927_v20  ;;  %v4933_v9 = vld [vmem:[%s5400_s2 + $0x48] ss:$16 sps:$4 sm:$0xff]  }
 0x68e   :  { %v1777_v32 = vadd.f32 0.5, %v1776_v30  ;;  %v2705_v42 = vpop.eup %2704  ;;  %6001 = vst [vmem:[#allocation14_spill] sm:$0xff] %v4933_v9  ;;  %v4939_v30 = vld [vmem:[%s5400_s2 + $0x64] ss:$16 sps:$4 sm:$0xff]  }
 0x68f   :  { %v1781_v34 = vadd.f32 0.5, %v1780_v31  ;;  %v1785_v43 = vmul.f32 0.5, %v2705_v42  ;;  %6002 = vst [vmem:[#allocation16_spill] sm:$0xff] %v4939_v30  ;;  %v4945_v31 = vld [vmem:[%s5400_s2 + $0x6c] ss:$16 sps:$4 sm:$0xff]  }
 0x690   :  { %v1788_v36 = vmul.f32 %v2703_v33, %v1777_v32  ;;  %6003 = vst [vmem:[#allocation15_spill] sm:$0xff] %v4945_v31  ;;  %v4951_v32 = vld [vmem:[%s5400_s2 + $0x60] ss:$16 sps:$4 sm:$0xff]   ;;  %v4957_v33 = vld [vmem:[%s5400_s2 + $0x68] ss:$16 sps:$4 sm:$0xff]  }
 0x691   :  { %v1787_v39 = vmul.f32 %v1781_v34, %v4547_v17  ;;  %v1786_v44 = vadd.f32 0.5, %v1785_v43  ;;  %v4739_v17 = vld [vmem:[%s5399_s1 + $0x4c] ss:$16 sps:$4 sm:$0xff]   ;;  %6004 = vst [vmem:[#allocation17_spill] sm:$0xff] %v4951_v32  ;;  %6005 = vst [vmem:[#allocation18_spill] sm:$0xff] %v4957_v33 }
 0x692   :  { %v4963_v34 = vld [vmem:[%s5400_s2 + $0x84] ss:$16 sps:$4 sm:$0xff]   ;;  %v4981_v42 = vld [vmem:[%s5400_s2 + $0x88] ss:$16 sps:$4 sm:$0xff]  }
 0x693   :  { %v4724_v41 = vadd.f32 %v1788_v36, %v1787_v39  ;;  %6006 = vst [vmem:[#allocation19_spill] sm:$0xff] %v4963_v34  ;;  %v4969_v36 = vld [vmem:[%s5400_s2 + $0x8c] ss:$16 sps:$4 sm:$0xff]   ;;  %v4975_v39 = vld [vmem:[%s5400_s2 + $0x80] ss:$16 sps:$4 sm:$0xff]   ;;  %6009 = vst [vmem:[#allocation7_spill] sm:$0xff] %v4981_v42 }
 0x694   :  { %6007 = vst [vmem:[#allocation20_spill] sm:$0xff] %v4969_v36  ;;  %6008 = vst [vmem:[#allocation21_spill] sm:$0xff] %v4975_v39  ;;  %v4987_v43 = vld [vmem:[%s5400_s2 + $0xa4] ss:$16 sps:$4 sm:$0xff]  }
 0x695   :  { %2706 = vtanh.f32 %v4724_v41  ;;  %6010 = vst [vmem:[#allocation12_spill] sm:$0xff] %v4987_v43 }
 0x69f   :  { %v2707_v45 = vpop.eup %2706 }
 0x6a0   :  { %v1791_v46 = vmul.f32 %v2707_v45, %v1786_v44  ;;  %v4993_v44 = vld [vmem:[%s5400_s2 + $0xac] ss:$16 sps:$4 sm:$0xff]   ;;  %v4999_v45 = vld [vmem:[%s5400_s2 + $0xa0] ss:$16 sps:$4 sm:$0xff]  }
 0x6a1   :  { %6011 = vst [vmem:[#allocation65_spill] sm:$0xff] %v4993_v44  ;;  %6012 = vst [vmem:[#allocation22_spill] sm:$0xff] %v4999_v45 }
 0x6a2   :  { %v1792_v47 = vpack.c.bf16 %v1791_v46, %v1791_v46  ;;  %v5005_v46 = vld [vmem:[%s5400_s2 + $0xa8] ss:$16 sps:$4 sm:$0xff]  }
 0x6a3   :  { %6013 = vst [vmem:[#allocation23_spill] sm:$0xff] %v5005_v46 }
 0x6a4   :  { %1827 = vmatmul.mubr.bf16.vlgmr.msra.gmra.mrb[44].mxu0 %v1792_v47  ;;  %1868 = vmatmul.mubr.bf16.vlgmr.msra.gmra.mrb[44].mxu1 %v1792_v47 }
 0x6a5   :  { %1900 = vmatpush1.bf16.msra.mxu0 %v4553_v35  ;;  %1941 = vmatpush1.bf16.msra.mxu1 %v4559_v19 }
 0x6a6   :  { %1901 = vmatprep.subr.bf16.mxu0 %v4565_v27  ;;  %1942 = vmatprep.subr.bf16.mxu1 %v4571_v58 }
 0x6a7   :  { %1931 = vmatprep.mubr.bf16.mxu0 %v5732_v49  ;;  %1972 = vmatprep.mubr.bf16.mxu1 %v5732_v49 }
 0x6a9   :  { %1902 = vmatpush1.bf16.msra.mxu0 %v4579_v10  ;;  %1943 = vmatpush1.bf16.msra.mxu1 %v4585_v25 }
 0x6aa   :  { %1903 = vmatprep.subr.bf16.mxu0 %v4591_v29  ;;  %1944 = vmatprep.subr.bf16.mxu1 %v4739_v17 }
 0x6ad   :  { %1904 = vmatpush1.bf16.msra.mxu0 %v4598_v18  ;;  %1945 = vmatpush1.bf16.msra.mxu1 %v4746_v48 }
 0x6ae   :  { %1905 = vmatprep.subr.bf16.mxu0 %v4605_v15  ;;  %1946 = vmatprep.subr.bf16.mxu1 %v4753_v50 }
 0x6b1   :  { %1906 = vmatpush1.bf16.msra.mxu0 %v4759_v2  ;;  %1947 = vmatpush1.bf16.msra.mxu1 %v4765_v3 }
 0x6b2   :  { %1907 = vmatprep.subr.bf16.mxu0 %v4771_v5  ;;  %1948 = vmatprep.subr.bf16.mxu1 %v4777_v55 }
 0x6b5   :  { %1908 = vmatpush1.bf16.msra.mxu0 %v4783_v51  ;;  %1949 = vmatpush1.bf16.msra.mxu1 %v4789_v6 }
 0x6b6   :  { %1909 = vmatprep.subr.bf16.mxu0 %v4795_v52  ;;  %1950 = vmatprep.subr.bf16.mxu1 %v4801_v7 }
 0x6b9   :  { %1910 = vmatpush1.bf16.msra.mxu0 %v4807_v61  ;;  %1951 = vmatpush1.bf16.msra.mxu1 %v4813_v57 }
 0x6ba   :  { %1911 = vmatprep.subr.bf16.mxu0 %v4819_v12  ;;  %1952 = vmatprep.subr.bf16.mxu1 %v4825_v8 }
 0x6bd   :  { %1912 = vmatpush1.bf16.msra.mxu0 %v4831_v54  ;;  %1953 = vmatpush1.bf16.msra.mxu1 %v4837_v60 }
 0x6be   :  { %1913 = vmatprep.subr.bf16.mxu0 %v4843_v56  ;;  %1954 = vmatprep.subr.bf16.mxu1 %v4849_v37 }
 0x6c1   :  { %1914 = vmatpush1.bf16.msra.mxu0 %v4855_v62  ;;  %1955 = vmatpush1.bf16.msra.mxu1 %v4861_v4 }
 0x6c2   :  { %2005 = vmatprep.subr.bf16.mxu0 %v4867_v63  ;;  %2046 = vmatprep.subr.bf16.mxu1 %v4873_v11 }
 0x6c4   :  { %1932 = vmatmul.mubr.bf16.vlgmr.msra.gmra.mrb[48].mxu0 %v1792_v47  ;;  %1973 = vmatmul.mubr.bf16.vlgmr.msra.gmra.mrb[48].mxu1 %v1792_v47  ;;  %v5011_v47 = vld [vmem:[%s5400_s2 + $0xc4] ss:$16 sps:$4 sm:$0xff]  }
 0x6c5   :  { %2006 = vmatpush1.bf16.msra.mxu0 %v4879_v23  ;;  %2047 = vmatpush1.bf16.msra.mxu1 %v4885_v13  ;;  %6014 = vst [vmem:[#allocation24_spill] sm:$0xff] %v5011_v47 }
 0x6c6   :  { %2007 = vmatprep.subr.bf16.mxu0 %v4891_v26  ;;  %2048 = vmatprep.subr.bf16.mxu1 %v4897_v22 }
 0x6c9   :  { %2008 = vmatpush1.bf16.msra.mxu0 %v4903_v14  ;;  %2049 = vmatpush1.bf16.msra.mxu1 %v4909_v28 }
 0x6ca   :  { %2009 = vmatprep.subr.bf16.mxu0 %v4915_v21  ;;  %2050 = vmatprep.subr.bf16.mxu1 %v4921_v59 }
 0x6cd   :  { %2010 = vmatpush1.bf16.msra.mxu0 %v4927_v20  ;;  %2051 = vmatpush1.bf16.msra.mxu1 %v4933_v9 }
 0x6ce   :  { %2011 = vmatprep.subr.bf16.mxu0 %v4939_v30  ;;  %2052 = vmatprep.subr.bf16.mxu1 %v4945_v31 }
 0x6d1   :  { %2012 = vmatpush1.bf16.msra.mxu0 %v4951_v32  ;;  %2053 = vmatpush1.bf16.msra.mxu1 %v4957_v33 }
 0x6d2   :  { %2013 = vmatprep.subr.bf16.mxu0 %v4963_v34  ;;  %2054 = vmatprep.subr.bf16.mxu1 %v4969_v36 }
 0x6d5   :  { %2014 = vmatpush1.bf16.msra.mxu0 %v4975_v39  ;;  %2055 = vmatpush1.bf16.msra.mxu1 %v4981_v42 }
 0x6d6   :  { %2015 = vmatprep.subr.bf16.mxu0 %v4987_v43  ;;  %2056 = vmatprep.subr.bf16.mxu1 %v4993_v44  ;;  %v5017_v44 = vld [vmem:[%s5400_s2 + $0xcc] ss:$16 sps:$4 sm:$0xff]  }
 0x6d7   :  { %6015 = vst [vmem:[#allocation25_spill] sm:$0xff] %v5017_v44 }
 0x6d9   :  { %2016 = vmatpush1.bf16.msra.mxu0 %v4999_v45  ;;  %2057 = vmatpush1.bf16.msra.mxu1 %v5005_v46  ;;  %v5023_v45 = vld [vmem:[%s5400_s2 + $0xc0] ss:$16 sps:$4 sm:$0xff]   ;;  %v5029_v46 = vld [vmem:[%s5400_s2 + $0xc8] ss:$16 sps:$4 sm:$0xff]  }
 0x6da   :  { %2017 = vmatprep.subr.bf16.mxu0 %v5011_v47  ;;  %2058 = vmatprep.subr.bf16.mxu1 %v5017_v44  ;;  %6016 = vst [vmem:[#allocation26_spill] sm:$0xff] %v5023_v45  ;;  %6017 = vst [vmem:[#allocation27_spill] sm:$0xff] %v5029_v46  ;;  %v5035_v47 = vld [vmem:[%s5400_s2 + $0xe4] ss:$16 sps:$4 sm:$0xff]   ;;  %v5041_v44 = vld [vmem:[%s5400_s2 + $0xec] ss:$16 sps:$4 sm:$0xff]  }
 0x6db   :  { %6018 = vst [vmem:[#allocation28_spill] sm:$0xff] %v5035_v47  ;;  %6019 = vst [vmem:[#allocation29_spill] sm:$0xff] %v5041_v44 }
 0x6dd   :  { %2018 = vmatpush1.bf16.msra.mxu0 %v5023_v45  ;;  %2059 = vmatpush1.bf16.msra.mxu1 %v5029_v46  ;;  %v5047_v45 = vld [vmem:[%s5400_s2 + $0xe0] ss:$16 sps:$4 sm:$0xff]   ;;  %v5053_v46 = vld [vmem:[%s5400_s2 + $0xe8] ss:$16 sps:$4 sm:$0xff]  }
 0x6de   :  { %2019 = vmatprep.subr.bf16.mxu0 %v5035_v47  ;;  %2060 = vmatprep.subr.bf16.mxu1 %v5041_v44  ;;  %6020 = vst [vmem:[#allocation30_spill] sm:$0xff] %v5047_v45  ;;  %6021 = vst [vmem:[#allocation31_spill] sm:$0xff] %v5053_v46  ;;  %v5059_v47 = vld [vmem:[%s5400_s2 + $0x104] ss:$16 sps:$4 sm:$0xff]   ;;  %v5065_v44 = vld [vmem:[%s5400_s2 + $0x10c] ss:$16 sps:$4 sm:$0xff]  }
 0x6df   :  { %6022 = vst [vmem:[#allocation32_spill] sm:$0xff] %v5059_v47  ;;  %6023 = vst [vmem:[#allocation33_spill] sm:$0xff] %v5065_v44 }
 0x6e1   :  { %2020 = vmatpush1.bf16.msra.mxu0 %v5047_v45  ;;  %2061 = vmatpush1.bf16.msra.mxu1 %v5053_v46  ;;  %v5071_v45 = vld [vmem:[%s5400_s2 + $0x100] ss:$16 sps:$4 sm:$0xff]   ;;  %v5077_v46 = vld [vmem:[%s5400_s2 + $0x108] ss:$16 sps:$4 sm:$0xff]  }
 0x6e2   :  { %2021 = vmatprep.subr.bf16.mxu0 %v5059_v47  ;;  %2062 = vmatprep.subr.bf16.mxu1 %v5065_v44  ;;  %6024 = vst [vmem:[#allocation34_spill] sm:$0xff] %v5071_v45  ;;  %6025 = vst [vmem:[#allocation35_spill] sm:$0xff] %v5077_v46  ;;  %v5083_v47 = vld [vmem:[%s5400_s2 + $0x124] ss:$16 sps:$4 sm:$0xff]   ;;  %v5089_v44 = vld [vmem:[%s5400_s2 + $0x12c] ss:$16 sps:$4 sm:$0xff]  }
 0x6e3   :  { %6026 = vst [vmem:[#allocation36_spill] sm:$0xff] %v5083_v47  ;;  %6027 = vst [vmem:[#allocation37_spill] sm:$0xff] %v5089_v44 }
 0x6e5   :  { %2022 = vmatpush1.bf16.msra.mxu0 %v5071_v45  ;;  %2063 = vmatpush1.bf16.msra.mxu1 %v5077_v46  ;;  %v5095_v45 = vld [vmem:[%s5400_s2 + $0x120] ss:$16 sps:$4 sm:$0xff]   ;;  %v5101_v46 = vld [vmem:[%s5400_s2 + $0x128] ss:$16 sps:$4 sm:$0xff]  }
 0x6e6   :  { %2023 = vmatprep.subr.bf16.mxu0 %v5083_v47  ;;  %2064 = vmatprep.subr.bf16.mxu1 %v5089_v44  ;;  %6028 = vst [vmem:[#allocation38_spill] sm:$0xff] %v5095_v45  ;;  %6029 = vst [vmem:[#allocation39_spill] sm:$0xff] %v5101_v46  ;;  %v5107_v47 = vld [vmem:[%s5400_s2 + $0x144] ss:$16 sps:$4 sm:$0xff]   ;;  %v5113_v44 = vld [vmem:[%s5400_s2 + $0x14c] ss:$16 sps:$4 sm:$0xff]  }
 0x6e7   :  { %6030 = vst [vmem:[#allocation40_spill] sm:$0xff] %v5107_v47  ;;  %6031 = vst [vmem:[#allocation41_spill] sm:$0xff] %v5113_v44 }
 0x6e9   :  { %2024 = vmatpush1.bf16.msra.mxu0 %v5095_v45  ;;  %2065 = vmatpush1.bf16.msra.mxu1 %v5101_v46  ;;  %v5119_v45 = vld [vmem:[%s5400_s2 + $0x140] ss:$16 sps:$4 sm:$0xff]   ;;  %v5125_v46 = vld [vmem:[%s5400_s2 + $0x148] ss:$16 sps:$4 sm:$0xff]  }
 0x6ea   :  { %2025 = vmatprep.subr.bf16.mxu0 %v5107_v47  ;;  %2066 = vmatprep.subr.bf16.mxu1 %v5113_v44  ;;  %6032 = vst [vmem:[#allocation42_spill] sm:$0xff] %v5119_v45  ;;  %6033 = vst [vmem:[#allocation43_spill] sm:$0xff] %v5125_v46  ;;  %v5131_v47 = vld [vmem:[%s5400_s2 + $0x164] ss:$16 sps:$4 sm:$0xff]   ;;  %v5137_v44 = vld [vmem:[%s5400_s2 + $0x16c] ss:$16 sps:$4 sm:$0xff]  }
 0x6eb   :  { %6034 = vst [vmem:[#allocation44_spill] sm:$0xff] %v5131_v47  ;;  %6035 = vst [vmem:[#allocation45_spill] sm:$0xff] %v5137_v44 }
 0x6ed   :  { %2026 = vmatpush1.bf16.msra.mxu0 %v5119_v45  ;;  %2067 = vmatpush1.bf16.msra.mxu1 %v5125_v46  ;;  %v5143_v45 = vld [vmem:[%s5400_s2 + $0x160] ss:$16 sps:$4 sm:$0xff]   ;;  %v5149_v46 = vld [vmem:[%s5400_s2 + $0x168] ss:$16 sps:$4 sm:$0xff]  }
 0x6ee   :  { %2027 = vmatprep.subr.bf16.mxu0 %v5131_v47  ;;  %2068 = vmatprep.subr.bf16.mxu1 %v5137_v44  ;;  %6036 = vst [vmem:[#allocation46_spill] sm:$0xff] %v5143_v45  ;;  %6037 = vst [vmem:[#allocation47_spill] sm:$0xff] %v5149_v46  ;;  %v5155_v47 = vld [vmem:[%s5400_s2 + $0x184] ss:$16 sps:$4 sm:$0xff]   ;;  %v5161_v44 = vld [vmem:[%s5400_s2 + $0x18c] ss:$16 sps:$4 sm:$0xff]  }
 0x6ef   :  { %6038 = vst [vmem:[#allocation48_spill] sm:$0xff] %v5155_v47  ;;  %6039 = vst [vmem:[#allocation49_spill] sm:$0xff] %v5161_v44 }
 0x6f1   :  { %2028 = vmatpush1.bf16.msra.mxu0 %v5143_v45  ;;  %2069 = vmatpush1.bf16.msra.mxu1 %v5149_v46  ;;  %v5167_v45 = vld [vmem:[%s5400_s2 + $0x180] ss:$16 sps:$4 sm:$0xff]   ;;  %v5173_v46 = vld [vmem:[%s5400_s2 + $0x188] ss:$16 sps:$4 sm:$0xff]  }
 0x6f2   :  { %2029 = vmatprep.subr.bf16.mxu0 %v5155_v47  ;;  %2070 = vmatprep.subr.bf16.mxu1 %v5161_v44  ;;  %6040 = vst [vmem:[#allocation50_spill] sm:$0xff] %v5167_v45  ;;  %6041 = vst [vmem:[#allocation51_spill] sm:$0xff] %v5173_v46  ;;  %v5179_v47 = vld [vmem:[%s5400_s2 + $0x1a4] ss:$16 sps:$4 sm:$0xff]   ;;  %v5185_v44 = vld [vmem:[%s5400_s2 + $0x1ac] ss:$16 sps:$4 sm:$0xff]  }
 0x6f3   :  { %6042 = vst [vmem:[#allocation52_spill] sm:$0xff] %v5179_v47  ;;  %6043 = vst [vmem:[#allocation53_spill] sm:$0xff] %v5185_v44 }
 0x6f5   :  { %2030 = vmatpush1.bf16.msra.mxu0 %v5167_v45  ;;  %2071 = vmatpush1.bf16.msra.mxu1 %v5173_v46  ;;  %v5191_v45 = vld [vmem:[%s5400_s2 + $0x1a0] ss:$16 sps:$4 sm:$0xff]   ;;  %v5197_v46 = vld [vmem:[%s5400_s2 + $0x1a8] ss:$16 sps:$4 sm:$0xff]  }
 0x6f6   :  { %2031 = vmatprep.subr.bf16.mxu0 %v5179_v47  ;;  %2072 = vmatprep.subr.bf16.mxu1 %v5185_v44  ;;  %6044 = vst [vmem:[#allocation54_spill] sm:$0xff] %v5191_v45  ;;  %6045 = vst [vmem:[#allocation55_spill] sm:$0xff] %v5197_v46  ;;  %v5203_v47 = vld [vmem:[%s5400_s2 + $0x1c4] ss:$16 sps:$4 sm:$0xff]   ;;  %v5209_v44 = vld [vmem:[%s5400_s2 + $0x1cc] ss:$16 sps:$4 sm:$0xff]  }
 0x6f7   :  { %6046 = vst [vmem:[#allocation6_spill] sm:$0xff] %v5203_v47  ;;  %6047 = vst [vmem:[#allocation56_spill] sm:$0xff] %v5209_v44 }
 0x6f9   :  { %2032 = vmatpush1.bf16.msra.mxu0 %v5191_v45  ;;  %2073 = vmatpush1.bf16.msra.mxu1 %v5197_v46  ;;  %v5215_v45 = vld [vmem:[%s5400_s2 + $0x1c0] ss:$16 sps:$4 sm:$0xff]   ;;  %v5221_v46 = vld [vmem:[%s5400_s2 + $0x1c8] ss:$16 sps:$4 sm:$0xff]  }
 0x6fa   :  { %2033 = vmatprep.subr.bf16.mxu0 %v5203_v47  ;;  %2074 = vmatprep.subr.bf16.mxu1 %v5209_v44  ;;  %6048 = vst [vmem:[#allocation57_spill] sm:$0xff] %v5215_v45  ;;  %6049 = vst [vmem:[#allocation58_spill] sm:$0xff] %v5221_v46  ;;  %v5227_v47 = vld [vmem:[%s5400_s2 + $0x1e4] ss:$16 sps:$4 sm:$0xff]   ;;  %v5233_v44 = vld [vmem:[%s5400_s2 + $0x1ec] ss:$16 sps:$4 sm:$0xff]  }
 0x6fb   :  { %6050 = vst [vmem:[#allocation59_spill] sm:$0xff] %v5227_v47  ;;  %6051 = vst [vmem:[#allocation60_spill] sm:$0xff] %v5233_v44 }
 0x6fd   :  { %2034 = vmatpush1.bf16.msra.mxu0 %v5215_v45  ;;  %2075 = vmatpush1.bf16.msra.mxu1 %v5221_v46  ;;  %v5239_v45 = vld [vmem:[%s5400_s2 + $0x1e0] ss:$16 sps:$4 sm:$0xff]   ;;  %v5245_v46 = vld [vmem:[%s5400_s2 + $0x1e8] ss:$16 sps:$4 sm:$0xff]  }
 0x6fe   :  { %2035 = vmatprep.subr.bf16.mxu0 %v5227_v47  ;;  %2076 = vmatprep.subr.bf16.mxu1 %v5233_v44  ;;  %6052 = vst [vmem:[#allocation61_spill] sm:$0xff] %v5239_v45  ;;  %6053 = vst [vmem:[#allocation62_spill] sm:$0xff] %v5245_v46 }
 0x701   :  { %2036 = vmatpush1.bf16.msra.mxu0 %v5239_v45  ;;  %2077 = vmatpush1.bf16.msra.mxu1 %v5245_v46 }
 0x702   :  { %2110 = vmatprep.subr.bf16.mxu0 %v4694_v24  ;;  %2151 = vmatprep.subr.bf16.mxu1 %v4700_v16 }
 0x777   :  { %v1828_v47 = vpop.f32.mrb[44].mxu0  ;;  %v1869_v44 = vpop.f32.mrb[44].mxu1 }
 0x778   :  { %v1829_v43 = vadd.f32 %v1828_v47, %v5996_v1  ;;  %v1830_v42 = vpop.f32.mrb[45].mxu0  ;;  %v1871_v39 = vpop.f32.mrb[45].mxu1  ;;  %v1870_v46 = vadd.f32 %v1869_v44, %v5997_v38 }
 0x779   :  { %v1831_v36 = vadd.f32 %v1830_v42, %v3675_v53  ;;  %v1832_v45 = vpop.f32.mrb[46].mxu0  ;;  %v1873_v34 = vpop.f32.mrb[46].mxu1  ;;  %v1872_v24 = vadd.f32 %v1871_v39, %v5998_v40 }
 0x77a   :  { %v1876_v33 = vmul.f32 0.5, %v1829_v43  ;;  %v1833_v32 = vpop.f32.mrb[47].mxu0  ;;  %v1874_v31 = vpop.f32.mrb[47].mxu1 }
 0x77b   :  { %v1880_v30 = vmul.f32 0.5, %v1831_v36  ;;  %v1885_v16 = vmul.f32 0.5, %v1872_v24  ;;  %v2444_v36 = vld [vmem:[%s5401_s0 + $0xc0] sm:$0xff]  ;;  %v2446_v24 = vld [vmem:[%s5401_s0 + $0xd0] sm:$0xff] }
 0x77c   :  { %2708 = vtanh.f32 %v1876_v33 }
 0x77d   :  { %2710 = vtanh.f32 %v1880_v30 }
 0x77e   :  { %2712 = vtanh.f32 %v1870_v46 }
 0x77f   :  { %2714 = vtanh.f32 %v1885_v16 }
 0x786   :  { %v2709_v9 = vpop.eup %2708 }
 0x787   :  { %v2711_v47 = vpop.eup %2710  ;;  %v1878_v1 = vmul.f32 0.5, %v2709_v9  ;;  %v2445_v9 = vld [vmem:[%s5401_s0 + $0xc8] sm:$0xff] }
 0x788   :  { %v1882_v20 = vmul.f32 0.5, %v2711_v47  ;;  %v2713_v45 = vpop.eup %2712 }
 0x789   :  { %v1879_v42 = vadd.f32 0.5, %v1878_v1  ;;  %v2715_v30 = vpop.eup %2714 }
 0x78a   :  { %v1883_v34 = vadd.f32 0.5, %v1882_v20  ;;  %v1887_v33 = vmul.f32 0.5, %v2715_v30 }
 0x78b   :  { %v1890_v43 = vmul.f32 %v2713_v45, %v1879_v42 }
 0x78c   :  { %v1889_v31 = vmul.f32 %v1883_v34, %v4708_v0  ;;  %v1888_v0 = vadd.f32 0.5, %v1887_v33  ;;  %v2447_v33 = vld [vmem:[%s5401_s0 + $0xd8] sm:$0xff] }
 0x78e   :  { %v5255_v32 = vadd.f32 %v1890_v43, %v1889_v31 }
 0x790   :  { %6054 = vst [vmem:[#allocation63_spill] sm:$0xff] %v5255_v32  ;;  %2716 = vtanh.f32 %v5255_v32 }
 0x797   :  { %v1933_v1 = vpop.f32.mrb[48].mxu0  ;;  %v1974_v39 = vpop.f32.mrb[48].mxu1 }
 0x798   :  { %v1981_v20 = vadd.f32 %v2444_v36, %v1933_v1  ;;  %v1935_v44 = vpop.f32.mrb[49].mxu0  ;;  %v1976_v46 = vpop.f32.mrb[49].mxu1  ;;  %v1983_v40 = vadd.f32 %v2446_v24, %v1974_v39 }
 0x799   :  { %v1982_v16 = vadd.f32 %v2445_v9, %v1935_v44  ;;  %v1937_v47 = vpop.f32.mrb[50].mxu0  ;;  %v1978_v42 = vpop.f32.mrb[50].mxu1  ;;  %v1984_v9 = vadd.f32 %v2447_v33, %v1976_v46  ;;  %v6097_v33 = vld [vmem:[#allocation52_spill] sm:$0xff] }
 0x79a   :  { %v2717_v45 = vpop.eup %2716  ;;  %v1985_v34 = vmul.f32 0.5, %v1981_v20  ;;  %v1938_v43 = vpop.f32.mrb[51].mxu0 }
 0x79b   :  { %v1979_v31 = vpop.f32.mrb[51].mxu1  ;;  %v1989_v30 = vmul.f32 0.5, %v1982_v16  ;;  %v1893_v32 = vmul.f32 %v2717_v45, %v1888_v0  ;;  %v1994_v1 = vmul.f32 0.5, %v1984_v9  ;;  %v6099_v9 = vld [vmem:[#allocation54_spill] sm:$0xff] }
 0x79c   :  { %2718 = vtanh.f32 %v1985_v34 }
 0x79d   :  { %2720 = vtanh.f32 %v1989_v30  ;;  %v2004_v36 = vpack.c.bf16 %v1893_v32, %v1893_v32 }
 0x79e   :  { %2722 = vtanh.f32 %v1983_v40 }
 0x79f   :  { %2037 = vmatprep.mubr.bf16.mxu0 %v2004_v36  ;;  %2078 = vmatprep.mubr.bf16.mxu1 %v2004_v36  ;;  %2724 = vtanh.f32 %v1994_v1  ;;  %v6098_v36 = vld [vmem:[#allocation53_spill] sm:$0xff]  ;;  %v6100_v1 = vld [vmem:[#allocation55_spill] sm:$0xff] }
 0x7a6   :  { %v2719_v44 = vpop.eup %2718 }
 0x7a7   :  { %v2721_v47 = vpop.eup %2720  ;;  %v1987_v20 = vmul.f32 0.5, %v2719_v44  ;;  %v6101_v44 = vld [vmem:[#allocation6_spill] sm:$0xff] }
 0x7a8   :  { %v1991_v42 = vmul.f32 0.5, %v2721_v47  ;;  %v2723_v0 = vpop.eup %2722  ;;  %v6102_v47 = vld [vmem:[#allocation56_spill] sm:$0xff] }
 0x7a9   :  { %v1988_v16 = vadd.f32 0.5, %v1987_v20  ;;  %v2725_v32 = vpop.eup %2724  ;;  %v6103_v20 = vld [vmem:[#allocation57_spill] sm:$0xff] }
 0x7aa   :  { %v1992_v45 = vadd.f32 0.5, %v1991_v42  ;;  %v1996_v43 = vmul.f32 0.5, %v2725_v32  ;;  %v6104_v42 = vld [vmem:[#allocation58_spill] sm:$0xff] }
 0x7ab   :  { %v1999_v39 = vmul.f32 %v2723_v0, %v1988_v16  ;;  %v6105_v16 = vld [vmem:[#allocation59_spill] sm:$0xff]  ;;  %v6106_v0 = vld [vmem:[#allocation60_spill] sm:$0xff] }
 0x7ac   :  { %v1998_v24 = vmul.f32 %v1992_v45, %v4724_v41  ;;  %v1997_v40 = vadd.f32 0.5, %v1996_v43  ;;  %v6065_v41 = vld [vmem:[#allocation12_spill] sm:$0xff]  ;;  %v6107_v45 = vld [vmem:[#allocation61_spill] sm:$0xff] }
 0x7ad   :  { %v6109_v43 = vld [vmem:[#allocation8_spill] sm:$0xff] }
 0x7ae   :  { %v5271_v34 = vadd.f32 %v1999_v39, %v1998_v24  ;;  %v6108_v39 = vld [vmem:[#allocation62_spill] sm:$0xff] }
 0x7b0   :  { %2726 = vtanh.f32 %v5271_v34 }
 0x7ba   :  { %v2727_v46 = vpop.eup %2726 }
 0x7bb   :  { %v2002_v31 = vmul.f32 %v2727_v46, %v1997_v40 }
 0x7bd   :  { %v2003_v30 = vpack.c.bf16 %v2002_v31, %v2002_v31 }
 0x7bf   :  { %2038 = vmatmul.mubr.bf16.vlgmr.msra.gmra.mrb[52].mxu0 %v2003_v30  ;;  %2079 = vmatmul.mubr.bf16.vlgmr.msra.gmra.mrb[52].mxu1 %v2003_v30 }
 0x7c0   :  { %2111 = vmatpush1.bf16.msra.mxu0 %v4553_v35  ;;  %2152 = vmatpush1.bf16.msra.mxu1 %v4559_v19  ;;  %v6056_v35 = vld [vmem:[#allocation14_spill] sm:$0xff]  ;;  %v6057_v19 = vld [vmem:[#allocation16_spill] sm:$0xff] }
 0x7c1   :  { %2112 = vmatprep.subr.bf16.mxu0 %v4565_v27  ;;  %2153 = vmatprep.subr.bf16.mxu1 %v4571_v58  ;;  %v6058_v27 = vld [vmem:[#allocation15_spill] sm:$0xff]  ;;  %v6059_v58 = vld [vmem:[#allocation17_spill] sm:$0xff] }
 0x7c2   :  { %2142 = vmatprep.mubr.bf16.mxu0 %v5732_v49  ;;  %2183 = vmatprep.mubr.bf16.mxu1 %v5732_v49  ;;  %v6055_v49 = vld [vmem:[#allocation13_spill] sm:$0xff] }
 0x7c4   :  { %2113 = vmatpush1.bf16.msra.mxu0 %v4579_v10  ;;  %2154 = vmatpush1.bf16.msra.mxu1 %v4585_v25  ;;  %v6060_v10 = vld [vmem:[#allocation18_spill] sm:$0xff]  ;;  %v6061_v25 = vld [vmem:[#allocation19_spill] sm:$0xff] }
 0x7c5   :  { %2114 = vmatprep.subr.bf16.mxu0 %v4591_v29  ;;  %2155 = vmatprep.subr.bf16.mxu1 %v4739_v17  ;;  %v6062_v29 = vld [vmem:[#allocation20_spill] sm:$0xff]  ;;  %v6066_v17 = vld [vmem:[#allocation65_spill] sm:$0xff] }
 0x7c8   :  { %2115 = vmatpush1.bf16.msra.mxu0 %v4598_v18  ;;  %2156 = vmatpush1.bf16.msra.mxu1 %v4746_v48  ;;  %v6063_v18 = vld [vmem:[#allocation21_spill] sm:$0xff]  ;;  %v6067_v48 = vld [vmem:[#allocation22_spill] sm:$0xff] }
 0x7c9   :  { %2116 = vmatprep.subr.bf16.mxu0 %v4605_v15  ;;  %2157 = vmatprep.subr.bf16.mxu1 %v4753_v50  ;;  %v6064_v15 = vld [vmem:[#allocation7_spill] sm:$0xff] }
 0x7ca   :  { %v6068_v50 = vld [vmem:[#allocation23_spill] sm:$0xff] }
 0x7cc   :  { %2117 = vmatpush1.bf16.msra.mxu0 %v4759_v2  ;;  %2158 = vmatpush1.bf16.msra.mxu1 %v4765_v3  ;;  %v6069_v2 = vld [vmem:[#allocation24_spill] sm:$0xff]  ;;  %v6070_v3 = vld [vmem:[#allocation25_spill] sm:$0xff] }
 0x7cd   :  { %2118 = vmatprep.subr.bf16.mxu0 %v4771_v5  ;;  %2159 = vmatprep.subr.bf16.mxu1 %v4777_v55  ;;  %v6071_v5 = vld [vmem:[#allocation26_spill] sm:$0xff]  ;;  %v6072_v55 = vld [vmem:[#allocation27_spill] sm:$0xff] }
 0x7d0   :  { %2119 = vmatpush1.bf16.msra.mxu0 %v4783_v51  ;;  %2160 = vmatpush1.bf16.msra.mxu1 %v4789_v6  ;;  %v6073_v51 = vld [vmem:[#allocation28_spill] sm:$0xff]  ;;  %v6074_v6 = vld [vmem:[#allocation29_spill] sm:$0xff] }
 0x7d1   :  { %2120 = vmatprep.subr.bf16.mxu0 %v4795_v52  ;;  %2161 = vmatprep.subr.bf16.mxu1 %v4801_v7  ;;  %v6075_v52 = vld [vmem:[#allocation30_spill] sm:$0xff]  ;;  %v6076_v7 = vld [vmem:[#allocation31_spill] sm:$0xff] }
 0x7d4   :  { %2121 = vmatpush1.bf16.msra.mxu0 %v4807_v61  ;;  %2162 = vmatpush1.bf16.msra.mxu1 %v4813_v57  ;;  %v6077_v61 = vld [vmem:[#allocation32_spill] sm:$0xff]  ;;  %v6078_v57 = vld [vmem:[#allocation33_spill] sm:$0xff] }
 0x7d5   :  { %2122 = vmatprep.subr.bf16.mxu0 %v4819_v12  ;;  %2163 = vmatprep.subr.bf16.mxu1 %v4825_v8  ;;  %v6079_v12 = vld [vmem:[#allocation34_spill] sm:$0xff]  ;;  %v6080_v8 = vld [vmem:[#allocation35_spill] sm:$0xff] }
 0x7d8   :  { %2123 = vmatpush1.bf16.msra.mxu0 %v4831_v54  ;;  %2164 = vmatpush1.bf16.msra.mxu1 %v4837_v60  ;;  %v6081_v54 = vld [vmem:[#allocation36_spill] sm:$0xff]  ;;  %v6082_v60 = vld [vmem:[#allocation37_spill] sm:$0xff] }
 0x7d9   :  { %2124 = vmatprep.subr.bf16.mxu0 %v4843_v56  ;;  %2165 = vmatprep.subr.bf16.mxu1 %v4849_v37  ;;  %v6083_v56 = vld [vmem:[#allocation38_spill] sm:$0xff]  ;;  %v6084_v37 = vld [vmem:[#allocation39_spill] sm:$0xff] }
 0x7dc   :  { %2125 = vmatpush1.bf16.msra.mxu0 %v4855_v62  ;;  %2166 = vmatpush1.bf16.msra.mxu1 %v4861_v4  ;;  %v6085_v62 = vld [vmem:[#allocation40_spill] sm:$0xff]  ;;  %v6086_v4 = vld [vmem:[#allocation41_spill] sm:$0xff] }
 0x7dd   :  { %2216 = vmatprep.subr.bf16.mxu0 %v4867_v63  ;;  %2257 = vmatprep.subr.bf16.mxu1 %v4873_v11  ;;  %v6087_v63 = vld [vmem:[#allocation42_spill] sm:$0xff]  ;;  %v6088_v11 = vld [vmem:[#allocation43_spill] sm:$0xff] }
 0x7df   :  { %2143 = vmatmul.mubr.bf16.vlgmr.msra.gmra.mrb[56].mxu0 %v2003_v30  ;;  %2184 = vmatmul.mubr.bf16.vlgmr.msra.gmra.mrb[56].mxu1 %v2003_v30 }
 0x7e0   :  { %2217 = vmatpush1.bf16.msra.mxu0 %v4879_v23  ;;  %2258 = vmatpush1.bf16.msra.mxu1 %v4885_v13  ;;  %v6089_v23 = vld [vmem:[#allocation44_spill] sm:$0xff]  ;;  %v6090_v13 = vld [vmem:[#allocation45_spill] sm:$0xff] }
 0x7e1   :  { %2218 = vmatprep.subr.bf16.mxu0 %v4891_v26  ;;  %2259 = vmatprep.subr.bf16.mxu1 %v4897_v22  ;;  %v6091_v26 = vld [vmem:[#allocation46_spill] sm:$0xff]  ;;  %v6092_v22 = vld [vmem:[#allocation47_spill] sm:$0xff] }
 0x7e4   :  { %2219 = vmatpush1.bf16.msra.mxu0 %v4903_v14  ;;  %2260 = vmatpush1.bf16.msra.mxu1 %v4909_v28  ;;  %v6093_v14 = vld [vmem:[#allocation48_spill] sm:$0xff]  ;;  %v6094_v28 = vld [vmem:[#allocation49_spill] sm:$0xff] }
 0x7e5   :  { %2220 = vmatprep.subr.bf16.mxu0 %v4915_v21  ;;  %2261 = vmatprep.subr.bf16.mxu1 %v4921_v59  ;;  %v6095_v21 = vld [vmem:[#allocation50_spill] sm:$0xff]  ;;  %v6096_v59 = vld [vmem:[#allocation51_spill] sm:$0xff] }
 0x7e8   :  { %2221 = vmatpush1.bf16.msra.mxu0 %v6055_v49  ;;  %2262 = vmatpush1.bf16.msra.mxu1 %v6056_v35 }
 0x7e9   :  { %2222 = vmatprep.subr.bf16.mxu0 %v6057_v19  ;;  %2263 = vmatprep.subr.bf16.mxu1 %v6058_v27 }
 0x7ec   :  { %2223 = vmatpush1.bf16.msra.mxu0 %v6059_v58  ;;  %2264 = vmatpush1.bf16.msra.mxu1 %v6060_v10 }
 0x7ed   :  { %2224 = vmatprep.subr.bf16.mxu0 %v6061_v25  ;;  %2265 = vmatprep.subr.bf16.mxu1 %v6062_v29  ;;  %v6110_v29 = vld [vmem:[#allocation10_spill] sm:$0xff] }
 0x7f0   :  { %2225 = vmatpush1.bf16.msra.mxu0 %v6063_v18  ;;  %2266 = vmatpush1.bf16.msra.mxu1 %v6064_v15 }
 0x7f1   :  { %2226 = vmatprep.subr.bf16.mxu0 %v6065_v41  ;;  %2267 = vmatprep.subr.bf16.mxu1 %v6066_v17 }
 0x7f4   :  { %2227 = vmatpush1.bf16.msra.mxu0 %v6067_v48  ;;  %2268 = vmatpush1.bf16.msra.mxu1 %v6068_v50 }
 0x7f5   :  { %2228 = vmatprep.subr.bf16.mxu0 %v6069_v2  ;;  %2269 = vmatprep.subr.bf16.mxu1 %v6070_v3 }
 0x7f8   :  { %2229 = vmatpush1.bf16.msra.mxu0 %v6071_v5  ;;  %2270 = vmatpush1.bf16.msra.mxu1 %v6072_v55 }
 0x7f9   :  { %2230 = vmatprep.subr.bf16.mxu0 %v6073_v51  ;;  %2271 = vmatprep.subr.bf16.mxu1 %v6074_v6  ;;  %v6111_v51 = vld [vmem:[#allocation63_spill] sm:$0xff] }
 0x7fc   :  { %2231 = vmatpush1.bf16.msra.mxu0 %v6075_v52  ;;  %2272 = vmatpush1.bf16.msra.mxu1 %v6076_v7 }
 0x7fd   :  { %2232 = vmatprep.subr.bf16.mxu0 %v6077_v61  ;;  %2273 = vmatprep.subr.bf16.mxu1 %v6078_v57  ;;  %v2448_v57 = vld [vmem:[%s5401_s0 + $0xe0] sm:$0xff] }
 0x800   :  { %2233 = vmatpush1.bf16.msra.mxu0 %v6079_v12  ;;  %2274 = vmatpush1.bf16.msra.mxu1 %v6080_v8  ;;  %v2449_v12 = vld [vmem:[%s5401_s0 + $0xe8] sm:$0xff] }
 0x801   :  { %2234 = vmatprep.subr.bf16.mxu0 %v6081_v54  ;;  %2275 = vmatprep.subr.bf16.mxu1 %v6082_v60 }
 0x804   :  { %2235 = vmatpush1.bf16.msra.mxu0 %v6083_v56  ;;  %2276 = vmatpush1.bf16.msra.mxu1 %v6084_v37 }
 0x805   :  { %2236 = vmatprep.subr.bf16.mxu0 %v6085_v62  ;;  %2277 = vmatprep.subr.bf16.mxu1 %v6086_v4  ;;  %v2450_v4 = vld [vmem:[%s5401_s0 + $0xf0] sm:$0xff] }
 0x808   :  { %2237 = vmatpush1.bf16.msra.mxu0 %v6087_v63  ;;  %2278 = vmatpush1.bf16.msra.mxu1 %v6088_v11 }
 0x809   :  { %2238 = vmatprep.subr.bf16.mxu0 %v6089_v23  ;;  %2279 = vmatprep.subr.bf16.mxu1 %v6090_v13 }
 0x80c   :  { %2239 = vmatpush1.bf16.msra.mxu0 %v6091_v26  ;;  %2280 = vmatpush1.bf16.msra.mxu1 %v6092_v22 }
 0x80d   :  { %2240 = vmatprep.subr.bf16.mxu0 %v6093_v14  ;;  %2281 = vmatprep.subr.bf16.mxu1 %v6094_v28 }
 0x810   :  { %2241 = vmatpush1.bf16.msra.mxu0 %v6095_v21  ;;  %2282 = vmatpush1.bf16.msra.mxu1 %v6096_v59 }
 0x811   :  { %2242 = vmatprep.subr.bf16.mxu0 %v6097_v33  ;;  %2283 = vmatprep.subr.bf16.mxu1 %v6098_v36  ;;  %v2451_v33 = vld [vmem:[%s5401_s0 + $0xf8] sm:$0xff] }
 0x814   :  { %2243 = vmatpush1.bf16.msra.mxu0 %v6099_v9  ;;  %2284 = vmatpush1.bf16.msra.mxu1 %v6100_v1 }
 0x815   :  { %2244 = vmatprep.subr.bf16.mxu0 %v6101_v44  ;;  %2285 = vmatprep.subr.bf16.mxu1 %v6102_v47 }
 0x818   :  { %2245 = vmatpush1.bf16.msra.mxu0 %v6103_v20  ;;  %2286 = vmatpush1.bf16.msra.mxu1 %v6104_v42 }
 0x819   :  { %2246 = vmatprep.subr.bf16.mxu0 %v6105_v16  ;;  %2287 = vmatprep.subr.bf16.mxu1 %v6106_v0 }
 0x81c   :  { %2247 = vmatpush1.bf16.msra.mxu0 %v6107_v45  ;;  %2288 = vmatpush1.bf16.msra.mxu1 %v6108_v39 }
 0x892   :  { %v2039_v24 = vpop.f32.mrb[52].mxu0  ;;  %v2080_v32 = vpop.f32.mrb[52].mxu1 }
 0x893   :  { %v2040_v40 = vadd.f32 %v2039_v24, %v6109_v43  ;;  %v2041_v46 = vpop.f32.mrb[53].mxu0  ;;  %v2082_v31 = vpop.f32.mrb[53].mxu1  ;;  %v2081_v25 = vadd.f32 %v2080_v32, %v5997_v38 }
 0x894   :  { %v2042_v30 = vadd.f32 %v2041_v46, %v3675_v53  ;;  %v2043_v49 = vpop.f32.mrb[54].mxu0  ;;  %v2084_v35 = vpop.f32.mrb[54].mxu1  ;;  %v2083_v18 = vadd.f32 %v2082_v31, %v6110_v29 }
 0x895   :  { %v2087_v19 = vmul.f32 0.5, %v2040_v40  ;;  %v2044_v27 = vpop.f32.mrb[55].mxu0  ;;  %v2085_v58 = vpop.f32.mrb[55].mxu1 }
 0x896   :  { %v2091_v10 = vmul.f32 0.5, %v2042_v30  ;;  %v2096_v15 = vmul.f32 0.5, %v2083_v18 }
 0x897   :  { %2728 = vtanh.f32 %v2087_v19 }
 0x898   :  { %2730 = vtanh.f32 %v2091_v10 }
 0x899   :  { %2732 = vtanh.f32 %v2081_v25 }
 0x89a   :  { %2734 = vtanh.f32 %v2096_v15 }
 0x8a1   :  { %v2729_v41 = vpop.eup %2728 }
 0x8a2   :  { %v2731_v17 = vpop.eup %2730  ;;  %v2089_v48 = vmul.f32 0.5, %v2729_v41 }
 0x8a3   :  { %v2093_v50 = vmul.f32 0.5, %v2731_v17  ;;  %v2733_v3 = vpop.eup %2732 }
 0x8a4   :  { %v2090_v2 = vadd.f32 0.5, %v2089_v48  ;;  %v2735_v7 = vpop.eup %2734 }
 0x8a5   :  { %v2094_v5 = vadd.f32 0.5, %v2093_v50  ;;  %v2098_v61 = vmul.f32 0.5, %v2735_v7 }
 0x8a6   :  { %v2101_v55 = vmul.f32 %v2733_v3, %v2090_v2 }
 0x8a7   :  { %v2100_v6 = vmul.f32 %v2094_v5, %v6111_v51  ;;  %v2099_v62 = vadd.f32 0.5, %v2098_v61 }
 0x8a9   :  { %v5375_v52 = vadd.f32 %v2101_v55, %v2100_v6 }
 0x8ab   :  { %2736 = vtanh.f32 %v5375_v52 }
 0x8b2   :  { %v2144_v8 = vpop.f32.mrb[56].mxu0  ;;  %v2185_v54 = vpop.f32.mrb[56].mxu1 }
 0x8b3   :  { %v2192_v60 = vadd.f32 %v2448_v57, %v2144_v8  ;;  %v2146_v56 = vpop.f32.mrb[57].mxu0  ;;  %v2187_v37 = vpop.f32.mrb[57].mxu1  ;;  %v2194_v59 = vadd.f32 %v2450_v4, %v2185_v54 }
 0x8b4   :  { %v2193_v63 = vadd.f32 %v2449_v12, %v2146_v56  ;;  %v2148_v11 = vpop.f32.mrb[58].mxu0  ;;  %v2189_v23 = vpop.f32.mrb[58].mxu1  ;;  %v2195_v9 = vadd.f32 %v2451_v33, %v2187_v37 }
 0x8b5   :  { %v2737_v13 = vpop.eup %2736  ;;  %v2196_v26 = vmul.f32 0.5, %v2192_v60  ;;  %v2149_v22 = vpop.f32.mrb[59].mxu0 }
 0x8b6   :  { %v2190_v14 = vpop.f32.mrb[59].mxu1  ;;  %v2200_v28 = vmul.f32 0.5, %v2193_v63  ;;  %v2104_v21 = vmul.f32 %v2737_v13, %v2099_v62  ;;  %v2205_v1 = vmul.f32 0.5, %v2195_v9 }
 0x8b7   :  { %2738 = vtanh.f32 %v2196_v26 }
 0x8b8   :  { %2740 = vtanh.f32 %v2200_v28  ;;  %v2215_v36 = vpack.c.bf16 %v2104_v21, %v2104_v21 }
 0x8b9   :  { %2742 = vtanh.f32 %v2194_v59 }
 0x8ba   :  { %2248 = vmatprep.mubr.bf16.mxu0 %v2215_v36  ;;  %2289 = vmatprep.mubr.bf16.mxu1 %v2215_v36  ;;  %2744 = vtanh.f32 %v2205_v1 }
 0x8c1   :  { %v2739_v44 = vpop.eup %2738 }
 0x8c2   :  { %v2741_v47 = vpop.eup %2740  ;;  %v2198_v20 = vmul.f32 0.5, %v2739_v44 }
 0x8c3   :  { %v2202_v42 = vmul.f32 0.5, %v2741_v47  ;;  %v2743_v0 = vpop.eup %2742 }
 0x8c4   :  { %v2199_v16 = vadd.f32 0.5, %v2198_v20  ;;  %v2745_v40 = vpop.eup %2744 }
 0x8c5   :  { %v2203_v45 = vadd.f32 0.5, %v2202_v42  ;;  %v2207_v46 = vmul.f32 0.5, %v2745_v40 }
 0x8c6   :  { %v2210_v39 = vmul.f32 %v2743_v0, %v2199_v16 }
 0x8c7   :  { %v2209_v24 = vmul.f32 %v2203_v45, %v5271_v34  ;;  %v2208_v31 = vadd.f32 0.5, %v2207_v46 }
 0x8c9   :  { %v2211_v32 = vadd.f32 %v2210_v39, %v2209_v24 }
 0x8cb   :  { %2746 = vtanh.f32 %v2211_v32 }
 0x8d5   :  { %v2747_v30 = vpop.eup %2746 }
 0x8d6   :  { %v2213_v49 = vmul.f32 %v2747_v30, %v2208_v31 }
 0x8d8   :  { %v2214_v35 = vpack.c.bf16 %v2213_v49, %v2213_v49 }
 0x8da   :  { %2249 = vmatmul.mubr.bf16.vlgmr.msra.gmra.mrb[60].mxu0 %v2214_v35  ;;  %2290 = vmatmul.mubr.bf16.vlgmr.msra.gmra.mrb[60].mxu1 %v2214_v35 }
 0x9ad   :  { %v2250_v19 = vpop.f32.mrb[60].mxu0  ;;  %v2291_v27 = vpop.f32.mrb[60].mxu1 }
 0x9ae   :  { %v2251_v58 = vadd.f32 %v2250_v19, %v6109_v43  ;;  %v2252_v10 = vpop.f32.mrb[61].mxu0  ;;  %v2293_v25 = vpop.f32.mrb[61].mxu1  ;;  %v2292_v2 = vadd.f32 %v2291_v27, %v5997_v38 }
 0x9af   :  { %v2253_v18 = vadd.f32 %v2252_v10, %v3675_v53  ;;  %v2254_v15 = vpop.f32.mrb[62].mxu0  ;;  %v2295_v34 = vpop.f32.mrb[62].mxu1  ;;  %v2294_v3 = vadd.f32 %v2293_v25, %v6110_v29 }
 0x9b0   :  { %v2298_v41 = vmul.f32 0.5, %v2251_v58  ;;  %v2255_v17 = vpop.f32.mrb[63].mxu0  ;;  %v2296_v48 = vpop.f32.mrb[63].mxu1 }
 0x9b1   :  { %v2302_v50 = vmul.f32 0.5, %v2253_v18  ;;  %v2307_v5 = vmul.f32 0.5, %v2294_v3 }
 0x9b2   :  { %2748 = vtanh.f32 %v2298_v41 }
 0x9b3   :  { %2750 = vtanh.f32 %v2302_v50 }
 0x9b4   :  { %2752 = vtanh.f32 %v2292_v2 }
 0x9b5   :  { %2754 = vtanh.f32 %v2307_v5 }
 0x9bc   :  { %v2749_v55 = vpop.eup %2748 }
 0x9bd   :  { %v2751_v43 = vpop.eup %2750  ;;  %v2300_v51 = vmul.f32 0.5, %v2749_v55 }
 0x9be   :  { %v2304_v6 = vmul.f32 0.5, %v2751_v43  ;;  %v2753_v7 = vpop.eup %2752 }
 0x9bf   :  { %v2301_v53 = vadd.f32 0.5, %v2300_v51  ;;  %v2755_v54 = vpop.eup %2754 }
 0x9c0   :  { %v2305_v61 = vadd.f32 0.5, %v2304_v6  ;;  %v2309_v38 = vmul.f32 0.5, %v2755_v54 }
 0x9c1   :  { %v2312_v57 = vmul.f32 %v2753_v7, %v2301_v53 }
 0x9c2   :  { %v2311_v12 = vmul.f32 %v2305_v61, %v5375_v52  ;;  %v2310_v60 = vadd.f32 0.5, %v2309_v38 }
 0x9c4   :  { %v2313_v8 = vadd.f32 %v2312_v57, %v2311_v12 }
 0x9c6   :  { %2756 = vtanh.f32 %v2313_v8 }
 0x9d0   :  { %v2757_v56 = vpop.eup %2756 }
 0x9d1   :  { %v2315_v37 = vmul.f32 %v2757_v56, %v2310_v60 }
 0x9d3   :  { %2323 = vst [vmem:[%s5403_s4] sm:$0xff] %v2315_v37 }

</bundles_post_ra>
